<compile_context>
chip_gen: v7x
topology: tpu7x:2x2x1
jax: 0.10.0
libtpu: 0.0.40
codegen_flags: <defaults>
</compile_context>

<pallas_src>
import jax
import jax.numpy as jnp
import numpy as np
from jax.experimental import pallas as pl
from jax.experimental.pallas import tpu as pltpu


# ----------------------------------------------------------------------------------
# Bilinear interpolation matrices (PyTorch align_corners=False semantics)
# ----------------------------------------------------------------------------------
def _interp_matrix(out_size, in_size):
    scale = in_size / out_size
    o = jnp.arange(out_size, dtype=jnp.float32)
    src = jnp.maximum((o + 0.5) * scale - 0.5, 0.0)
    i0 = jnp.minimum(jnp.floor(src).astype(jnp.int32), in_size - 1)
    i1 = jnp.minimum(i0 + 1, in_size - 1)
    lam = src - i0.astype(jnp.float32)
    w = (jax.nn.one_hot(i0, in_size, dtype=jnp.float32) * (1.0 - lam)[:, None]
         + jax.nn.one_hot(i1, in_size, dtype=jnp.float32) * lam[:, None])
    return w  # (out_size, in_size)


# ----------------------------------------------------------------------------------
# Block-size (instances per grid step) heuristic
# ----------------------------------------------------------------------------------
def _choose_nb(n, t, hp, wp, h, w, *,
               target_bytes=1 << 20, vmem_budget=24 << 20, max_nb=16):
    """Pick NB: big enough to amortize per-step overhead and feed the MXU,
    small enough for v7x's 64 MiB VMEM and to keep >= ~4 grid steps."""
    bf16 = 2
    per_inst_hbm = t * hp * wp * bf16 + 2 * t * h * w * bf16   # pseudo + box + out
    nb = max(1, min(max_nb, target_bytes // max(per_inst_hbm, 1)))
    nb = min(nb, max(1, -(-n // 4)))                           # keep >= ~4 steps

    def vmem_need(k):
        blocks = 2 * k * per_inst_hbm                          # double-buffered DMAs
        temps = k * t * hp * w * 4 + 8 * h * w * 4             # tmp + per-frame f32 slabs
        weights = 2 * (h * hp + wp * w) * bf16
        return blocks + temps + weights

    while nb > 1 and vmem_need(nb) > vmem_budget:
        nb -= 1
    return int(nb)


# ----------------------------------------------------------------------------------
# Pallas kernel: NB instances (all T frames each) per grid step
# ----------------------------------------------------------------------------------
def _pseudo_mask_kernel(pseudo_ref, box_ref, wy_ref, wxt_ref,
                        out_mask_ref, out_score_ref):
    # pseudo_ref: (NB, T*Hp, Wp) bf16 mask logits (frames stacked along sublanes)
    # box_ref:    (NB, T, H, W)  bf16 binary box masks
    # wy_ref:     (H, Hp) bf16,  wxt_ref: (Wp, W) bf16
    NB, T, H, W = box_ref.shape
    THp, Wp = pseudo_ref.shape[1], pseudo_ref.shape[2]
    Hp = THp // T

    wy = wy_ref[...]                  # (H, Hp)  bf16
    wxt = wxt_ref[...]                # (Wp, W)  bf16

    # x-direction interpolation for ALL NB*T frames at once: a single MXU push
    # with M = NB*T*Hp rows, bf16 operands, f32 accumulation.
    pseudo = pseudo_ref[...].reshape(NB * THp, Wp)
    tmp = jnp.dot(pseudo, wxt, preferred_element_type=jnp.float32)   # (NB*T*Hp, W) f32
    tmp_bf = tmp.astype(jnp.bfloat16)  # one big cast; y-matmul operands stay bf16

    scores = []
    # TODO(synk): at production shapes (large T, 640x720 masks) move T onto a
    # grid axis marked "arbitrary" (or use lax.fori_loop) to bound live ranges
    # instead of this static unroll, and re-derive NB against the v7x budget.
    for n in range(NB):
        vy_num = jnp.zeros((1, W), jnp.float32)
        vy_den = jnp.zeros((1, W), jnp.float32)
        vx_num = jnp.zeros((H, 1), jnp.float32)
        vx_den = jnp.zeros((H, 1), jnp.float32)
        for t in range(T):
            row0 = (n * T + t) * Hp   # Hp % 16 == 0 keeps bf16 slices tile-aligned
            # y-direction interpolation for frame (n, t): (H,Hp) @ (Hp,W), f32 acc
            interp = jnp.dot(wy, tmp_bf[row0:row0 + Hp, :],
                             preferred_element_type=jnp.float32)      # (H, W) f32
            sig = jax.nn.sigmoid(interp)                              # f32 (EUP)
            box_t = box_ref[n, t].astype(jnp.float32)                 # exact (binary)

            # masks_pseudo = tgt_mask_box * sigmoid(interp)   (bf16 store)
            out_mask_ref[n, t] = (box_t * sig).astype(out_mask_ref.dtype)

            # max-projections (XLU) per frame; the SUM reductions are hoisted
            # out of the loop -- only cheap VPU accumulations happen here.
            py = jnp.max(sig, axis=0, keepdims=True)     # (1, W) max over H
            by = jnp.max(box_t, axis=0, keepdims=True)   # (1, W)
            px = jnp.max(sig, axis=1, keepdims=True)     # (H, 1) max over W
            bx = jnp.max(box_t, axis=1, keepdims=True)   # (H, 1)
            vy_num = vy_num + py * by
            vy_den = vy_den + py * py + by * by
            vx_num = vx_num + px * bx
            vx_den = vx_den + px * px + bx * bx

        # Only 4 cross-lane reductions per instance (instead of 6 per frame).
        ny = 2.0 * jnp.sum(vy_num, keepdims=True)
        dy = jnp.sum(vy_den, keepdims=True)
        nx = 2.0 * jnp.sum(vx_num, keepdims=True)
        dx = jnp.sum(vx_den, keepdims=True)
        proj_y = ny / jnp.maximum(dy, 1e-6)
        proj_x = nx / jnp.maximum(dx, 1e-6)
        scores.append(0.5 * (proj_x + proj_y))           # (1, 1)

    # One lane-masked (NB,1,1) store per step instead of one per instance.
    out_score_ref[...] = jnp.concatenate(scores, axis=0).reshape(NB, 1, 1)


def pseudo_mask_project(pseudo, box, *, out_dtype=jnp.bfloat16):
    """pseudo: (N, T, Hp, Wp) mask logits; box: (N, T, H, W) binary box masks.
    Returns (masks_pseudo (N,T,H,W) in out_dtype, mask_proj_score (N,) f32)."""
    N, T, Hp, Wp = map(int, pseudo.shape)
    _, _, H, W = map(int, box.shape)

    # Alignment contract for production shapes: Hp % 16 == 0 (bf16 sublane-
    # aligned tmp slices), H % 16 == 0 (bf16 box/out sublane packing), and W a
    # multiple of 128 (unmasked lane-dense stores); pad in the wrapper if not.
    NB = _choose_nb(N, T, Hp, Wp, H, W)
    Np = ((N + NB - 1) // NB) * NB
    if Np != N:
        pseudo = jnp.pad(pseudo, ((0, Np - N), (0, 0), (0, 0), (0, 0)))
        box = jnp.pad(box, ((0, Np - N), (0, 0), (0, 0), (0, 0)))

    # bf16 MXU operands (f32 accumulate in-kernel); halves the pseudo HBM read.
    pseudo2d = pseudo.astype(jnp.bfloat16).reshape(Np, T * Hp, Wp)
    box = box.astype(jnp.bfloat16)                      # binary -> exact in bf16
    wy = _interp_matrix(H, Hp).astype(jnp.bfloat16)     # (H, Hp)
    wxt = _interp_matrix(W, Wp).T.astype(jnp.bfloat16)  # (Wp, W)

    out_masks, out_score = pl.pallas_call(
        _pseudo_mask_kernel,
        out_shape=(jax.ShapeDtypeStruct((Np, T, H, W), out_dtype),
                   jax.ShapeDtypeStruct((Np, 1, 1), jnp.float32)),
        grid_spec=pltpu.PrefetchScalarGridSpec(
            num_scalar_prefetch=0,
            grid=(Np // NB,),
            in_specs=[
                pl.BlockSpec((NB, T * Hp, Wp), lambda i: (i, 0, 0)),
                pl.BlockSpec((NB, T, H, W), lambda i: (i, 0, 0, 0)),
                pl.BlockSpec((H, Hp), lambda i: (0, 0)),
                pl.BlockSpec((Wp, W), lambda i: (0, 0)),
            ],
            out_specs=[
                pl.BlockSpec((NB, T, H, W), lambda i: (i, 0, 0, 0)),
                pl.BlockSpec((NB, 1, 1), lambda i: (i, 0, 0)),
            ],
        ),
        compiler_params=pltpu.CompilerParams(
            dimension_semantics=("parallel",),
            vmem_limit_bytes=32 * 1024 * 1024),
    )(pseudo2d, box, wy, wxt)
    return out_masks[:N], out_score[:N, 0, 0]


# ----------------------------------------------------------------------------------
# Module (glue in plain JAX / host code)
# ----------------------------------------------------------------------------------
def simple_greedy_matcher(outputs, targets):
    """Deterministic greedy matcher by class probability (stands in for Hungarian)."""
    # TODO(synk): the real Hungarian assignment has no clean Pallas equivalent; host glue.
    probs = np.asarray(jax.device_get(jax.nn.softmax(outputs['pred_logits'], axis=-1)))
    indices = []
    for b, t in enumerate(targets):
        labels = np.asarray(jax.device_get(t['labels']))
        n_tgt = labels.shape[0]
        used = set()
        src, tgt = [], []
        # visit targets in reversed order to exercise the tgt_idx sort in set_pseudo_mask
        for j in reversed(range(n_tgt)):
            order = np.argsort(-probs[b, :, labels[j]])
            for q in order:
                if int(q) not in used:
                    used.add(int(q))
                    src.append(int(q))
                    tgt.append(j)
                    break
        indices.append((jnp.asarray(src, dtype=jnp.int32),
                        jnp.asarray(tgt, dtype=jnp.int32)))
    return indices


class BoxVISTeacherSetPseudoMask:
    def __init__(self, matcher):
        self.matcher = matcher

    def __call__(self, outputs, targets):
        outputs_without_aux = {k: v for k, v in outputs.items() if k != 'aux_outputs'}
        indices = self.matcher(outputs_without_aux, targets)
        targets = self.set_pseudo_mask(indices, outputs_without_aux, targets)

        # One fused pallas_call for all instances of the whole batch
        # (same mask resolution across batch elements assumed, as in this setup).
        counts = [int(t['masks'].shape[0]) for t in targets]
        all_pseudo = jnp.concatenate([t['masks_pseudo'] for t in targets], axis=0)
        all_box = jnp.concatenate([t['masks'] for t in targets], axis=0)
        masks_out, mask_proj_score = pseudo_mask_project(all_pseudo, all_box)

        off = 0
        for target, n in zip(targets, counts):
            target['mask_pseudo_scores'] = (target['mask_pseudo_scores']
                                            * mask_proj_score[off:off + n])
            target['masks_pseudo'] = masks_out[off:off + n]
            off += n
        return targets

    def set_pseudo_mask(self, indices, outputs, targets):
        src_masks = jax.lax.stop_gradient(outputs['pred_masks'])
        src_logits = jax.lax.stop_gradient(jax.nn.softmax(outputs['pred_logits'], axis=-1))
        for i, ((src_idx, tgt_idx), target) in enumerate(zip(indices, targets)):
            assert len(tgt_idx) == target['masks'].shape[0]
            order = jnp.argsort(tgt_idx)        # tgt_idx.sort() -> permutation
            src_idx = src_idx[order]
            tgt_labels = target['labels']
            target['mask_pseudo_scores'] = src_logits[i, src_idx, tgt_labels]
            target['masks_pseudo'] = src_masks[i, src_idx]
        return targets


# ----------------------------------------------------------------------------------
# Pure-JAX reference for the kernel hot path (uses the same interp matrices, f32)
# ----------------------------------------------------------------------------------
def _reference_project(pseudo, box):
    pseudo = pseudo.astype(jnp.float32)
    box = box.astype(jnp.float32)
    N, T, Hp, Wp = pseudo.shape
    _, _, H, W = box.shape
    wy = _interp_matrix(H, Hp)
    wx = _interp_matrix(W, Wp)
    interp = jnp.einsum('hp,ntpq,wq->nthw', wy, pseudo, wx)
    sig = jax.nn.sigmoid(interp)
    masks_out = box * sig
    py = sig.max(axis=2).reshape(N, -1)
    by = box.max(axis=2).reshape(N, -1)
    proj_y = 2 * (py * by).sum(-1) / jnp.maximum((py ** 2).sum(-1) + (by ** 2).sum(-1), 1e-6)
    px = sig.max(axis=3).reshape(N, -1)
    bx = box.max(axis=3).reshape(N, -1)
    proj_x = 2 * (px * bx).sum(-1) / jnp.maximum((px ** 2).sum(-1) + (bx ** 2).sum(-1), 1e-6)
    return masks_out, 0.5 * (proj_x + proj_y)


# ----------------------------------------------------------------------------------
# Main
# ----------------------------------------------------------------------------------
def _make_box_masks(key, n, t, h, w):
    k1, k2, k3, k4 = jax.random.split(key, 4)
    y0 = jax.random.randint(k1, (n, t), 0, h // 2)
    y1 = jax.random.randint(k2, (n, t), h // 2, h)
    x0 = jax.random.randint(k3, (n, t), 0, w // 2)
    x1 = jax.random.randint(k4, (n, t), w // 2, w)
    yy = jnp.arange(h)[None, None, :, None]
    xx = jnp.arange(w)[None, None, None, :]
    m = ((yy >= y0[..., None, None]) & (yy < y1[..., None, None]) &
         (xx >= x0[..., None, None]) & (xx < x1[..., None, None]))
    return m.astype(jnp.bfloat16)   # binary -> exact in bf16


if __name__ == "__main__":
    key = jax.random.PRNGKey(0)
    B, Q, C = 2, 8, 6          # batch, queries, classes
    T, Hp, Wp = 3, 32, 32      # frames, pred-mask resolution
    H, W = 64, 128             # target (box mask) resolution (lane-dense W)
    n_inst = [3, 2]            # instances per batch element

    k_logits, k_masks, k_tgt = jax.random.split(key, 3)
    outputs = {
        'pred_logits': jax.random.normal(k_logits, (B, Q, C), dtype=jnp.float32),
        'pred_masks': jax.random.normal(k_masks, (B, Q, T, Hp, Wp), dtype=jnp.float32),
        'aux_outputs': None,   # ignored, like in the torch module
    }

    targets = []
    for b in range(B):
        kb, kl, k_tgt = jax.random.split(k_tgt, 3)
        targets.append({
            'masks': _make_box_masks(kb, n_inst[b], T, H, W),
            'labels': jax.random.randint(kl, (n_inst[b],), 0, C),
        })

    module = BoxVISTeacherSetPseudoMask(simple_greedy_matcher)

    # keep copies of pre-kernel pseudo masks / scores for reference check
    indices = simple_greedy_matcher(
        {k: v for k, v in outputs.items() if k != 'aux_outputs'}, targets)
    ref_targets = [dict(t) for t in targets]
    ref_targets = module.set_pseudo_mask(
        indices, {k: v for k, v in outputs.items() if k != 'aux_outputs'}, ref_targets)
    ref_pre = [(t['masks_pseudo'], t['mask_pseudo_scores'], t['masks']) for t in ref_targets]

    result = module(outputs, targets)
    for t in result:
        jax.block_until_ready(t['masks_pseudo'])
        jax.block_until_ready(t['mask_pseudo_scores'])

    # correctness check of the Pallas hot path against a pure-JAX f32 reference
    for t, (pseudo_pre, score_pre, box) in zip(result, ref_pre):
        ref_masks, ref_proj = _reference_project(pseudo_pre, box)
        # kernel uses bf16 MXU operands + bf16 stores -> relaxed tolerances
        np.testing.assert_allclose(
            np.asarray(t['masks_pseudo'].astype(jnp.float32)),
            np.asarray(ref_masks), rtol=2e-2, atol=1e-2)
        np.testing.assert_allclose(
            np.asarray(t['mask_pseudo_scores']),
            np.asarray(score_pre * ref_proj), rtol=1.5e-2, atol=1e-2)

    print("KERNEL_OK")
</pallas_src>

<mosaic_0001>
module attributes {stable_mosaic.version = 11 : i64} {
  func.func @_pseudo_mask_kernel(%arg0: i32, %arg1: memref<2x96x32xbf16, #tpu.memory_space<vmem>>, %arg2: memref<2x3x64x128xbf16, #tpu.memory_space<vmem>>, %arg3: memref<64x32xbf16, #tpu.memory_space<vmem>>, %arg4: memref<32x128xbf16, #tpu.memory_space<vmem>>, %arg5: memref<2x3x64x128xbf16, #tpu.memory_space<vmem>>, %arg6: memref<2x1x1xf32, #tpu.memory_space<vmem>>) attributes {dimension_semantics = [#tpu.dimension_semantics<parallel>], iteration_bounds = array<i64: 3>, scalar_prefetch = 0 : i64, scratch_operands = 0 : i64, tpu.core_type = #tpu.core_type<tc>, window_params = [{transform_indices = @transform_0, window_bounds = array<i64: 2, 96, 32>}, {transform_indices = @transform_1, window_bounds = array<i64: 2, 3, 64, 128>}, {pipeline_mode = #tpu.pipeline_mode<synchronous>, transform_indices = @transform_2, window_bounds = array<i64: 64, 32>}, {pipeline_mode = #tpu.pipeline_mode<synchronous>, transform_indices = @transform_3, window_bounds = array<i64: 32, 128>}, {transform_indices = @transform_4, window_bounds = array<i64: 2, 3, 64, 128>}, {transform_indices = @transform_5, window_bounds = array<i64: 2, 1, 1>}]} {
    %c0 = arith.constant 0 : index
    %c0_0 = arith.constant 0 : index
    %0 = vector.load %arg3[%c0, %c0_0] : memref<64x32xbf16, #tpu.memory_space<vmem>>, vector<64x32xbf16>
    %c0_1 = arith.constant 0 : index
    %c0_2 = arith.constant 0 : index
    %1 = vector.load %arg4[%c0_1, %c0_2] : memref<32x128xbf16, #tpu.memory_space<vmem>>, vector<32x128xbf16>
    %c0_3 = arith.constant 0 : index
    %c0_4 = arith.constant 0 : index
    %c0_5 = arith.constant 0 : index
    %2 = vector.load %arg1[%c0_3, %c0_4, %c0_5] : memref<2x96x32xbf16, #tpu.memory_space<vmem>>, vector<2x96x32xbf16>
    %3 = vector.shape_cast %2 : vector<2x96x32xbf16> to vector<192x32xbf16>
    %cst = arith.constant dense<0.000000e+00> : vector<192x128xf32>
    %4 = tpu.matmul %3, %1, %cst {dimension_numbers = #tpu.dot_dimension_numbers<[1], [0], [0], [1], [0, 0, 1, 1], [], []>} : vector<192x32xbf16>, vector<32x128xbf16>, vector<192x128xf32> -> vector<192x128xf32>
    %5 = arith.truncf %4 : vector<192x128xf32> to vector<192x128xbf16>
    %cst_6 = arith.constant 0.000000e+00 : f32
    %6 = vector.broadcast %cst_6 : f32 to vector<1x128xf32>
    %cst_7 = arith.constant 0.000000e+00 : f32
    %7 = vector.broadcast %cst_7 : f32 to vector<1x128xf32>
    %cst_8 = arith.constant 0.000000e+00 : f32
    %8 = vector.broadcast %cst_8 : f32 to vector<64x1xf32>
    %cst_9 = arith.constant 0.000000e+00 : f32
    %9 = vector.broadcast %cst_9 : f32 to vector<64x1xf32>
    %10 = vector.extract_strided_slice %5 {offsets = [0, 0], sizes = [32, 128], strides = [1, 1]} : vector<192x128xbf16> to vector<32x128xbf16>
    %cst_10 = arith.constant dense<0.000000e+00> : vector<64x128xf32>
    %11 = tpu.matmul %0, %10, %cst_10 {dimension_numbers = #tpu.dot_dimension_numbers<[1], [0], [0], [1], [0, 0, 1, 1], [], []>} : vector<64x32xbf16>, vector<32x128xbf16>, vector<64x128xf32> -> vector<64x128xf32>
    %12 = arith.negf %11 : vector<64x128xf32>
    %13 = math.exp %12 : vector<64x128xf32>
    %cst_11 = arith.constant 1.000000e+00 : f32
    %14 = vector.broadcast %cst_11 : f32 to vector<64x128xf32>
    %15 = arith.addf %14, %13 : vector<64x128xf32>
    %16 = arith.divf %14, %15 : vector<64x128xf32>
    %c0_12 = arith.constant 0 : index
    %c0_13 = arith.constant 0 : index
    %c0_14 = arith.constant 0 : index
    %c0_15 = arith.constant 0 : index
    %17 = vector.load %arg2[%c0_12, %c0_13, %c0_14, %c0_15] : memref<2x3x64x128xbf16, #tpu.memory_space<vmem>>, vector<1x1x64x128xbf16>
    %18 = vector.shape_cast %17 : vector<1x1x64x128xbf16> to vector<64x128xbf16>
    %19 = arith.extf %18 : vector<64x128xbf16> to vector<64x128xf32>
    %20 = arith.mulf %19, %16 : vector<64x128xf32>
    %21 = arith.truncf %20 : vector<64x128xf32> to vector<64x128xbf16>
    %c0_16 = arith.constant 0 : index
    %c0_17 = arith.constant 0 : index
    %c0_18 = arith.constant 0 : index
    %c0_19 = arith.constant 0 : index
    %22 = vector.load %arg5[%c0_16, %c0_17, %c0_18, %c0_19] : memref<2x3x64x128xbf16, #tpu.memory_space<vmem>>, vector<1x1x64x128xbf16>
    %23 = vector.shape_cast %22 : vector<1x1x64x128xbf16> to vector<64x128xbf16>
    %24 = vector.shape_cast %21 : vector<64x128xbf16> to vector<1x1x64x128xbf16>
    tpu.vector_store %arg5[%c0_16, %c0_17, %c0_18, %c0_19], %24 {strides = array<i32>} : memref<2x3x64x128xbf16, #tpu.memory_space<vmem>>, vector<1x1x64x128xbf16>,
    %cst_20 = arith.constant dense<0xFF800000> : vector<128xf32>
    %25 = vector.multi_reduction <maximumf>, %16, %cst_20 [0] : vector<64x128xf32> to vector<128xf32>
    %26 = vector.shape_cast %25 : vector<128xf32> to vector<1x128xf32>
    %cst_21 = arith.constant dense<0xFF800000> : vector<128xf32>
    %27 = vector.multi_reduction <maximumf>, %19, %cst_21 [0] : vector<64x128xf32> to vector<128xf32>
    %28 = vector.shape_cast %27 : vector<128xf32> to vector<1x128xf32>
    %cst_22 = arith.constant dense<0xFF800000> : vector<64xf32>
    %29 = vector.multi_reduction <maximumf>, %16, %cst_22 [1] : vector<64x128xf32> to vector<64xf32>
    %30 = vector.shape_cast %29 : vector<64xf32> to vector<64x1xf32>
    %cst_23 = arith.constant dense<0xFF800000> : vector<64xf32>
    %31 = vector.multi_reduction <maximumf>, %19, %cst_23 [1] : vector<64x128xf32> to vector<64xf32>
    %32 = vector.shape_cast %31 : vector<64xf32> to vector<64x1xf32>
    %33 = arith.mulf %26, %28 : vector<1x128xf32>
    %34 = arith.addf %6, %33 : vector<1x128xf32>
    %35 = arith.mulf %26, %26 : vector<1x128xf32>
    %36 = arith.addf %7, %35 : vector<1x128xf32>
    %37 = arith.mulf %28, %28 : vector<1x128xf32>
    %38 = arith.addf %36, %37 : vector<1x128xf32>
    %39 = arith.mulf %30, %32 : vector<64x1xf32>
    %40 = arith.addf %8, %39 : vector<64x1xf32>
    %41 = arith.mulf %30, %30 : vector<64x1xf32>
    %42 = arith.addf %9, %41 : vector<64x1xf32>
    %43 = arith.mulf %32, %32 : vector<64x1xf32>
    %44 = arith.addf %42, %43 : vector<64x1xf32>
    %45 = vector.extract_strided_slice %5 {offsets = [32, 0], sizes = [32, 128], strides = [1, 1]} : vector<192x128xbf16> to vector<32x128xbf16>
    %cst_24 = arith.constant dense<0.000000e+00> : vector<64x128xf32>
    %46 = tpu.matmul %0, %45, %cst_24 {dimension_numbers = #tpu.dot_dimension_numbers<[1], [0], [0], [1], [0, 0, 1, 1], [], []>} : vector<64x32xbf16>, vector<32x128xbf16>, vector<64x128xf32> -> vector<64x128xf32>
    %47 = arith.negf %46 : vector<64x128xf32>
    %48 = math.exp %47 : vector<64x128xf32>
    %cst_25 = arith.constant 1.000000e+00 : f32
    %49 = vector.broadcast %cst_25 : f32 to vector<64x128xf32>
    %50 = arith.addf %49, %48 : vector<64x128xf32>
    %51 = arith.divf %49, %50 : vector<64x128xf32>
    %c0_26 = arith.constant 0 : index
    %c1 = arith.constant 1 : index
    %c0_27 = arith.constant 0 : index
    %c0_28 = arith.constant 0 : index
    %52 = vector.load %arg2[%c0_26, %c1, %c0_27, %c0_28] : memref<2x3x64x128xbf16, #tpu.memory_space<vmem>>, vector<1x1x64x128xbf16>
    %53 = vector.shape_cast %52 : vector<1x1x64x128xbf16> to vector<64x128xbf16>
    %54 = arith.extf %53 : vector<64x128xbf16> to vector<64x128xf32>
    %55 = arith.mulf %54, %51 : vector<64x128xf32>
    %56 = arith.truncf %55 : vector<64x128xf32> to vector<64x128xbf16>
    %c0_29 = arith.constant 0 : index
    %c1_30 = arith.constant 1 : index
    %c0_31 = arith.constant 0 : index
    %c0_32 = arith.constant 0 : index
    %57 = vector.load %arg5[%c0_29, %c1_30, %c0_31, %c0_32] : memref<2x3x64x128xbf16, #tpu.memory_space<vmem>>, vector<1x1x64x128xbf16>
    %58 = vector.shape_cast %57 : vector<1x1x64x128xbf16> to vector<64x128xbf16>
    %59 = vector.shape_cast %56 : vector<64x128xbf16> to vector<1x1x64x128xbf16>
    tpu.vector_store %arg5[%c0_29, %c1_30, %c0_31, %c0_32], %59 {strides = array<i32>} : memref<2x3x64x128xbf16, #tpu.memory_space<vmem>>, vector<1x1x64x128xbf16>,
    %cst_33 = arith.constant dense<0xFF800000> : vector<128xf32>
    %60 = vector.multi_reduction <maximumf>, %51, %cst_33 [0] : vector<64x128xf32> to vector<128xf32>
    %61 = vector.shape_cast %60 : vector<128xf32> to vector<1x128xf32>
    %cst_34 = arith.constant dense<0xFF800000> : vector<128xf32>
    %62 = vector.multi_reduction <maximumf>, %54, %cst_34 [0] : vector<64x128xf32> to vector<128xf32>
    %63 = vector.shape_cast %62 : vector<128xf32> to vector<1x128xf32>
    %cst_35 = arith.constant dense<0xFF800000> : vector<64xf32>
    %64 = vector.multi_reduction <maximumf>, %51, %cst_35 [1] : vector<64x128xf32> to vector<64xf32>
    %65 = vector.shape_cast %64 : vector<64xf32> to vector<64x1xf32>
    %cst_36 = arith.constant dense<0xFF800000> : vector<64xf32>
    %66 = vector.multi_reduction <maximumf>, %54, %cst_36 [1] : vector<64x128xf32> to vector<64xf32>
    %67 = vector.shape_cast %66 : vector<64xf32> to vector<64x1xf32>
    %68 = arith.mulf %61, %63 : vector<1x128xf32>
    %69 = arith.addf %34, %68 : vector<1x128xf32>
    %70 = arith.mulf %61, %61 : vector<1x128xf32>
    %71 = arith.addf %38, %70 : vector<1x128xf32>
    %72 = arith.mulf %63, %63 : vector<1x128xf32>
    %73 = arith.addf %71, %72 : vector<1x128xf32>
    %74 = arith.mulf %65, %67 : vector<64x1xf32>
    %75 = arith.addf %40, %74 : vector<64x1xf32>
    %76 = arith.mulf %65, %65 : vector<64x1xf32>
    %77 = arith.addf %44, %76 : vector<64x1xf32>
    %78 = arith.mulf %67, %67 : vector<64x1xf32>
    %79 = arith.addf %77, %78 : vector<64x1xf32>
    %80 = vector.extract_strided_slice %5 {offsets = [64, 0], sizes = [32, 128], strides = [1, 1]} : vector<192x128xbf16> to vector<32x128xbf16>
    %cst_37 = arith.constant dense<0.000000e+00> : vector<64x128xf32>
    %81 = tpu.matmul %0, %80, %cst_37 {dimension_numbers = #tpu.dot_dimension_numbers<[1], [0], [0], [1], [0, 0, 1, 1], [], []>} : vector<64x32xbf16>, vector<32x128xbf16>, vector<64x128xf32> -> vector<64x128xf32>
    %82 = arith.negf %81 : vector<64x128xf32>
    %83 = math.exp %82 : vector<64x128xf32>
    %cst_38 = arith.constant 1.000000e+00 : f32
    %84 = vector.broadcast %cst_38 : f32 to vector<64x128xf32>
    %85 = arith.addf %84, %83 : vector<64x128xf32>
    %86 = arith.divf %84, %85 : vector<64x128xf32>
    %c0_39 = arith.constant 0 : index
    %c2 = arith.constant 2 : index
    %c0_40 = arith.constant 0 : index
    %c0_41 = arith.constant 0 : index
    %87 = vector.load %arg2[%c0_39, %c2, %c0_40, %c0_41] : memref<2x3x64x128xbf16, #tpu.memory_space<vmem>>, vector<1x1x64x128xbf16>
    %88 = vector.shape_cast %87 : vector<1x1x64x128xbf16> to vector<64x128xbf16>
    %89 = arith.extf %88 : vector<64x128xbf16> to vector<64x128xf32>
    %90 = arith.mulf %89, %86 : vector<64x128xf32>
    %91 = arith.truncf %90 : vector<64x128xf32> to vector<64x128xbf16>
    %c0_42 = arith.constant 0 : index
    %c2_43 = arith.constant 2 : index
    %c0_44 = arith.constant 0 : index
    %c0_45 = arith.constant 0 : index
    %92 = vector.load %arg5[%c0_42, %c2_43, %c0_44, %c0_45] : memref<2x3x64x128xbf16, #tpu.memory_space<vmem>>, vector<1x1x64x128xbf16>
    %93 = vector.shape_cast %92 : vector<1x1x64x128xbf16> to vector<64x128xbf16>
    %94 = vector.shape_cast %91 : vector<64x128xbf16> to vector<1x1x64x128xbf16>
    tpu.vector_store %arg5[%c0_42, %c2_43, %c0_44, %c0_45], %94 {strides = array<i32>} : memref<2x3x64x128xbf16, #tpu.memory_space<vmem>>, vector<1x1x64x128xbf16>,
    %cst_46 = arith.constant dense<0xFF800000> : vector<128xf32>
    %95 = vector.multi_reduction <maximumf>, %86, %cst_46 [0] : vector<64x128xf32> to vector<128xf32>
    %96 = vector.shape_cast %95 : vector<128xf32> to vector<1x128xf32>
    %cst_47 = arith.constant dense<0xFF800000> : vector<128xf32>
    %97 = vector.multi_reduction <maximumf>, %89, %cst_47 [0] : vector<64x128xf32> to vector<128xf32>
    %98 = vector.shape_cast %97 : vector<128xf32> to vector<1x128xf32>
    %cst_48 = arith.constant dense<0xFF800000> : vector<64xf32>
    %99 = vector.multi_reduction <maximumf>, %86, %cst_48 [1] : vector<64x128xf32> to vector<64xf32>
    %100 = vector.shape_cast %99 : vector<64xf32> to vector<64x1xf32>
    %cst_49 = arith.constant dense<0xFF800000> : vector<64xf32>
    %101 = vector.multi_reduction <maximumf>, %89, %cst_49 [1] : vector<64x128xf32> to vector<64xf32>
    %102 = vector.shape_cast %101 : vector<64xf32> to vector<64x1xf32>
    %103 = arith.mulf %96, %98 : vector<1x128xf32>
    %104 = arith.addf %69, %103 : vector<1x128xf32>
    %105 = arith.mulf %96, %96 : vector<1x128xf32>
    %106 = arith.addf %73, %105 : vector<1x128xf32>
    %107 = arith.mulf %98, %98 : vector<1x128xf32>
    %108 = arith.addf %106, %107 : vector<1x128xf32>
    %109 = arith.mulf %100, %102 : vector<64x1xf32>
    %110 = arith.addf %75, %109 : vector<64x1xf32>
    %111 = arith.mulf %100, %100 : vector<64x1xf32>
    %112 = arith.addf %79, %111 : vector<64x1xf32>
    %113 = arith.mulf %102, %102 : vector<64x1xf32>
    %114 = arith.addf %112, %113 : vector<64x1xf32>
    %115 = vector.shape_cast %104 : vector<1x128xf32> to vector<1x1x128xf32>
    %cst_50 = arith.constant dense<0.000000e+00> : vector<1xf32>
    %116 = vector.multi_reduction <add>, %115, %cst_50 [1, 2] : vector<1x1x128xf32> to vector<1xf32>
    %117 = vector.shape_cast %116 : vector<1xf32> to vector<1x1x1xf32>
    %118 = vector.extract %117[0, 0, 0] : f32 from vector<1x1x1xf32>
    %119 = vector.broadcast %118 : f32 to vector<1x1xf32>
    %cst_51 = arith.constant 2.000000e+00 : f32
    %120 = vector.broadcast %cst_51 : f32 to vector<1x1xf32>
    %121 = arith.mulf %120, %119 : vector<1x1xf32>
    %122 = vector.shape_cast %108 : vector<1x128xf32> to vector<1x1x128xf32>
    %cst_52 = arith.constant dense<0.000000e+00> : vector<1xf32>
    %123 = vector.multi_reduction <add>, %122, %cst_52 [1, 2] : vector<1x1x128xf32> to vector<1xf32>
    %124 = vector.shape_cast %123 : vector<1xf32> to vector<1x1x1xf32>
    %125 = vector.extract %124[0, 0, 0] : f32 from vector<1x1x1xf32>
    %126 = vector.broadcast %125 : f32 to vector<1x1xf32>
    %127 = vector.shape_cast %110 : vector<64x1xf32> to vector<1x64x1xf32>
    %cst_53 = arith.constant dense<0.000000e+00> : vector<1xf32>
    %128 = vector.multi_reduction <add>, %127, %cst_53 [1, 2] : vector<1x64x1xf32> to vector<1xf32>
    %129 = vector.shape_cast %128 : vector<1xf32> to vector<1x1x1xf32>
    %130 = vector.extract %129[0, 0, 0] : f32 from vector<1x1x1xf32>
    %131 = vector.broadcast %130 : f32 to vector<1x1xf32>
    %cst_54 = arith.constant 2.000000e+00 : f32
    %132 = vector.broadcast %cst_54 : f32 to vector<1x1xf32>
    %133 = arith.mulf %132, %131 : vector<1x1xf32>
    %134 = vector.shape_cast %114 : vector<64x1xf32> to vector<1x64x1xf32>
    %cst_55 = arith.constant dense<0.000000e+00> : vector<1xf32>
    %135 = vector.multi_reduction <add>, %134, %cst_55 [1, 2] : vector<1x64x1xf32> to vector<1xf32>
    %136 = vector.shape_cast %135 : vector<1xf32> to vector<1x1x1xf32>
    %137 = vector.extract %136[0, 0, 0] : f32 from vector<1x1x1xf32>
    %138 = vector.broadcast %137 : f32 to vector<1x1xf32>
    %cst_56 = arith.constant 9.99999997E-7 : f32
    %139 = vector.broadcast %cst_56 : f32 to vector<1x1xf32>
    %140 = arith.maximumf %126, %139 : vector<1x1xf32>
    %141 = arith.divf %121, %140 : vector<1x1xf32>
    %cst_57 = arith.constant 9.99999997E-7 : f32
    %142 = vector.broadcast %cst_57 : f32 to vector<1x1xf32>
    %143 = arith.maximumf %138, %142 : vector<1x1xf32>
    %144 = arith.divf %133, %143 : vector<1x1xf32>
    %145 = arith.addf %144, %141 : vector<1x1xf32>
    %cst_58 = arith.constant 5.000000e-01 : f32
    %146 = vector.broadcast %cst_58 : f32 to vector<1x1xf32>
    %147 = arith.mulf %146, %145 : vector<1x1xf32>
    %cst_59 = arith.constant 0.000000e+00 : f32
    %148 = vector.broadcast %cst_59 : f32 to vector<1x128xf32>
    %cst_60 = arith.constant 0.000000e+00 : f32
    %149 = vector.broadcast %cst_60 : f32 to vector<1x128xf32>
    %cst_61 = arith.constant 0.000000e+00 : f32
    %150 = vector.broadcast %cst_61 : f32 to vector<64x1xf32>
    %cst_62 = arith.constant 0.000000e+00 : f32
    %151 = vector.broadcast %cst_62 : f32 to vector<64x1xf32>
    %152 = vector.extract_strided_slice %5 {offsets = [96, 0], sizes = [32, 128], strides = [1, 1]} : vector<192x128xbf16> to vector<32x128xbf16>
    %cst_63 = arith.constant dense<0.000000e+00> : vector<64x128xf32>
    %153 = tpu.matmul %0, %152, %cst_63 {dimension_numbers = #tpu.dot_dimension_numbers<[1], [0], [0], [1], [0, 0, 1, 1], [], []>} : vector<64x32xbf16>, vector<32x128xbf16>, vector<64x128xf32> -> vector<64x128xf32>
    %154 = arith.negf %153 : vector<64x128xf32>
    %155 = math.exp %154 : vector<64x128xf32>
    %cst_64 = arith.constant 1.000000e+00 : f32
    %156 = vector.broadcast %cst_64 : f32 to vector<64x128xf32>
    %157 = arith.addf %156, %155 : vector<64x128xf32>
    %158 = arith.divf %156, %157 : vector<64x128xf32>
    %c1_65 = arith.constant 1 : index
    %c0_66 = arith.constant 0 : index
    %c0_67 = arith.constant 0 : index
    %c0_68 = arith.constant 0 : index
    %159 = vector.load %arg2[%c1_65, %c0_66, %c0_67, %c0_68] : memref<2x3x64x128xbf16, #tpu.memory_space<vmem>>, vector<1x1x64x128xbf16>
    %160 = vector.shape_cast %159 : vector<1x1x64x128xbf16> to vector<64x128xbf16>
    %161 = arith.extf %160 : vector<64x128xbf16> to vector<64x128xf32>
    %162 = arith.mulf %161, %158 : vector<64x128xf32>
    %163 = arith.truncf %162 : vector<64x128xf32> to vector<64x128xbf16>
    %c1_69 = arith.constant 1 : index
    %c0_70 = arith.constant 0 : index
    %c0_71 = arith.constant 0 : index
    %c0_72 = arith.constant 0 : index
    %164 = vector.load %arg5[%c1_69, %c0_70, %c0_71, %c0_72] : memref<2x3x64x128xbf16, #tpu.memory_space<vmem>>, vector<1x1x64x128xbf16>
    %165 = vector.shape_cast %164 : vector<1x1x64x128xbf16> to vector<64x128xbf16>
    %166 = vector.shape_cast %163 : vector<64x128xbf16> to vector<1x1x64x128xbf16>
    tpu.vector_store %arg5[%c1_69, %c0_70, %c0_71, %c0_72], %166 {strides = array<i32>} : memref<2x3x64x128xbf16, #tpu.memory_space<vmem>>, vector<1x1x64x128xbf16>,
    %cst_73 = arith.constant dense<0xFF800000> : vector<128xf32>
    %167 = vector.multi_reduction <maximumf>, %158, %cst_73 [0] : vector<64x128xf32> to vector<128xf32>
    %168 = vector.shape_cast %167 : vector<128xf32> to vector<1x128xf32>
    %cst_74 = arith.constant dense<0xFF800000> : vector<128xf32>
    %169 = vector.multi_reduction <maximumf>, %161, %cst_74 [0] : vector<64x128xf32> to vector<128xf32>
    %170 = vector.shape_cast %169 : vector<128xf32> to vector<1x128xf32>
    %cst_75 = arith.constant dense<0xFF800000> : vector<64xf32>
    %171 = vector.multi_reduction <maximumf>, %158, %cst_75 [1] : vector<64x128xf32> to vector<64xf32>
    %172 = vector.shape_cast %171 : vector<64xf32> to vector<64x1xf32>
    %cst_76 = arith.constant dense<0xFF800000> : vector<64xf32>
    %173 = vector.multi_reduction <maximumf>, %161, %cst_76 [1] : vector<64x128xf32> to vector<64xf32>
    %174 = vector.shape_cast %173 : vector<64xf32> to vector<64x1xf32>
    %175 = arith.mulf %168, %170 : vector<1x128xf32>
    %176 = arith.addf %148, %175 : vector<1x128xf32>
    %177 = arith.mulf %168, %168 : vector<1x128xf32>
    %178 = arith.addf %149, %177 : vector<1x128xf32>
    %179 = arith.mulf %170, %170 : vector<1x128xf32>
    %180 = arith.addf %178, %179 : vector<1x128xf32>
    %181 = arith.mulf %172, %174 : vector<64x1xf32>
    %182 = arith.addf %150, %181 : vector<64x1xf32>
    %183 = arith.mulf %172, %172 : vector<64x1xf32>
    %184 = arith.addf %151, %183 : vector<64x1xf32>
    %185 = arith.mulf %174, %174 : vector<64x1xf32>
    %186 = arith.addf %184, %185 : vector<64x1xf32>
    %187 = vector.extract_strided_slice %5 {offsets = [128, 0], sizes = [32, 128], strides = [1, 1]} : vector<192x128xbf16> to vector<32x128xbf16>
    %cst_77 = arith.constant dense<0.000000e+00> : vector<64x128xf32>
    %188 = tpu.matmul %0, %187, %cst_77 {dimension_numbers = #tpu.dot_dimension_numbers<[1], [0], [0], [1], [0, 0, 1, 1], [], []>} : vector<64x32xbf16>, vector<32x128xbf16>, vector<64x128xf32> -> vector<64x128xf32>
    %189 = arith.negf %188 : vector<64x128xf32>
    %190 = math.exp %189 : vector<64x128xf32>
    %cst_78 = arith.constant 1.000000e+00 : f32
    %191 = vector.broadcast %cst_78 : f32 to vector<64x128xf32>
    %192 = arith.addf %191, %190 : vector<64x128xf32>
    %193 = arith.divf %191, %192 : vector<64x128xf32>
    %c1_79 = arith.constant 1 : index
    %c1_80 = arith.constant 1 : index
    %c0_81 = arith.constant 0 : index
    %c0_82 = arith.constant 0 : index
    %194 = vector.load %arg2[%c1_79, %c1_80, %c0_81, %c0_82] : memref<2x3x64x128xbf16, #tpu.memory_space<vmem>>, vector<1x1x64x128xbf16>
    %195 = vector.shape_cast %194 : vector<1x1x64x128xbf16> to vector<64x128xbf16>
    %196 = arith.extf %195 : vector<64x128xbf16> to vector<64x128xf32>
    %197 = arith.mulf %196, %193 : vector<64x128xf32>
    %198 = arith.truncf %197 : vector<64x128xf32> to vector<64x128xbf16>
    %c1_83 = arith.constant 1 : index
    %c1_84 = arith.constant 1 : index
    %c0_85 = arith.constant 0 : index
    %c0_86 = arith.constant 0 : index
    %199 = vector.load %arg5[%c1_83, %c1_84, %c0_85, %c0_86] : memref<2x3x64x128xbf16, #tpu.memory_space<vmem>>, vector<1x1x64x128xbf16>
    %200 = vector.shape_cast %199 : vector<1x1x64x128xbf16> to vector<64x128xbf16>
    %201 = vector.shape_cast %198 : vector<64x128xbf16> to vector<1x1x64x128xbf16>
    tpu.vector_store %arg5[%c1_83, %c1_84, %c0_85, %c0_86], %201 {strides = array<i32>} : memref<2x3x64x128xbf16, #tpu.memory_space<vmem>>, vector<1x1x64x128xbf16>,
    %cst_87 = arith.constant dense<0xFF800000> : vector<128xf32>
    %202 = vector.multi_reduction <maximumf>, %193, %cst_87 [0] : vector<64x128xf32> to vector<128xf32>
    %203 = vector.shape_cast %202 : vector<128xf32> to vector<1x128xf32>
    %cst_88 = arith.constant dense<0xFF800000> : vector<128xf32>
    %204 = vector.multi_reduction <maximumf>, %196, %cst_88 [0] : vector<64x128xf32> to vector<128xf32>
    %205 = vector.shape_cast %204 : vector<128xf32> to vector<1x128xf32>
    %cst_89 = arith.constant dense<0xFF800000> : vector<64xf32>
    %206 = vector.multi_reduction <maximumf>, %193, %cst_89 [1] : vector<64x128xf32> to vector<64xf32>
    %207 = vector.shape_cast %206 : vector<64xf32> to vector<64x1xf32>
    %cst_90 = arith.constant dense<0xFF800000> : vector<64xf32>
    %208 = vector.multi_reduction <maximumf>, %196, %cst_90 [1] : vector<64x128xf32> to vector<64xf32>
    %209 = vector.shape_cast %208 : vector<64xf32> to vector<64x1xf32>
    %210 = arith.mulf %203, %205 : vector<1x128xf32>
    %211 = arith.addf %176, %210 : vector<1x128xf32>
    %212 = arith.mulf %203, %203 : vector<1x128xf32>
    %213 = arith.addf %180, %212 : vector<1x128xf32>
    %214 = arith.mulf %205, %205 : vector<1x128xf32>
    %215 = arith.addf %213, %214 : vector<1x128xf32>
    %216 = arith.mulf %207, %209 : vector<64x1xf32>
    %217 = arith.addf %182, %216 : vector<64x1xf32>
    %218 = arith.mulf %207, %207 : vector<64x1xf32>
    %219 = arith.addf %186, %218 : vector<64x1xf32>
    %220 = arith.mulf %209, %209 : vector<64x1xf32>
    %221 = arith.addf %219, %220 : vector<64x1xf32>
    %222 = vector.extract_strided_slice %5 {offsets = [160, 0], sizes = [32, 128], strides = [1, 1]} : vector<192x128xbf16> to vector<32x128xbf16>
    %cst_91 = arith.constant dense<0.000000e+00> : vector<64x128xf32>
    %223 = tpu.matmul %0, %222, %cst_91 {dimension_numbers = #tpu.dot_dimension_numbers<[1], [0], [0], [1], [0, 0, 1, 1], [], []>} : vector<64x32xbf16>, vector<32x128xbf16>, vector<64x128xf32> -> vector<64x128xf32>
    %224 = arith.negf %223 : vector<64x128xf32>
    %225 = math.exp %224 : vector<64x128xf32>
    %cst_92 = arith.constant 1.000000e+00 : f32
    %226 = vector.broadcast %cst_92 : f32 to vector<64x128xf32>
    %227 = arith.addf %226, %225 : vector<64x128xf32>
    %228 = arith.divf %226, %227 : vector<64x128xf32>
    %c1_93 = arith.constant 1 : index
    %c2_94 = arith.constant 2 : index
    %c0_95 = arith.constant 0 : index
    %c0_96 = arith.constant 0 : index
    %229 = vector.load %arg2[%c1_93, %c2_94, %c0_95, %c0_96] : memref<2x3x64x128xbf16, #tpu.memory_space<vmem>>, vector<1x1x64x128xbf16>
    %230 = vector.shape_cast %229 : vector<1x1x64x128xbf16> to vector<64x128xbf16>
    %231 = arith.extf %230 : vector<64x128xbf16> to vector<64x128xf32>
    %232 = arith.mulf %231, %228 : vector<64x128xf32>
    %233 = arith.truncf %232 : vector<64x128xf32> to vector<64x128xbf16>
    %c1_97 = arith.constant 1 : index
    %c2_98 = arith.constant 2 : index
    %c0_99 = arith.constant 0 : index
    %c0_100 = arith.constant 0 : index
    %234 = vector.load %arg5[%c1_97, %c2_98, %c0_99, %c0_100] : memref<2x3x64x128xbf16, #tpu.memory_space<vmem>>, vector<1x1x64x128xbf16>
    %235 = vector.shape_cast %234 : vector<1x1x64x128xbf16> to vector<64x128xbf16>
    %236 = vector.shape_cast %233 : vector<64x128xbf16> to vector<1x1x64x128xbf16>
    tpu.vector_store %arg5[%c1_97, %c2_98, %c0_99, %c0_100], %236 {strides = array<i32>} : memref<2x3x64x128xbf16, #tpu.memory_space<vmem>>, vector<1x1x64x128xbf16>,
    %cst_101 = arith.constant dense<0xFF800000> : vector<128xf32>
    %237 = vector.multi_reduction <maximumf>, %228, %cst_101 [0] : vector<64x128xf32> to vector<128xf32>
    %238 = vector.shape_cast %237 : vector<128xf32> to vector<1x128xf32>
    %cst_102 = arith.constant dense<0xFF800000> : vector<128xf32>
    %239 = vector.multi_reduction <maximumf>, %231, %cst_102 [0] : vector<64x128xf32> to vector<128xf32>
    %240 = vector.shape_cast %239 : vector<128xf32> to vector<1x128xf32>
    %cst_103 = arith.constant dense<0xFF800000> : vector<64xf32>
    %241 = vector.multi_reduction <maximumf>, %228, %cst_103 [1] : vector<64x128xf32> to vector<64xf32>
    %242 = vector.shape_cast %241 : vector<64xf32> to vector<64x1xf32>
    %cst_104 = arith.constant dense<0xFF800000> : vector<64xf32>
    %243 = vector.multi_reduction <maximumf>, %231, %cst_104 [1] : vector<64x128xf32> to vector<64xf32>
    %244 = vector.shape_cast %243 : vector<64xf32> to vector<64x1xf32>
    %245 = arith.mulf %238, %240 : vector<1x128xf32>
    %246 = arith.addf %211, %245 : vector<1x128xf32>
    %247 = arith.mulf %238, %238 : vector<1x128xf32>
    %248 = arith.addf %215, %247 : vector<1x128xf32>
    %249 = arith.mulf %240, %240 : vector<1x128xf32>
    %250 = arith.addf %248, %249 : vector<1x128xf32>
    %251 = arith.mulf %242, %244 : vector<64x1xf32>
    %252 = arith.addf %217, %251 : vector<64x1xf32>
    %253 = arith.mulf %242, %242 : vector<64x1xf32>
    %254 = arith.addf %221, %253 : vector<64x1xf32>
    %255 = arith.mulf %244, %244 : vector<64x1xf32>
    %256 = arith.addf %254, %255 : vector<64x1xf32>
    %257 = vector.shape_cast %246 : vector<1x128xf32> to vector<1x1x128xf32>
    %cst_105 = arith.constant dense<0.000000e+00> : vector<1xf32>
    %258 = vector.multi_reduction <add>, %257, %cst_105 [1, 2] : vector<1x1x128xf32> to vector<1xf32>
    %259 = vector.shape_cast %258 : vector<1xf32> to vector<1x1x1xf32>
    %260 = vector.extract %259[0, 0, 0] : f32 from vector<1x1x1xf32>
    %261 = vector.broadcast %260 : f32 to vector<1x1xf32>
    %cst_106 = arith.constant 2.000000e+00 : f32
    %262 = vector.broadcast %cst_106 : f32 to vector<1x1xf32>
    %263 = arith.mulf %262, %261 : vector<1x1xf32>
    %264 = vector.shape_cast %250 : vector<1x128xf32> to vector<1x1x128xf32>
    %cst_107 = arith.constant dense<0.000000e+00> : vector<1xf32>
    %265 = vector.multi_reduction <add>, %264, %cst_107 [1, 2] : vector<1x1x128xf32> to vector<1xf32>
    %266 = vector.shape_cast %265 : vector<1xf32> to vector<1x1x1xf32>
    %267 = vector.extract %266[0, 0, 0] : f32 from vector<1x1x1xf32>
    %268 = vector.broadcast %267 : f32 to vector<1x1xf32>
    %269 = vector.shape_cast %252 : vector<64x1xf32> to vector<1x64x1xf32>
    %cst_108 = arith.constant dense<0.000000e+00> : vector<1xf32>
    %270 = vector.multi_reduction <add>, %269, %cst_108 [1, 2] : vector<1x64x1xf32> to vector<1xf32>
    %271 = vector.shape_cast %270 : vector<1xf32> to vector<1x1x1xf32>
    %272 = vector.extract %271[0, 0, 0] : f32 from vector<1x1x1xf32>
    %273 = vector.broadcast %272 : f32 to vector<1x1xf32>
    %cst_109 = arith.constant 2.000000e+00 : f32
    %274 = vector.broadcast %cst_109 : f32 to vector<1x1xf32>
    %275 = arith.mulf %274, %273 : vector<1x1xf32>
    %276 = vector.shape_cast %256 : vector<64x1xf32> to vector<1x64x1xf32>
    %cst_110 = arith.constant dense<0.000000e+00> : vector<1xf32>
    %277 = vector.multi_reduction <add>, %276, %cst_110 [1, 2] : vector<1x64x1xf32> to vector<1xf32>
    %278 = vector.shape_cast %277 : vector<1xf32> to vector<1x1x1xf32>
    %279 = vector.extract %278[0, 0, 0] : f32 from vector<1x1x1xf32>
    %280 = vector.broadcast %279 : f32 to vector<1x1xf32>
    %cst_111 = arith.constant 9.99999997E-7 : f32
    %281 = vector.broadcast %cst_111 : f32 to vector<1x1xf32>
    %282 = arith.maximumf %268, %281 : vector<1x1xf32>
    %283 = arith.divf %263, %282 : vector<1x1xf32>
    %cst_112 = arith.constant 9.99999997E-7 : f32
    %284 = vector.broadcast %cst_112 : f32 to vector<1x1xf32>
    %285 = arith.maximumf %280, %284 : vector<1x1xf32>
    %286 = arith.divf %275, %285 : vector<1x1xf32>
    %287 = arith.addf %286, %283 : vector<1x1xf32>
    %cst_113 = arith.constant 5.000000e-01 : f32
    %288 = vector.broadcast %cst_113 : f32 to vector<1x1xf32>
    %289 = arith.mulf %288, %287 : vector<1x1xf32>
    %290 = tpu.concatenate %147, %289 in 0 : vector<1x1xf32>, vector<1x1xf32> -> vector<2x1xf32>
    %291 = vector.shape_cast %290 : vector<2x1xf32> to vector<2x1x1xf32>
    %c0_114 = arith.constant 0 : index
    %c0_115 = arith.constant 0 : index
    %c0_116 = arith.constant 0 : index
    %292 = vector.load %arg6[%c0_114, %c0_115, %c0_116] : memref<2x1x1xf32, #tpu.memory_space<vmem>>, vector<2x1x1xf32>
    tpu.vector_store %arg6[%c0_114, %c0_115, %c0_116], %291 {strides = array<i32>} : memref<2x1x1xf32, #tpu.memory_space<vmem>>, vector<2x1x1xf32>,
    return
  }
  func.func @transform_0(%arg0: i32) -> (i32, i32, i32) {
    %c0_i32 = arith.constant 0 : i32
    %c0_i32_0 = arith.constant 0 : i32
    %c0_i32_1 = arith.constant 0 : i32
    return %arg0, %c0_i32, %c0_i32_0 : i32, i32, i32
  }
  func.func @transform_1(%arg0: i32) -> (i32, i32, i32, i32) {
    %c0_i32 = arith.constant 0 : i32
    %c0_i32_0 = arith.constant 0 : i32
    %c0_i32_1 = arith.constant 0 : i32
    %c0_i32_2 = arith.constant 0 : i32
    return %arg0, %c0_i32, %c0_i32_0, %c0_i32_1 : i32, i32, i32, i32
  }
  func.func @transform_2(%arg0: i32) -> (i32, i32) {
    %c0_i32 = arith.constant 0 : i32
    %c0_i32_0 = arith.constant 0 : i32
    %c0_i32_1 = arith.constant 0 : i32
    return %c0_i32, %c0_i32_0 : i32, i32
  }
  func.func @transform_3(%arg0: i32) -> (i32, i32) {
    %c0_i32 = arith.constant 0 : i32
    %c0_i32_0 = arith.constant 0 : i32
    %c0_i32_1 = arith.constant 0 : i32
    return %c0_i32, %c0_i32_0 : i32, i32
  }
  func.func @transform_4(%arg0: i32) -> (i32, i32, i32, i32) {
    %c0_i32 = arith.constant 0 : i32
    %c0_i32_0 = arith.constant 0 : i32
    %c0_i32_1 = arith.constant 0 : i32
    %c0_i32_2 = arith.constant 0 : i32
    return %arg0, %c0_i32, %c0_i32_0, %c0_i32_1 : i32, i32, i32, i32
  }
  func.func @transform_5(%arg0: i32) -> (i32, i32, i32) {
    %c0_i32 = arith.constant 0 : i32
    %c0_i32_0 = arith.constant 0 : i32
    %c0_i32_1 = arith.constant 0 : i32
    return %arg0, %c0_i32, %c0_i32_0 : i32, i32, i32
  }
}

</mosaic_0001>

<bundles_post_ra>
// kernel: tpu_custom_call.1
= control target key start
LH: loop header
LB: loop body
LE: loop exit
PB: predicated region body
PF: predicated region fallthrough
CT: control target
= control target key end

     0   :  { %11 = vsyncpa [#allocation3], 0  ;;  %s5234_s0 = inlined_call_operand.vmem [shape: bf16[6,96,32], index: 0, kind: input, shape index: {}]   ;;  %s5235_s1 = inlined_call_operand.hbm [shape: bf16[6,3,64,128], index: 1, kind: input, shape index: {}]   ;;  %s5236_s2 = inlined_call_operand.vmem [shape: bf16[64,32], index: 2, kind: input, shape index: {}]   ;;  %s5237_s3 = inlined_call_operand.vmem [shape: bf16[32,128], index: 3, kind: input, shape index: {}]   ;;  %s5238_s4 = inlined_call_operand.hbm [shape: bf16[6,3,64,128], index: 4, kind: output, shape index: {0}]   ;;  %s5239_s5 = inlined_call_operand.vmem [shape: f32[6,1,1], index: 5, kind: output, shape index: {1}]  }
   0x1   :  { %13 = vsyncpa [#allocation3 + $0x1], 0 }
   0x2   :  { %14 = vsyncpa [#allocation4], 0 }
   0x3   :  { %16 = vsyncpa [#allocation4 + $0x1], 0  ;;  %s3804_s18 = smov 0   ;;  %s3806_s19 = smov 0  }
   0x4   :  { %s3808_s20 = smov 0   ;;  %s3810_s21 = smov 0  }
   0x5 LB: > { %s3825_s22 = sadd.s32 4294967295, %s3765_s21   ;;  %s2669_s23 = sadd.s32 4294967294, %s3765_s21   ;;  %s3765_s21 = sphi %s3810_s21, %s5383_s21   ;;  %s3761_s20 = sphi %s3808_s20, %s5382_s20   ;;  %s3757_s19 = sphi %s3806_s19, %s5381_s19   ;;  %s3753_s18 = sphi %s3804_s18, %s5380_s18  }
   0x6   : > { %s3829_s24 = sadd.s32 1, %s3765_s21   ;;  %s55_s25 = sadd.s32 1, %s3761_s20 }
   0x7   : > { %s52_s26 = ssub.s32 %s3765_s21, %s3829_s24  ;;  %p62_p0 = scmp.ne.s32.totalorder %s3761_s20, %s3757_s19 }
   0x8   : > { %p53_p1 = scmp.eq.s32.totalorder %s52_s26, 0  ;;  %p63_p2 = scmp.eq.s32.totalorder %s3765_s21, 0 }
   0x9   : > { %p68_p3 = scmp.ne.s32.totalorder %s3757_s19, %s3753_s18  ;;  %p69_p4 = scmp.eq.s32.totalorder %s3825_s22, 0 }
   0xa   : > { %s3841_s27 = scalar_select %p53_p1, %s3761_s20, %s55_s25  }
   0xb   : > { %p64_p5 = por %p63_p2, %p62_p0  ;;  %p3843_p6 = por %p69_p4, %p68_p3 }
   0xc   : > { %p134_p7 = scmp.eq.s32.totalorder %s3825_s22, 2  ;;  %p140_p8 = scmp.eq.s32.totalorder %s2669_s23, 2 }
   0xd   : > { %p3411_p9 = scmp.lt.s32.totalorder %s3765_s21, 3  ;;  %s202_s6 = sand.u32 1, %s3761_s20  }
   0xe   : > { %p3849_p10 = por %p134_p7, %p62_p0  ;;  %p3853_p11 = por %p140_p8, %p68_p3 }
   0xf   : > { %s3379_s7 = smul.u32 3072, %s3765_s21  ;;  %p3864_p12 = pnand %p3411_p9, %p64_p5 }
  0x10   : > { %s5285_s29 = scalar_select %p3849_p10, 1, 0 }
  0x11   : > { %s5286_s30 = scalar_select %p3853_p11, 1, 0 }
  0x12   : > { %s3378_s8 = smul.u32 192, %s202_s6  ;;  %s3862_s11 = scalar_lea.hbm %s5235_s1, %s3379_s7 }
  0x13   : > { %s3870_s15 = scalar_lea.sflag [#allocation3], %s202_s6  ;;  %s3669_s16 = scalar_lea.hbm %s3862_s11, 3072 }
  0x14   : > { %s206_s13 = scalar_lea.vmem [#allocation2], %s3378_s8  ;;  %p3670_p13 = scmp.ne.s32.totalorder %s3862_s11, %s3669_s16 }
  0x15   : > { %s214_s14 = sshll.u32 %s206_s13, 4  ;;  %p3671_p0 = pneg %p3864_p12  ;;  %s3868_s14 = int_to_ptr.vmem [resolvable:$true] %s214_s14 }
  0x16   : > { %s3674_s25 = scalar_lea.hbm %s5235_s1, 9216  ;;  %p3675_p3 = scmp.lt.u32.totalorder %s3862_s11, %s5235_s1 }
  0x17   : > { %p3672_p1 = pnand %p3671_p0, %p3670_p13  ;;  %p3676_p4 = scmp.lt.u32.totalorder %s3674_s25, %s3669_s16 }
  0x18   : > { %p3678_p7 = scmp.lt.u32.totalorder %s3669_s16, %s3862_s11 }
  0x19   : > { %p3673_p2 = pneg %p3672_p1  ;;  %p3677_p5 = por %p3676_p4, %p3675_p3 }
  0x1b   : > { %p3679_p8 = por %p3678_p7, %p3677_p5 }
  0x1d   : > { %p3680_p9 = pnand %p3679_p8, %p3673_p2 }
  0x1f   : > { %3683 = shalt.err (!%p3680_p9)
}
  0x20   : > { %s3684_s6 = scalar_lea.vmem %s3868_s14, 3072  ;;  %s3767_s8 = smov [#allocation2]  }
  0x21   : > { %p3685_p13 = scmp.ne.s32.totalorder %s3868_s14, %s3684_s6  ;;  %s3689_s9 = sshll.u32 %s3767_s8, 4  ;;  %s3690_s9 = int_to_ptr.vmem [resolvable:$false] %s3689_s9 }
  0x22   : > { %s3691_s10 = scalar_lea.vmem %s3690_s9, 6144  ;;  %p3692_p10 = scmp.lt.s32.totalorder %s3868_s14, %s3690_s9 }
  0x23   : > { %p3687_p1 = pnand %p3685_p13, %p3671_p0  ;;  %p3693_p3 = scmp.lt.s32.totalorder %s3691_s10, %s3684_s6 }
  0x25   : > { %p3688_p11 = pneg %p3687_p1  ;;  %p3694_p4 = por %p3693_p3, %p3692_p10 }
  0x27   : > { %p3695_p5 = pnand %p3694_p4, %p3688_p11 }
  0x29   : > { %3698 = shalt.err (!%p3695_p5)
}
  0x2a   : > { %s3768_s13 = smov 64   ;;  %s3769_s16 = smov 4  }
  0x2b   : > { %3406 = dma.hbm_to_vmem [thread:$0]  (!%p3864_p12), %s3862_s11, 3072, %s3868_s14, %s3870_s15, %s3768_s13, %s3768_s13, %s3769_s16  }
  0x2c   : > { %p2675_p0 = scmp.ge.s32.totalorder %s3765_s21, 1  ;;  %p222_p2 = scmp.lt.s32.totalorder %s3765_s21, 4 }
  0x2e   : > { %p223_p7 = pnand %p2675_p0, %p222_p2 }
  0x30   : > { %226 = sbr.rel (%p223_p7) target bundleno = 1066 (0x42a), region = 36 }
  0x37   : > { %s3901_s17 = sand.u32 1, %s3757_s19  }
  0x38   : > { %s3380_s23 = smul.u32 192, %s3901_s17  ;;  %s229_s25 = scalar_lea.sflag [#allocation3], %s3901_s17 }
  0x3a   : > { %s3907_s26 = scalar_lea.vmem [#allocation2], %s3380_s23 }
  0x3b   : > { %3744 = dma.done.wait (%p3843_p6), %s229_s25, 3072  }
  0x3c   : > { %3746 = vsyncadd (%p3843_p6), %s229_s25, 4294964224  ;;  %s2676_s11 = sshll.u32 %s3825_s22, 1  ;;  %v3450_v0 = vld [vmem:[%s5237_s3] sm:$0xff]   ;;  %v3451_v1 = vld [vmem:[%s5237_s3 + $0x8] sm:$0xff]   ;;  %vm392_vm0 = vcmask 261120   ;;  %s4278_s6 = scalar_lea.vmem [#allocation5], %s3380_s23 }
  0x3d   : > { %p270_p10 = scmp.lt.s32.totalorder %s2676_s11, 5  ;;  %3274 = vmatprep.subr.bf16.mxu0 %v3450_v0  ;;  %3374 = vmatprep.subr.bf16.mxu1 %v3450_v0  ;;  %v3955_v14 = vld [vmem:[%s5236_s2] sm:$0xff]   ;;  %v3178_v22 = vld [vmem:[%s3907_s26 + $0x8] sm:$0xff]   ;;  %v3179_v33 = vld [vmem:[%s3907_s26 + $0x10] sm:$0xff]   ;;  %vm1473_vm1 = vcmask 1040384   ;;  %vm1497_vm2 = vcmask 7168  }
  0x3e   : > { %3275 = vmatpush3.bf16.msra.mxu0 %v3450_v0  ;;  %3376 = vmatpush3.bf16.msra.mxu1 %v3450_v0  ;;  %v2963_v15 = vld [vmem:[%s3907_s26] sm:$0xff]   ;;  %v3979_v24 = vunpack.c.l.bf16 %v3178_v22  ;;  %v3201_v25 = vld [vmem:[%s3907_s26 + $0x68] sm:$0xff]   ;;  %v3993_v30 = vunpack.c.h.bf16 %v3178_v22  ;;  %v4004_v34 = vunpack.c.l.bf16 %v3179_v33  ;;  %v4011_v37 = vld [vmem:[%s3907_s26 + $0x70] sm:$0xff]   ;;  %v4025_v41 = vunpack.c.h.bf16 %v3179_v33  ;;  %s3398_s23 = smul.u32 3072, %s3825_s22  ;;  %s2542_s28 = scalar_lea.sflag [#allocation4], %s3901_s17 }
  0x3f   : > { %s5385_s11 = smov (!%p270_p10, %s2676_s11), 5  ;;  %3276 = vmatprep.subr.bf16.mxu0 %v3451_v1  ;;  %3375 = vmatprep.subr.bf16.mxu1 %v3451_v1  ;;  %v3962_v16 = vunpack.c.l.bf16 %v2963_v15  ;;  %v3965_v17 = vunpack.c.h.bf16 %v2963_v15  ;;  %v3200_v18 = vld [vmem:[%s3907_s26 + $0x60] sm:$0xff]   ;;  %v3983_v26 = vunpack.c.h.bf16 %v3201_v25  ;;  %v3986_v27 = vunpack.c.l.bf16 %v3201_v25  ;;  %v3185_v35 = vld [vmem:[%s3907_s26 + $0x28] sm:$0xff]   ;;  %v4045_v50 = vld [vmem:[%s3907_s26 + $0x18] sm:$0xff]   ;;  %p5378_p11 = scmp.ne.s32.totalorder %s5285_s29, 0 }
  0x40   : > { %s3381_s12 = smul.u32 48, %s5385_s11  ;;  %v3968_v19 = vunpack.c.l.bf16 %v3200_v18  ;;  %v3971_v20 = vunpack.c.h.bf16 %v3200_v18  ;;  %v3184_v21 = vld [vmem:[%s3907_s26 + $0x20] sm:$0xff]   ;;  %v4008_v36 = vunpack.c.l.bf16 %v3185_v35  ;;  %v4015_v38 = vunpack.c.l.bf16 %v4011_v37  ;;  %v4018_v39 = vld [vmem:[%s3907_s26 + $0x88] sm:$0xff]   ;;  %v4054_v60 = vld [vmem:[%s3907_s26 + $0x30] sm:$0xff]   ;;  %s5184_s10 = scalar_lea.hbm %s5238_s4, %s3398_s23 }
  0x41   : > { %821 = vmax.xlane.f32.xlu1 %v3962_v16  ;;  %v3976_v23 = vunpack.c.h.bf16 %v3184_v21  ;;  %5289 = vst [vmem:[#allocation9_spill] sm:$0xff] %v3983_v26  ;;  %v3208_v28 = vld [vmem:[%s3907_s26 + $0x80] sm:$0xff]   ;;  %v3997_v31 = vunpack.c.l.bf16 %v3184_v21  ;;  %v4022_v40 = vunpack.c.l.bf16 %v4018_v39  ;;  %v4028_v42 = vunpack.c.h.bf16 %v3185_v35  ;;  %v3467_v15 = vld [vmem:[%s5236_s2 + $0x18] sm:$0xff]   ;;  %v4094_v18 = vld [vmem:[%s3907_s26 + $0x90] sm:$0xff]   ;;  %s3770_s16 = smov [#allocation5]  }
  0x42   : > { %s3923_s8 = scalar_lea.vmem %s5234_s0, %s3381_s12  ;;  %3277 = vmatpush3.bf16.msra.mxu0 %v3451_v1  ;;  %3377 = vmatpush3.bf16.msra.mxu1 %v3451_v1  ;;  %5288 = vst [vmem:[#allocation8_spill] sm:$0xff] %v3971_v20  ;;  %v3990_v29 = vunpack.c.l.bf16 %v3208_v28  ;;  %v4000_v32 = vunpack.c.h.bf16 %v3208_v28  ;;  %5292 = vst [vmem:[#allocation12_spill] sm:$0xff] %v4015_v38  ;;  %v4031_v43 = vld [vmem:[%s3907_s26 + $0x40] sm:$0xff]   ;;  %v4049_v57 = vunpack.c.l.bf16 %v4045_v50  ;;  %v4060_v0 = vunpack.c.l.bf16 %v4054_v60  ;;  %v4102_v33 = vld [vmem:[%s3907_s26 + $0xa8] sm:$0xff]   ;;  %s3703_s25 = sshll.u32 %s3770_s16, 4  ;;  %s3704_s25 = int_to_ptr.vmem [resolvable:$false] %s3703_s25 }
  0x43   : > { %v3452_v2 = vld [vmem:[%s3923_s8] sm:$0xff]   ;;  %v3453_v3 = vld [vmem:[%s3923_s8 + $0x8] sm:$0xff]   ;;  %v3454_v4 = vld [vmem:[%s3923_s8 + $0x10] sm:$0xff]   ;;  %1778 = vmax.xlane.f32.xlu0 %v3968_v19  ;;  %v4035_v44 = vunpack.c.l.bf16 %v4031_v43  ;;  %v4098_v28 = vunpack.c.l.bf16 %v4094_v18  ;;  %s3705_s22 = scalar_lea.vmem %s3704_s25, 6144 }
  0x44   : > { %3278 = vmatprep.mubr.msk.bf16.mxu0 %vm392_vm0, %v3452_v2  ;;  %v3460_v5 = vld [vmem:[%s3923_s8 + $0x50] sm:$0xff]   ;;  %v3461_v6 = vld [vmem:[%s3923_s8 + $0x58] sm:$0xff]   ;;  %v3456_v8 = vld [vmem:[%s3923_s8 + $0x20] sm:$0xff]   ;;  %5290 = vst [vmem:[#allocation10_spill] sm:$0xff] %v3990_v29 }
  0x45   : > { %3279 = vmatmul.mubr.msk.bf16.vlgmr.msra.gmra.mrb[0].mxu0 %vm392_vm0, %v3453_v3  ;;  %v3455_v7 = vld [vmem:[%s3923_s8 + $0x18] sm:$0xff]   ;;  %3298 = vmatprep.mubr.msk.bf16.mxu1 %vm392_vm0, %v3460_v5  ;;  %v3457_v9 = vld [vmem:[%s3923_s8 + $0x28] sm:$0xff]   ;;  %v3458_v10 = vld [vmem:[%s3923_s8 + $0x30] sm:$0xff]   ;;  %5291 = vst [vmem:[#allocation11_spill] sm:$0xff] %v4000_v32 }
  0x46   : > { %3282 = vmatprep.mubr.msk.bf16.mxu0 %vm392_vm0, %v3454_v4  ;;  %3299 = vmatmul.mubr.msk.bf16.vlgmr.msra.gmra.mrb[0].mxu1 %vm392_vm0, %v3461_v6  ;;  %v3459_v11 = vld [vmem:[%s3923_s8 + $0x38] sm:$0xff]   ;;  %v3462_v12 = vld [vmem:[%s3923_s8 + $0x40] sm:$0xff]   ;;  %v3463_v13 = vld [vmem:[%s3923_s8 + $0x48] sm:$0xff]   ;;  %5295 = vst [vmem:[#allocation15_spill] sm:$0xff] %v4098_v28 }
  0x47   : > { %3306 = vmatprep.mubr.msk.bf16.mxu1 %vm392_vm0, %v3955_v14  ;;  %823 = vmax.xlane.f32.xlu1 %v3965_v17  ;;  %v4038_v45 = vld [vmem:[%s3907_s26 + $0xa0] sm:$0xff]   ;;  %v4065_v2 = vld [vmem:[%s5236_s2 + $0x8] sm:$0xff]   ;;  %v4073_v6 = vld [vmem:[%s5236_s2 + $0x10] sm:$0xff]  }
  0x48   : > { %1114 = vmax.xlane.f32.xlu0 %v3976_v23  ;;  %v4042_v48 = vunpack.c.h.bf16 %v4038_v45  ;;  %v4068_v3 = vld [vmem:[%s3907_s26 + $0x48] sm:$0xff]  }
  0x4a   : > { %5293 = vst [vmem:[#allocation13_spill] sm:$0xff] %v4042_v48 }
  0x4b   : > { %1780 = vmax.xlane.f32.xlu1 %v3971_v20 }
  0x4c   : > { %1784 = vmax.xlane.f32.xlu0 %v3983_v26 }
  0x4d   : > { %3283 = vmatmul.mubr.msk.bf16.gmra.mrb[4].mxu0 %vm392_vm0, %v3455_v7 }
  0x4e   : > { %3286 = vmatprep.mubr.msk.bf16.mxu0 %vm392_vm0, %v3456_v8  ;;  %v4077_v8 = vunpack.c.l.bf16 %v4068_v3 }
  0x4f   : > { %825 = vmax.xlane.f32.xlu1 %v3979_v24 }
  0x50   : > { %2069 = vmax.xlane.f32.xlu0 %v3990_v29 }
  0x53   : > { %1782 = vmax.xlane.f32.xlu1 %v3986_v27 }
  0x55   : > { %3287 = vmatmul.mubr.msk.bf16.gmra.mrb[8].mxu0 %vm392_vm0, %v3457_v9  ;;  %v4082_v9 = vld [vmem:[%s3907_s26 + $0x78] sm:$0xff]  }
  0x56   : > { %3290 = vmatprep.mubr.msk.bf16.mxu0 %vm392_vm0, %v3458_v10 }
  0x57   : > { %827 = vmax.xlane.f32.xlu1 %v3993_v30 }
  0x5b   : > { %1112 = vmax.xlane.f32.xlu1 %v3997_v31 }
  0x5d   : > { %3291 = vmatmul.mubr.msk.bf16.gmra.mrb[12].mxu0 %vm392_vm0, %v3459_v11 }
  0x5e   : > { %3294 = vmatprep.mubr.msk.bf16.mxu0 %vm392_vm0, %v3462_v12  ;;  %v4088_v12 = vunpack.c.l.bf16 %v4082_v9 }
  0x5f   : > { %2071 = vmax.xlane.f32.xlu1 %v4000_v32 }
  0x60   : > { %5294 = vst [vmem:[#allocation14_spill] sm:$0xff] %v4088_v12 }
  0x63   : > { %829 = vmax.xlane.f32.xlu1 %v4004_v34 }
  0x65   : > { %3295 = vmatmul.mubr.msk.bf16.gmra.mrb[16].mxu0 %vm392_vm0, %v3463_v13 }
  0x66   : > { %3342 = vmatprep.mubr.msk.bf16.mxu0 %vm392_vm0, %v3955_v14 }
  0x67   : > { %1116 = vmax.xlane.f32.xlu1 %v4008_v36 }
  0x6b   : > { %1786 = vmax.xlane.f32.xlu1 %v4015_v38 }
  0x6f   : > { %2073 = vmax.xlane.f32.xlu1 %v4022_v40 }
  0x73   : > { %831 = vmax.xlane.f32.xlu1 %v4025_v41 }
  0x77   : > { %1118 = vmax.xlane.f32.xlu1 %v4028_v42 }
  0x7b   : > { %1403 = vmax.xlane.f32.xlu1 %v4035_v44 }
  0x7f   : > { %2362 = vmax.xlane.f32.xlu1 %v4042_v48 }
  0x83   : > { %833 = vmax.xlane.f32.xlu1 %v4049_v57 }
  0x87   : > { %1120 = vmax.xlane.f32.xlu1 %v4060_v0 }
  0x8b   : > { %1407 = vmax.xlane.f32.xlu1 %v4077_v8 }
  0x8f   : > { %1790 = vmax.xlane.f32.xlu1 %v4088_v12 }
  0x93   : > { %2077 = vmax.xlane.f32.xlu1 %v4098_v28 }
 0x118   : > { %v3280_v46 = vpop.f32.mrb[0].mxu0 }
 0x119   : > { %v463_v47 = vpop.f32.mrb[1].mxu0  ;;  %v3300_v53 = vpop.f32.mrb[0].mxu1 }
 0x11a   : > { %v3281_v49 = vpop.f32.mrb[2].mxu0  ;;  %v543_v55 = vpop.f32.mrb[1].mxu1 }
 0x11b   : > { %v559_v51 = vpack.c.bf16 %v3281_v49, %v3280_v46  ;;  %v466_v52 = vpop.f32.mrb[3].mxu0  ;;  %v3301_v56 = vpop.f32.mrb[2].mxu1 }
 0x11c   : > { %v558_v54 = vpack.c.bf16 %v466_v52, %v463_v47  ;;  %v4051_v58 = vpack.c.bf16 %v3301_v56, %v3300_v53  ;;  %v546_v59 = vpop.f32.mrb[3].mxu1  ;;  %v4108_v47 = vunpack.c.l.bf16 %v4102_v33 }
 0x11d   : > { %v4056_v61 = vpack.c.bf16 %v546_v59, %v543_v55 }
 0x11e   : > { %3302 = vmatprep.subr.bf16.mxu1 %v558_v54  ;;  %5296 = vst [vmem:[#allocation16_spill] sm:$0xff] %v4108_v47  ;;  %2364 = vmax.xlane.f32.xlu1 %v4108_v47 }
 0x11f   : > { %3303 = vmatpush3.bf16.msra.mxu1 %v558_v54 }
 0x120   : > { %v3284_v62 = vpop.f32.mrb[4].mxu0  ;;  %3304 = vmatprep.subr.bf16.mxu1 %v559_v51 }
 0x121   : > { %v479_v63 = vpop.f32.mrb[5].mxu0 }
 0x122   : > { %v3285_v1 = vpop.f32.mrb[6].mxu0 }
 0x123   : > { %v561_v4 = vpack.c.bf16 %v3285_v1, %v3284_v62  ;;  %v482_v5 = vpop.f32.mrb[7].mxu0  ;;  %3305 = vmatpush3.bf16.msra.mxu1 %v559_v51  ;;  %v4158_v1 = vunpack.c.h.bf16 %v4011_v37  ;;  %v4174_v37 = vunpack.c.l.bf16 %v4038_v45  ;;  %v3194_v45 = vld [vmem:[%s3907_s26 + $0x50] sm:$0xff]  }
 0x124   : > { %v560_v7 = vpack.c.bf16 %v482_v5, %v479_v63  ;;  %v4190_v5 = vunpack.c.h.bf16 %v3194_v45 }
 0x125   : > { %5298 = vst [vmem:[#allocation18_spill] sm:$0xff] %v4158_v1  ;;  %5301 = vst [vmem:[#allocation21_spill] sm:$0xff] %v4174_v37 }
 0x126   : > { %3307 = vmatmul.mubr.msk.bf16.vlgmr.msra.gmra.mrb[4].mxu1 %vm392_vm0, %v4065_v2  ;;  %3314 = vmatprep.subr.bf16.mxu1 %v560_v7 }
 0x127   : > { %3315 = vmatpush3.bf16.msra.mxu1 %v560_v7  ;;  %3310 = vmatprep.mubr.msk.bf16.mxu1 %vm392_vm0, %v4073_v6  ;;  %v4197_v7 = vunpack.c.l.bf16 %v3194_v45 }
 0x128   : > { %v3288_v10 = vpop.f32.mrb[8].mxu0  ;;  %3316 = vmatprep.subr.bf16.mxu1 %v561_v4 }
 0x129   : > { %v495_v11 = vpop.f32.mrb[9].mxu0 }
 0x12a   : > { %v3289_v13 = vpop.f32.mrb[10].mxu0 }
 0x12b   : > { %v563_v21 = vpack.c.bf16 %v3289_v13, %v3288_v10  ;;  %v498_v22 = vpop.f32.mrb[11].mxu0  ;;  %3317 = vmatpush3.bf16.msra.mxu1 %v561_v4  ;;  %v4187_v4 = vunpack.c.h.bf16 %v4102_v33 }
 0x12c   : > { %v562_v25 = vpack.c.bf16 %v498_v22, %v495_v11  ;;  %v3218_v11 = vld [vmem:[%s3907_s26 + $0xb0] sm:$0xff]  }
 0x12d   : > { %5303 = vst [vmem:[#allocation23_spill] sm:$0xff] %v4187_v4  ;;  %v4205_v13 = vunpack.c.l.bf16 %v3218_v11 }
 0x12e   : > { %3311 = vmatmul.mubr.msk.bf16.gmra.mrb[8].mxu1 %vm392_vm0, %v3467_v15  ;;  %3326 = vmatprep.subr.bf16.mxu1 %v562_v25 }
 0x12f   : > { %3318 = vmatprep.mubr.msk.bf16.mxu1 %vm392_vm0, %v3955_v14  ;;  %5304 = vst [vmem:[#allocation24_spill] sm:$0xff] %v4205_v13 }
 0x130   : > { %v3292_v35 = vpop.f32.mrb[12].mxu0 }
 0x131   : > { %v511_v46 = vpop.f32.mrb[13].mxu0 }
 0x132   : > { %v3293_v49 = vpop.f32.mrb[14].mxu0 }
 0x133   : > { %v565_v51 = vpack.c.bf16 %v3293_v49, %v3292_v35  ;;  %v514_v52 = vpop.f32.mrb[15].mxu0 }
 0x134   : > { %v564_v53 = vpack.c.bf16 %v514_v52, %v511_v46 }
 0x136   : > { %3319 = vmatmul.mubr.msk.bf16.vlgmr.msra.gmra.mrb[12].mxu1 %vm392_vm0, %v4065_v2  ;;  %3338 = vmatprep.subr.bf16.mxu0 %v564_v53 }
 0x137   : > { %3327 = vmatpush3.bf16.msra.mxu1 %v562_v25  ;;  %3339 = vmatpush3.bf16.msra.mxu0 %v564_v53  ;;  %v4211_v25 = vpop.xlane.xlu1 %821 }
 0x138   : > { %3328 = vmatprep.subr.bf16.mxu1 %v563_v21  ;;  %3340 = vmatprep.subr.bf16.mxu0 %v565_v51  ;;  %v3296_v54 = vpop.f32.mrb[16].mxu0  ;;  %5306 = vst [vmem:[#allocation26_spill] sm:$0xff] %v4211_v25 }
 0x139   : > { %3322 = vmatprep.mubr.msk.bf16.mxu1 %vm392_vm0, %v4073_v6  ;;  %v527_v55 = vpop.f32.mrb[17].mxu0 }
 0x13a   : > { %v3297_v56 = vpop.f32.mrb[18].mxu0 }
 0x13b   : > { %3329 = vmatpush3.bf16.msra.mxu1 %v563_v21  ;;  %3341 = vmatpush3.bf16.msra.mxu0 %v565_v51  ;;  %v567_v59 = vpack.c.bf16 %v3297_v56, %v3296_v54  ;;  %v530_v62 = vpop.f32.mrb[19].mxu0  ;;  %v4213_v52 = vpop.xlane.xlu1 %823  ;;  %v792_v54 = vmax.f32 %v3962_v16, %v4004_v34 }
 0x13c   : > { %3362 = vmatprep.subr.bf16.mxu0 %v4056_v61  ;;  %v566_v63 = vpack.c.bf16 %v530_v62, %v527_v55  ;;  %5307 = vst [vmem:[#allocation27_spill] sm:$0xff] %v4213_v52  ;;  %v794_v62 = vmax.f32 %v3979_v24, %v4049_v57 }
 0x13e   : > { %3323 = vmatmul.mubr.msk.bf16.gmra.mrb[16].mxu1 %vm392_vm0, %v3467_v15  ;;  %3343 = vmatmul.mubr.msk.bf16.vlgmr.msra.gmra.mrb[20].mxu0 %vm392_vm0, %v4065_v2 }
 0x13f   : > { %3330 = vmatprep.mubr.msk.bf16.mxu1 %vm392_vm0, %v3955_v14  ;;  %3346 = vmatprep.mubr.msk.bf16.mxu0 %vm392_vm0, %v4073_v6 }
 0x140   : > { %3363 = vmatpush3.bf16.msra.mxu0 %v4056_v61  ;;  %3350 = vmatprep.subr.bf16.mxu1 %v566_v63  ;;  %v4150_v61 = vunpack.c.h.bf16 %v4031_v43  ;;  %v4166_v43 = vunpack.c.h.bf16 %v4018_v39  ;;  %v3187_v39 = vld [vmem:[%s3907_s26 + $0x38] sm:$0xff]  }
 0x141   : > { %3364 = vmatprep.subr.bf16.mxu0 %v4051_v58 }
 0x142   : > { %1405 = vmax.xlane.f32.xlu0 %v4150_v61  ;;  %5299 = vst [vmem:[#allocation19_spill] sm:$0xff] %v4166_v43 }
 0x144   : > { %3365 = vmatpush3.bf16.msra.mxu0 %v4051_v58  ;;  %v4147_v58 = vunpack.c.h.bf16 %v4045_v50  ;;  %v4163_v50 = vunpack.c.h.bf16 %v4068_v3  ;;  %v4182_v3 = vunpack.c.h.bf16 %v3187_v39 }
 0x146   : > { %3331 = vmatmul.mubr.msk.bf16.vlgmr.msra.gmra.mrb[20].mxu1 %vm392_vm0, %v4065_v2  ;;  %3347 = vmatmul.mubr.msk.bf16.gmra.mrb[24].mxu0 %vm392_vm0, %v3467_v15 }
 0x147   : > { %3334 = vmatprep.mubr.msk.bf16.mxu1 %vm392_vm0, %v4073_v6  ;;  %3351 = vmatpush3.bf16.msra.mxu1 %v566_v63  ;;  %v795_v63 = vmax.f32 %v3993_v30, %v4147_v58 }
 0x148   : > { %3366 = vmatprep.mubr.msk.bf16.mxu0 %vm392_vm0, %v3955_v14  ;;  %3352 = vmatprep.subr.bf16.mxu1 %v567_v59 }
 0x149   : > { %835 = vmax.xlane.f32.xlu1 %v4147_v58  ;;  %1788 = vmax.xlane.f32.xlu0 %v4158_v1 }
 0x14b   : > { %3353 = vmatpush3.bf16.msra.mxu1 %v567_v59  ;;  %v793_v59 = vmax.f32 %v3965_v17, %v4025_v41 }
 0x14d   : > { %2075 = vmax.xlane.f32.xlu0 %v4166_v43 }
 0x14e   : > { %3335 = vmatmul.mubr.msk.bf16.gmra.mrb[24].mxu1 %vm392_vm0, %v3467_v15  ;;  %3367 = vmatmul.mubr.msk.bf16.vlgmr.msra.gmra.mrb[28].mxu0 %vm392_vm0, %v4065_v2 }
 0x14f   : > { %3354 = vmatprep.mubr.msk.bf16.mxu1 %vm392_vm0, %v3955_v14  ;;  %3370 = vmatprep.mubr.msk.bf16.mxu0 %vm392_vm0, %v4073_v6  ;;  %v4155_v14 = vunpack.c.h.bf16 %v4054_v60  ;;  %v4171_v60 = vunpack.c.h.bf16 %v4082_v9  ;;  %v3211_v9 = vld [vmem:[%s3907_s26 + $0x98] sm:$0xff]  }
 0x150   : > { %v4201_v10 = vunpack.c.l.bf16 %v3211_v9 }
 0x151   : > { %5297 = vst [vmem:[#allocation17_spill] sm:$0xff] %v4155_v14  ;;  %1122 = vmax.xlane.f32.xlu1 %v4155_v14  ;;  %5300 = vst [vmem:[#allocation20_spill] sm:$0xff] %v4171_v60  ;;  %2360 = vmax.xlane.f32.xlu0 %v4174_v37 }
 0x155   : > { %1409 = vmax.xlane.f32.xlu1 %v4163_v50  ;;  %1126 = vmax.xlane.f32.xlu0 %v4182_v3 }
 0x156   : > { %3355 = vmatmul.mubr.msk.bf16.vlgmr.msra.gmra.mrb[28].mxu1 %vm392_vm0, %v4065_v2  ;;  %3371 = vmatmul.mubr.msk.bf16.gmra.mrb[32].mxu0 %vm392_vm0, %v3467_v15  ;;  %v4179_v2 = vunpack.c.h.bf16 %v4094_v18 }
 0x157   : > { %3358 = vmatprep.mubr.msk.bf16.mxu1 %vm392_vm0, %v4073_v6  ;;  %v4194_v6 = vunpack.c.l.bf16 %v3187_v39 }
 0x158   : > { %5302 = vst [vmem:[#allocation22_spill] sm:$0xff] %v4179_v2 }
 0x159   : > { %1792 = vmax.xlane.f32.xlu1 %v4171_v60  ;;  %1413 = vmax.xlane.f32.xlu0 %v4190_v5 }
 0x15d   : > { %2079 = vmax.xlane.f32.xlu1 %v4179_v2 }
 0x15e   : > { %3359 = vmatmul.mubr.msk.bf16.gmra.mrb[32].mxu1 %vm392_vm0, %v3467_v15  ;;  %v4208_v15 = vunpack.c.h.bf16 %v3211_v9 }
 0x160   : > { %5305 = vst [vmem:[#allocation25_spill] sm:$0xff] %v4208_v15 }
 0x161   : > { %2366 = vmax.xlane.f32.xlu1 %v4187_v4 }
 0x165   : > { %1124 = vmax.xlane.f32.xlu1 %v4194_v6 }
 0x169   : > { %1411 = vmax.xlane.f32.xlu1 %v4197_v7 }
 0x16d   : > { %2081 = vmax.xlane.f32.xlu1 %v4201_v10 }
 0x171   : > { %2368 = vmax.xlane.f32.xlu1 %v4205_v13 }
 0x175   : > { %2083 = vmax.xlane.f32.xlu1 %v4208_v15 }
 0x1f9   : > { %v3308_v18 = vpop.f32.mrb[4].mxu1 }
 0x1fa   : > { %v2715_v21 = vmul.f32 -1.442695, %v3308_v18  ;;  %v636_v22 = vpop.f32.mrb[5].mxu1 }
 0x1fb   : > { %v2713_v33 = vmul.f32 -1.442695, %v636_v22  ;;  %v3309_v35 = vpop.f32.mrb[6].mxu1  ;;  %v4223_v22 = vpop.xlane.xlu1 %1780 }
 0x1fc   : > { %3468 = vpow2.f32 %v2715_v21  ;;  %v2716_v46 = vmul.f32 -1.442695, %v3309_v35  ;;  %v639_v49 = vpop.f32.mrb[7].mxu1  ;;  %5308 = vst [vmem:[#allocation28_spill] sm:$0xff] %v4223_v22  ;;  %v796_v35 = vmax.f32 %v792_v54, %v793_v59 }
 0x1fd   : > { %3470 = vpow2.f32 %v2713_v33  ;;  %v2714_v51 = vmul.f32 -1.442695, %v639_v49  ;;  %v797_v49 = vmax.f32 %v794_v62, %v795_v63 }
 0x1fe   : > { %3472 = vpow2.f32 %v2716_v46 }
 0x1ff   : > { %3474 = vpow2.f32 %v2714_v51  ;;  %v4225_v59 = vpop.xlane.xlu1 %825 }
 0x200   : > { %5309 = vst [vmem:[#allocation29_spill] sm:$0xff] %v4225_v59  ;;  %v1751_v59 = vmax.f32 %v3986_v27, %v4088_v12 }
 0x201   : > { %v3312_v53 = vpop.f32.mrb[8].mxu1 }
 0x202   : > { %v2719_v55 = vmul.f32 -1.442695, %v3312_v53  ;;  %v652_v56 = vpop.f32.mrb[9].mxu1 }
 0x203   : > { %v2717_v39 = vmul.f32 -1.442695, %v652_v56  ;;  %v3313_v45 = vpop.f32.mrb[10].mxu1 }
 0x204   : > { %3476 = vpow2.f32 %v2719_v55  ;;  %v2720_v9 = vmul.f32 -1.442695, %v3313_v45  ;;  %v655_v11 = vpop.f32.mrb[11].mxu1 }
 0x205   : > { %3478 = vpow2.f32 %v2717_v39  ;;  %v2718_v18 = vmul.f32 -1.442695, %v655_v11  ;;  %v798_v11 = vmax.f32 %v796_v35, %v797_v49  ;;  %v1085_v49 = vmax.f32 %v4008_v36, %v4194_v6 }
 0x206   : > { %v3469_v21 = vpop.eup %3468  ;;  %3480 = vpow2.f32 %v2720_v9 }
 0x207   : > { %v3471_v33 = vpop.eup %3470  ;;  %v693_v46 = vadd.f32 1.0, %v3469_v21  ;;  %3482 = vpow2.f32 %v2718_v18  ;;  %v1083_v18 = vmax.f32 %v3997_v31, %v4060_v0 }
 0x208   : > { %v3473_v51 = vpop.eup %3472  ;;  %v691_v53 = vadd.f32 1.0, %v3471_v33 }
 0x209   : > { %v3475_v52 = vpop.eup %3474  ;;  %3484 = vrcp.f32 %v693_v46  ;;  %v694_v56 = vadd.f32 1.0, %v3473_v51  ;;  %v3320_v25 = vpop.f32.mrb[12].mxu1 }
 0x20a   : > { %3486 = vrcp.f32 %v691_v53  ;;  %v692_v55 = vadd.f32 1.0, %v3475_v52  ;;  %v2735_v45 = vmul.f32 -1.442695, %v3320_v25  ;;  %v925_v39 = vpop.f32.mrb[13].mxu1  ;;  %v799_v52 = vrot.slane %v798_v11, 4 }
 0x20b   : > { %3488 = vrcp.f32 %v694_v56  ;;  %v2733_v9 = vmul.f32 -1.442695, %v925_v39  ;;  %v3321_v13 = vpop.f32.mrb[14].mxu1  ;;  %v1084_v25 = vmax.f32 %v3976_v23, %v4155_v14  ;;  %v1749_v53 = vmax.f32 %v3968_v19, %v4015_v38 }
 0x20c   : > { %3490 = vrcp.f32 %v692_v55  ;;  %v2736_v22 = vmul.f32 -1.442695, %v3321_v13  ;;  %v928_v54 = vpop.f32.mrb[15].mxu1  ;;  %v1086_v13 = vmax.f32 %v4028_v42, %v4182_v3  ;;  %v1750_v56 = vmax.f32 %v3971_v20, %v4158_v1 }
 0x20d   : > { %3492 = vpow2.f32 %v2735_v45  ;;  %v2734_v62 = vmul.f32 -1.442695, %v928_v54  ;;  %v4245_v48 = vmax.f32 %v798_v11, %v799_v52  ;;  %v1752_v52 = vmax.f32 %v3983_v26, %v4171_v60 }
 0x20e   : > { %v3477_v63 = vpop.eup %3476  ;;  %3494 = vpow2.f32 %v2733_v9 }
 0x20f   : > { %v3479_v21 = vpop.eup %3478  ;;  %v697_v33 = vadd.f32 1.0, %v3477_v63  ;;  %3496 = vpow2.f32 %v2736_v22 }
 0x210   : > { %v3481_v35 = vpop.eup %3480  ;;  %v695_v46 = vadd.f32 1.0, %v3479_v21  ;;  %3498 = vpow2.f32 %v2734_v62  ;;  %v4239_v62 = vpop.xlane.xlu1 %1782 }
 0x211   : > { %v3483_v51 = vpop.eup %3482  ;;  %3500 = vrcp.f32 %v697_v33  ;;  %v698_v55 = vadd.f32 1.0, %v3481_v35  ;;  %v3324_v45 = vpop.f32.mrb[16].mxu1  ;;  %5310 = vst [vmem:[#allocation30_spill] sm:$0xff] %v4239_v62 }
 0x212   : > { %v3344_v22 = vpop.f32.mrb[20].mxu0  ;;  %3502 = vrcp.f32 %v695_v46  ;;  %v696_v39 = vadd.f32 1.0, %v3483_v51  ;;  %v2739_v9 = vmul.f32 -1.442695, %v3324_v45  ;;  %v941_v63 = vpop.f32.mrb[17].mxu1  ;;  %v1087_v46 = vmax.f32 %v1083_v18, %v1084_v25 }
 0x213   : > { %v2807_v54 = vmul.f32 -1.442695, %v3344_v22  ;;  %v4241_v21 = vpop.eup %3484  ;;  %3504 = vrcp.f32 %v698_v55  ;;  %v2737_v4 = vmul.f32 -1.442695, %v941_v63  ;;  %v1591_v33 = vpop.f32.mrb[21].mxu0  ;;  %v1088_v45 = vmax.f32 %v1085_v49, %v1086_v13 }
 0x214   : > { %v3325_v35 = vpop.f32.mrb[18].mxu1  ;;  %v4247_v37 = vpop.eup %3486  ;;  %3506 = vrcp.f32 %v696_v39  ;;  %v2805_v51 = vmul.f32 -1.442695, %v1591_v33  ;;  %809 = vmax.xlane.f32.xlu0 %v4241_v21  ;;  %v733_v18 = vmul.f32 %v4241_v21, %v3979_v24  ;;  %v4262_v13 = vmax.f32 %v1749_v53, %v1750_v56 }
 0x215   : > { %v3345_v22 = vpop.f32.mrb[22].mxu0  ;;  %v944_v62 = vpop.f32.mrb[19].mxu1  ;;  %3508 = vpow2.f32 %v2739_v9  ;;  %v2740_v55 = vmul.f32 -1.442695, %v3325_v35  ;;  %v731_v33 = vmul.f32 %v4247_v37, %v3962_v16  ;;  %v4269_v60 = vmax.f32 %v1087_v46, %v1088_v45 }
 0x216   : > { %v4250_v47 = vpop.eup %3488  ;;  %v1594_v63 = vpop.f32.mrb[23].mxu0  ;;  %3510 = vpow2.f32 %v2807_v54  ;;  %v4272_v56 = vmax.f32 %v1751_v59, %v1752_v52  ;;  %v2808_v59 = vmul.f32 -1.442695, %v3345_v22 }
 0x217   : > { %v4256_v1 = vpop.eup %3490  ;;  %v734_v25 = vmul.f32 %v4250_v47, %v3993_v30  ;;  %3512 = vpow2.f32 %v2737_v4  ;;  %v4283_v45 = vpop.xlane.xlu1 %827 }
 0x218   : > { %v3493_v49 = vpop.eup %3492  ;;  %v732_v9 = vmul.f32 %v4256_v1, %v3965_v17  ;;  %3514 = vpow2.f32 %v2805_v51  ;;  %805 = vmax.xlane.f32.xlu0 %v4247_v37  ;;  %5311 = vst [vmem:[#allocation31_spill] sm:$0xff] %v4283_v45 }
 0x219   : > { %v3495_v35 = vpop.eup %3494  ;;  %v2986_v11 = vpack.c.bf16 %v734_v25, %v733_v18  ;;  %v982_v24 = vadd.f32 1.0, %v3493_v49  ;;  %3516 = vpow2.f32 %v2740_v55  ;;  %v3332_v16 = vpop.f32.mrb[20].mxu1  ;;  %v2738_v25 = vmul.f32 -1.442695, %v944_v62 }
 0x21a   : > { %v3497_v30 = vpop.eup %3496  ;;  %v2981_v53 = vpack.c.bf16 %v732_v9, %v731_v33  ;;  %v980_v54 = vadd.f32 1.0, %v3495_v35  ;;  %v4274_v39 = vpop.f32.mrb[24].mxu0  ;;  %v3195_v33 = vld [vmem:[%s3907_s26 + $0x58] sm:$0xff]   ;;  %v1090_v35 = vrot.slane %v4269_v60, 4  ;;  %v2771_v18 = vmul.f32 -1.442695, %v3332_v16 }
 0x21b   : > { %v3499_v17 = vpop.eup %3498  ;;  %3181 = vst [vmem:[%s4278_s6 + $0x8] sm:$0xff] %v2986_v11   ;;  %3518 = vrcp.f32 %v982_v24  ;;  %v983_v46 = vadd.f32 1.0, %v3497_v30  ;;  %v1216_v51 = vpop.f32.mrb[21].mxu1  ;;  %v2806_v24 = vmul.f32 -1.442695, %v1594_v63  ;;  %v4313_v4 = vunpack.c.l.bf16 %v3195_v33 }
 0x21c   : > { %v4285_v52 = vpop.eup %3500  ;;  %2982 = vst [vmem:[%s4278_s6] sm:$0xff] %v2981_v53   ;;  %3520 = vrcp.f32 %v980_v54  ;;  %v981_v55 = vadd.f32 1.0, %v3499_v17  ;;  %v3333_v49 = vpop.f32.mrb[22].mxu1  ;;  %811 = vmax.xlane.f32.xlu0 %v4250_v47 }
 0x21d   : > { %v4290_v11 = vpop.f32.mrb[25].mxu0  ;;  %v4293_v9 = vpop.eup %3502  ;;  %v737_v22 = vmul.f32 %v4285_v52, %v4049_v57  ;;  %3522 = vrcp.f32 %v983_v46 }
 0x21e   : > { %v1219_v30 = vpop.f32.mrb[23].mxu1  ;;  %v4299_v53 = vpop.f32.mrb[26].mxu0  ;;  %v735_v62 = vmul.f32 %v4293_v9, %v4004_v34  ;;  %3524 = vrcp.f32 %v981_v55  ;;  %v779_v45 = vmax.f32 %v4247_v37, %v4293_v9  ;;  %v781_v55 = vmax.f32 %v4241_v21, %v4285_v52 }
 0x21f   : > { %v4301_v54 = vpop.eup %3504  ;;  %v4307_v57 = vpop.f32.mrb[27].mxu0  ;;  %3526 = vpow2.f32 %v2808_v59 }
 0x220   : > { %v4309_v46 = vpop.eup %3506  ;;  %v738_v63 = vmul.f32 %v4301_v54, %v4147_v58  ;;  %3528 = vpow2.f32 %v2738_v25  ;;  %807 = vmax.xlane.f32.xlu0 %v4256_v1  ;;  %v4324_v12 = vpop.xlane.xlu1 %1112  ;;  %v782_v37 = vmax.f32 %v4250_v47, %v4301_v54  ;;  %v4338_v47 = vmax.f32 %v4269_v60, %v1090_v35 }
 0x221   : > { %v3509_v38 = vpop.eup %3508  ;;  %v736_v34 = vmul.f32 %v4309_v46, %v4025_v41  ;;  %v780_v16 = vmax.f32 %v4256_v1, %v4309_v46  ;;  %3530 = vpow2.f32 %v2806_v24  ;;  %5312 = vst [vmem:[#allocation32_spill] sm:$0xff] %v4324_v12  ;;  %v4328_v14 = vpop.f32.mrb[24].mxu1  ;;  %v4335_v24 = vunpack.c.h.bf16 %v3195_v33 }
 0x222   : > { %v3511_v17 = vpop.eup %3510  ;;  %v2996_v58 = vpack.c.bf16 %v738_v63, %v737_v22  ;;  %v986_v59 = vadd.f32 1.0, %v3509_v38  ;;  %3532 = vpow2.f32 %v2771_v18  ;;  %v4330_v21 = vpop.f32.mrb[28].mxu0  ;;  %v1376_v60 = vmax.f32 %v4077_v8, %v4313_v4 }
 0x223   : > { %v3513_v41 = vpop.eup %3512  ;;  %v2991_v25 = vpack.c.bf16 %v736_v34, %v735_v62  ;;  %v1648_v20 = vadd.f32 1.0, %v3511_v17  ;;  %v783_v26 = vmax.f32 %v779_v45, %v780_v16  ;;  %v4333_v1 = vpop.f32.mrb[25].mxu1  ;;  %v2769_v62 = vmul.f32 -1.442695, %v1216_v51 }
 0x224   : > { %v3515_v22 = vpop.eup %3514  ;;  %3183 = vst [vmem:[%s4278_s6 + $0x18] sm:$0xff] %v2996_v58   ;;  %3534 = vrcp.f32 %v986_v59  ;;  %v984_v38 = vadd.f32 1.0, %v3513_v41  ;;  %v4341_v17 = vpop.f32.mrb[26].mxu1  ;;  %v784_v45 = vmax.f32 %v781_v55, %v782_v37  ;;  %v2772_v59 = vmul.f32 -1.442695, %v3333_v49  ;;  %817 = vmax.xlane.f32.xlu0 %v4285_v52 }
 0x225   : > { %v3517_v63 = vpop.eup %3516  ;;  %3182 = vst [vmem:[%s4278_s6 + $0x10] sm:$0xff] %v2991_v25   ;;  %3536 = vrcp.f32 %v1648_v20  ;;  %v1646_v18 = vadd.f32 1.0, %v3515_v22  ;;  %v4343_v34 = vpop.f32.mrb[29].mxu0  ;;  %v2770_v35 = vmul.f32 -1.442695, %v1219_v30 }
 0x226   : > { %v4345_v16 = vpop.eup %3518  ;;  %3538 = vrcp.f32 %v984_v38  ;;  %v987_v58 = vadd.f32 1.0, %v3517_v63  ;;  %v4348_v33 = vpop.f32.mrb[27].mxu1  ;;  %v4358_v37 = vmax.f32 %v783_v26, %v784_v45  ;;  %v2811_v49 = vmul.f32 -1.442695, %v4274_v39 }
 0x227   : > { %v4352_v20 = vpop.eup %3520  ;;  %v1023_v51 = vmul.f32 %v4345_v16, %v4008_v36  ;;  %3540 = vrcp.f32 %v1646_v18  ;;  %v4356_v55 = vpop.f32.mrb[30].mxu0  ;;  %v1377_v36 = vmax.f32 %v4163_v50, %v4335_v24  ;;  %v4375_v26 = vmax.f32 %v4262_v13, %v4272_v56 }
 0x228   : > { %v4360_v41 = vpop.eup %3522  ;;  %v1021_v52 = vmul.f32 %v4352_v20, %v3997_v31  ;;  %3542 = vrcp.f32 %v987_v58  ;;  %v4365_v25 = vpop.f32.mrb[31].mxu0  ;;  %v5315_v31 = vrot.slane %v4245_v48, 2  ;;  %v5316_v18 = vmax.f32 %v4000_v32, %v4179_v2  ;;  %813 = vmax.xlane.f32.xlu0 %v4293_v9 }
 0x229   : > { %v4367_v22 = vpop.xlane.xlu1 %2071  ;;  %v4371_v30 = vpop.eup %3524  ;;  %5314 = vst [vmem:[#allocation34_spill] sm:$0xff] %v4375_v26  ;;  %v1024_v38 = vmul.f32 %v4360_v41, %v4028_v42  ;;  %3544 = vpow2.f32 %v2769_v62  ;;  %v5317_v45 = vmax.f32 %v3990_v29, %v4098_v28  ;;  %v5319_v42 = vmax.f32 %v4150_v61, %v4190_v5 }
 0x22a   : > { %5313 = vst [vmem:[#allocation33_spill] sm:$0xff] %v4367_v22  ;;  %v802_v39 = vmax.f32 %v4245_v48, %v5315_v31  ;;  %v3527_v63 = vpop.eup %3526  ;;  %v1022_v13 = vmul.f32 %v4371_v30, %v3976_v23  ;;  %v5320_v56 = vmax.f32 %v4035_v44, %v4197_v7  ;;  %3546 = vpow2.f32 %v2772_v59  ;;  %1098 = vmax.xlane.f32.xlu1 %v4371_v30  ;;  %v4402_v23 = vpop.f32.mrb[32].mxu0 }
 0x22b   : > { %v4388_v58 = vmax.f32 %v5317_v45, %v5316_v18  ;;  %v3529_v48 = vpop.eup %3528  ;;  %v3022_v31 = vpack.c.bf16 %v1024_v38, %v1023_v51  ;;  %v1649_v18 = vadd.f32 1.0, %v3527_v63  ;;  %3548 = vpow2.f32 %v2770_v35  ;;  %v4400_v45 = vpop.f32.mrb[28].mxu1 }
 0x22c   : > { %v1378_v62 = vmax.f32 %v5320_v56, %v5319_v42  ;;  %v1092_v22 = vrot.slane %v4338_v47, 2  ;;  %v3531_v12 = vpop.eup %3530  ;;  %v3017_v2 = vpack.c.bf16 %v1022_v13, %v1021_v52  ;;  %v985_v42 = vadd.f32 1.0, %v3529_v48  ;;  %v4405_v59 = vpop.f32.mrb[29].mxu1  ;;  %819 = vmax.xlane.f32.xlu0 %v4301_v54 }
 0x22d   : > { %5318 = vst [vmem:[#allocation35_spill] sm:$0xff] %v4388_v58  ;;  %3550 = vpow2.f32 %v2811_v49  ;;  %v4407_v56 = vpop.f32.mrb[33].mxu0  ;;  %v1379_v9 = vmax.f32 %v1376_v60, %v1377_v36  ;;  %v3533_v28 = vpop.eup %3532  ;;  %3189 = vst [vmem:[%s4278_s6 + $0x28] sm:$0xff] %v3022_v31   ;;  %v1647_v51 = vadd.f32 1.0, %v3531_v12  ;;  %v2809_v35 = vmul.f32 -1.442695, %v4290_v11 }
 0x22e   : > { %3552 = vrcp.f32 %v1649_v18  ;;  %v4411_v38 = vpop.f32.mrb[30].mxu1  ;;  %v803_v63 = vrot.slane %v802_v39, 1  ;;  %v4413_v32 = vpop.eup %3534  ;;  %3188 = vst [vmem:[%s4278_s6 + $0x20] sm:$0xff] %v3017_v2   ;;  %v1273_v52 = vadd.f32 1.0, %v3533_v28  ;;  %v2812_v49 = vmul.f32 -1.442695, %v4299_v53 }
 0x22f   : > { %3554 = vrcp.f32 %v985_v42  ;;  %v4418_v13 = vpop.f32.mrb[31].mxu1  ;;  %v4420_v60 = vpop.xlane.xlu1 %829  ;;  %v786_v12 = vrot.slane %v4358_v37, 4  ;;  %v2810_v2 = vmul.f32 -1.442695, %v4307_v57  ;;  %v4431_v28 = vmax.f32 %v4338_v47, %v1092_v22 }
 0x230   : > { %5321 = vst [vmem:[#allocation36_spill] sm:$0xff] %v4420_v60  ;;  %v4423_v36 = vpop.eup %3536  ;;  %3556 = vrcp.f32 %v1647_v51  ;;  %v4428_v48 = vpop.f32.mrb[34].mxu0  ;;  %v2775_v54 = vmul.f32 -1.442695, %v4328_v14  ;;  %v1072_v18 = vmax.f32 %v4345_v16, %v4413_v32  ;;  %v4440_v42 = vmax.f32 %v1378_v62, %v1379_v9  ;;  %815 = vmax.xlane.f32.xlu0 %v4309_v46 }
 0x231   : > { %v4433_v53 = vpop.eup %3538  ;;  %3558 = vrcp.f32 %v1273_v52  ;;  %v4436_v31 = vpop.f32.mrb[35].mxu0  ;;  %v1027_v57 = vmul.f32 %v4413_v32, %v4194_v6  ;;  %v2773_v47 = vmul.f32 -1.442695, %v4333_v1  ;;  %v2043_v22 = vmax.f32 %v4166_v43, %v4208_v15 }
 0x232   : > { %5322 = vst [vmem:[#allocation37_spill] sm:$0xff] %v4436_v31  ;;  %v4442_v51 = vpop.eup %3540  ;;  %3560 = vpow2.f32 %v2809_v35  ;;  %v787_v14 = vmax.f32 %v4358_v37, %v786_v12  ;;  %v4453_v62 = vmax.f32 %v802_v39, %v803_v63  ;;  %v1070_v9 = vmax.f32 %v4352_v20, %v4433_v53  ;;  %v4459_v1 = vpop.f32.mrb[32].mxu1 }
 0x233   : > { %v4449_v52 = vpop.eup %3542  ;;  %3562 = vpow2.f32 %v2812_v49  ;;  %v1094_v49 = vrot.slane %v4431_v28, 1  ;;  %v2879_v37 = vmul.f32 -1.442695, %v4330_v21  ;;  %v4465_v39 = vpop.f32.mrb[33].mxu1  ;;  %v1381_v12 = vrot.slane %v4440_v42, 4 }
 0x234   : > { %v3545_v11 = vpop.eup %3544  ;;  %v1028_v6 = vmul.f32 %v4449_v52, %v4182_v3  ;;  %3564 = vpow2.f32 %v2810_v2  ;;  %v1073_v35 = vmax.f32 %v4360_v41, %v4449_v52  ;;  %v4467_v63 = vpop.xlane.xlu1 %1116  ;;  %v2776_v43 = vmul.f32 -1.442695, %v4341_v17  ;;  %1100 = vmax.xlane.f32.xlu0 %v4345_v16 }
 0x235   : > { %v3547_v46 = vpop.eup %3546  ;;  %v1271_v60 = vadd.f32 1.0, %v3545_v11  ;;  %3566 = vpow2.f32 %v2775_v54  ;;  %5323 = vst [vmem:[#allocation38_spill] sm:$0xff] %v4467_v63  ;;  %v4471_v29 = vpop.f32.mrb[34].mxu1  ;;  %v1689_v11 = vmul.f32 %v4423_v36, %v3986_v27  ;;  %v788_v63 = vrot.slane %v787_v14, 2 }
 0x236   : > { %v3549_v3 = vpop.eup %3548  ;;  %v3032_v2 = vpack.c.bf16 %v1028_v6, %v1027_v57  ;;  %v1274_v15 = vadd.f32 1.0, %v3547_v46  ;;  %3568 = vpow2.f32 %v2773_v47  ;;  %v4475_v54 = vpop.f32.mrb[35].mxu1  ;;  %v1025_v57 = vmul.f32 %v4433_v53, %v4060_v0  ;;  %v5325_v0 = vld [vmem:[#allocation17_spill] sm:$0xff] }
 0x237   : > { %v3551_v31 = vpop.eup %3550  ;;  %3570 = vrcp.f32 %v1271_v60  ;;  %v1272_v21 = vadd.f32 1.0, %v3549_v3  ;;  %v1075_v47 = vmax.f32 %v1072_v18, %v1073_v35  ;;  %v1687_v27 = vmul.f32 %v4442_v51, %v3968_v19  ;;  %v5324_v60 = vld [vmem:[#allocation9_spill] sm:$0xff] }
 0x238   : > { %v4478_v58 = vpop.eup %3552  ;;  %3191 = vst [vmem:[%s4278_s6 + $0x38] sm:$0xff] %v3032_v2   ;;  %3572 = vrcp.f32 %v1274_v15  ;;  %v1652_v17 = vadd.f32 1.0, %v3551_v31  ;;  %v2774_v16 = vmul.f32 -1.442695, %v4348_v33  ;;  %v2877_v31 = vmul.f32 -1.442695, %v4343_v34  ;;  %1096 = vmax.xlane.f32.xlu0 %v4352_v20 }
 0x239   : > { %v4483_v6 = vpop.eup %3554  ;;  %v1690_v46 = vmul.f32 %v4478_v58, %v5324_v60  ;;  %3574 = vrcp.f32 %v1272_v21  ;;  %1768 = vmax.xlane.f32.xlu1 %v4478_v58  ;;  %v5326_v2 = vld [vmem:[#allocation8_spill] sm:$0xff]  ;;  %v4503_v21 = vpop.xlane.xlu1 %1786  ;;  %v789_v60 = vmax.f32 %v787_v14, %v788_v63  ;;  %v5327_v34 = vmax.f32 %v4022_v40, %v4201_v10 }
 0x23a   : > { %v4491_v3 = vpop.eup %3556  ;;  %v1026_v15 = vmul.f32 %v4483_v6, %v5325_v0  ;;  %3576 = vrcp.f32 %v1652_v17  ;;  %v1071_v19 = vmax.f32 %v4371_v30, %v4483_v6  ;;  %v4514_v20 = vmul.f32 %v4453_v62, %v4453_v62 }
 0x23b   : > { %v4498_v18 = vpop.eup %3558  ;;  %v3094_v35 = vpack.c.bf16 %v1690_v46, %v1689_v11  ;;  %v1688_v33 = vmul.f32 %v4491_v3, %v5326_v2  ;;  %3578 = vpow2.f32 %v2776_v43  ;;  %v4508_v26 = vmax.f32 %v5327_v34, %v2043_v22 }
 0x23c   : > { %v3561_v17 = vpop.eup %3560  ;;  %v3027_v0 = vpack.c.bf16 %v1026_v15, %v1025_v57  ;;  %3580 = vpow2.f32 %v2879_v37  ;;  %v1074_v30 = vmax.f32 %v1070_v9, %v1071_v19  ;;  %v4518_v37 = vmax.f32 %v4431_v28, %v1094_v49  ;;  %1102 = vmax.xlane.f32.xlu0 %v4360_v41 }
 0x23d   : > { %v3563_v11 = vpop.eup %3562  ;;  %3205 = vst [vmem:[%s4278_s6 + $0x68] sm:$0xff] %v3094_v35   ;;  %v3089_v46 = vpack.c.bf16 %v1688_v33, %v1687_v27  ;;  %v1650_v43 = vadd.f32 1.0, %v3561_v17  ;;  %3582 = vpow2.f32 %v2774_v16  ;;  %1764 = vmax.xlane.f32.xlu1 %v4491_v3  ;;  %v790_v27 = vrot.slane %v789_v60, 1  ;;  %v4531_v41 = vpop.xlane.xlu1 %2073 }
 0x23e   : > { %v3565_v14 = vpop.eup %3564  ;;  %3190 = vst [vmem:[%s4278_s6 + $0x30] sm:$0xff] %v3027_v0   ;;  %v1653_v63 = vadd.f32 1.0, %v3563_v11  ;;  %3584 = vpow2.f32 %v2877_v31  ;;  %v1076_v22 = vmax.f32 %v1074_v30, %v1075_v47  ;;  %v4523_v16 = vmax.f32 %v4440_v42, %v1381_v12 }
 0x23f   : > { %v3567_v9 = vpop.eup %3566  ;;  %3204 = vst [vmem:[%s4278_s6 + $0x60] sm:$0xff] %v3089_v46   ;;  %3586 = vrcp.f32 %v1650_v43  ;;  %v1651_v57 = vadd.f32 1.0, %v3565_v14  ;;  %v2880_v35 = vmul.f32 -1.442695, %v4356_v55  ;;  %v1314_v28 = vmul.f32 %v4498_v18, %v4077_v8 }
 0x240   : > { %v3569_v15 = vpop.eup %3568  ;;  %3588 = vrcp.f32 %v1653_v63  ;;  %v1277_v19 = vadd.f32 1.0, %v3567_v9  ;;  %v1077_v31 = vrot.slane %v1076_v22, 4  ;;  %v2878_v2 = vmul.f32 -1.442695, %v4365_v25  ;;  %1766 = vmax.xlane.f32.xlu0 %v4423_v36 }
 0x241   : > { %v4526_v47 = vpop.eup %3570  ;;  %3590 = vrcp.f32 %v1651_v57  ;;  %v1275_v49 = vadd.f32 1.0, %v3569_v15  ;;  %v2843_v55 = vmul.f32 -1.442695, %v4400_v45  ;;  %v2841_v0 = vmul.f32 -1.442695, %v4405_v59  ;;  %v4558_v9 = vpop.xlane.xlu1 %831 }
 0x242   : > { %v4533_v33 = vpop.eup %3572  ;;  %v1312_v42 = vmul.f32 %v4526_v47, %v4035_v44  ;;  %3592 = vrcp.f32 %v1277_v19  ;;  %v1078_v12 = vmax.f32 %v1076_v22, %v1077_v31  ;;  %v4544_v25 = vmax.f32 %v789_v60, %v790_v27  ;;  %v5328_v31 = vld [vmem:[#allocation14_spill] sm:$0xff] }
 0x243   : > { %v4538_v17 = vpop.eup %3574  ;;  %v1315_v8 = vmul.f32 %v4533_v33, %v4163_v50  ;;  %3594 = vrcp.f32 %v1275_v49  ;;  %v2844_v45 = vmul.f32 -1.442695, %v4411_v38  ;;  %v2842_v59 = vmul.f32 -1.442695, %v4418_v13 }
 0x244   : > { %v4546_v34 = vpop.eup %3576  ;;  %v1313_v44 = vmul.f32 %v4538_v17, %v4150_v61  ;;  %3596 = vpow2.f32 %v2880_v35  ;;  %1389 = vmax.xlane.f32.xlu1 %v4538_v17  ;;  %v1079_v30 = vrot.slane %v1078_v12, 2  ;;  %v2847_v22 = vmul.f32 -1.442695, %v4459_v1  ;;  %1108 = vmax.xlane.f32.xlu0 %v4413_v32 }
 0x245   : > { %v3579_v50 = vpop.eup %3578  ;;  %v3058_v11 = vpack.c.bf16 %v1315_v8, %v1314_v28  ;;  %3598 = vpow2.f32 %v2878_v2  ;;  %v1738_v60 = vmax.f32 %v4423_v36, %v4546_v34  ;;  %v839_v13 = vmul.f32 %v4544_v25, %v4544_v25  ;;  %v5329_v2 = vld [vmem:[#allocation12_spill] sm:$0xff] }
 0x246   : > { %v3581_v46 = vpop.eup %3580  ;;  %v3053_v43 = vpack.c.bf16 %v1313_v44, %v1312_v42  ;;  %v1278_v14 = vadd.f32 1.0, %v3579_v50  ;;  %3600 = vpow2.f32 %v2843_v55  ;;  %v1080_v61 = vmax.f32 %v1078_v12, %v1079_v30  ;;  %v5330_v8 = vld [vmem:[#allocation20_spill] sm:$0xff]  ;;  %v5331_v50 = vld [vmem:[#allocation18_spill] sm:$0xff] }
 0x247   : > { %v3583_v63 = vpop.eup %3582  ;;  %3197 = vst [vmem:[%s4278_s6 + $0x48] sm:$0xff] %v3058_v11   ;;  %v2230_v38 = vadd.f32 1.0, %v3581_v46  ;;  %3602 = vpow2.f32 %v2841_v0  ;;  %v2845_v15 = vmul.f32 -1.442695, %v4465_v39  ;;  %v1693_v28 = vmul.f32 %v4546_v34, %v5328_v31 }
 0x248   : > { %v3585_v57 = vpop.eup %3584  ;;  %3196 = vst [vmem:[%s4278_s6 + $0x40] sm:$0xff] %v3053_v43   ;;  %3604 = vrcp.f32 %v1278_v14  ;;  %v1276_v27 = vadd.f32 1.0, %v3583_v63  ;;  %v1081_v19 = vrot.slane %v1080_v61, 1  ;;  %v2848_v32 = vmul.f32 -1.442695, %v4471_v29  ;;  %1762 = vmax.xlane.f32.xlu0 %v4442_v51 }
 0x249   : > { %v4564_v35 = vpop.eup %3586  ;;  %3606 = vrcp.f32 %v2230_v38  ;;  %v2228_v1 = vadd.f32 1.0, %v3585_v57  ;;  %v842_v44 = vadd.f32 %v4514_v20, %v839_v13  ;;  %v4588_v20 = vpop.xlane.xlu1 %1118 }
 0x24a   : > { %v4569_v49 = vpop.eup %3588  ;;  %v1691_v42 = vmul.f32 %v4564_v35, %v5329_v2  ;;  %3608 = vrcp.f32 %v1276_v27  ;;  %v1082_v55 = vmax.f32 %v1080_v61, %v1081_v19  ;;  %v1736_v39 = vmax.f32 %v4442_v51, %v4564_v35 }
 0x24b   : > { %v3591_v12 = vpop.eup %3590  ;;  %v1694_v0 = vmul.f32 %v4569_v49, %v5330_v8  ;;  %3610 = vrcp.f32 %v2228_v1  ;;  %v1739_v29 = vmax.f32 %v4478_v58, %v4569_v49  ;;  %v2883_v51 = vmul.f32 -1.442695, %v4402_v23 }
 0x24c   : > { %v4581_v30 = vpop.eup %3592  ;;  %v1692_v11 = vmul.f32 %v3591_v12, %v5331_v50  ;;  %3612 = vpow2.f32 %v2844_v45  ;;  %1772 = vmax.xlane.f32.xlu1 %v3591_v12  ;;  %v1130_v46 = vmul.f32 %v1082_v55, %v1082_v55  ;;  %v1737_v43 = vmax.f32 %v4491_v3, %v3591_v12  ;;  %1104 = vmax.xlane.f32.xlu0 %v4433_v53 }
 0x24d   : > { %v4585_v14 = vpop.eup %3594  ;;  %v3104_v61 = vpack.c.bf16 %v1694_v0, %v1693_v28  ;;  %3614 = vpow2.f32 %v2842_v59  ;;  %v1363_v58 = vmax.f32 %v4498_v18, %v4581_v30  ;;  %v2881_v45 = vmul.f32 -1.442695, %v4407_v56 }
 0x24e   : > { %v3597_v63 = vpop.eup %3596  ;;  %v3099_v38 = vpack.c.bf16 %v1692_v11, %v1691_v42  ;;  %3616 = vpow2.f32 %v2847_v22  ;;  %v4593_v13 = vadd.f32 %v1130_v46, %v842_v44  ;;  %v1361_v23 = vmax.f32 %v4526_v47, %v4585_v14 }
 0x24f   : > { %v3599_v3 = vpop.eup %3598  ;;  %3207 = vst [vmem:[%s4278_s6 + $0x78] sm:$0xff] %v3104_v61   ;;  %v2231_v57 = vadd.f32 1.0, %v3597_v63  ;;  %3618 = vpow2.f32 %v2845_v15  ;;  %v1740_v59 = vmax.f32 %v1736_v39, %v1737_v43  ;;  %v2846_v22 = vmul.f32 -1.442695, %v4475_v54  ;;  %v4622_v39 = vpop.xlane.xlu1 %1403  ;;  %v5333_v63 = vld [vmem:[#allocation35_spill] sm:$0xff] }
 0x250   : > { %v3601_v27 = vpop.eup %3600  ;;  %3206 = vst [vmem:[%s4278_s6 + $0x70] sm:$0xff] %v3099_v38   ;;  %v2229_v19 = vadd.f32 1.0, %v3599_v3  ;;  %3620 = vpow2.f32 %v2848_v32  ;;  %v1741_v56 = vmax.f32 %v1738_v60, %v1739_v29  ;;  %v1318_v53 = vmul.f32 %v4581_v30, %v4313_v4  ;;  %1110 = vmax.xlane.f32.xlu0 %v4449_v52 }
 0x251   : > { %v3603_v31 = vpop.eup %3602  ;;  %3622 = vrcp.f32 %v2231_v57  ;;  %v1939_v28 = vadd.f32 1.0, %v3601_v27  ;;  %v1128_v15 = vmul.f32 %v4518_v37, %v1082_v55  ;;  %v837_v54 = vmul.f32 %v4453_v62, %v4544_v25  ;;  %v5334_v27 = vld [vmem:[#allocation16_spill] sm:$0xff] }
 0x252   : > { %v4607_v1 = vpop.eup %3604  ;;  %3624 = vrcp.f32 %v2229_v19  ;;  %v1937_v2 = vadd.f32 1.0, %v3603_v31  ;;  %v4609_v42 = vmax.f32 %v1740_v59, %v1741_v56  ;;  %v1316_v36 = vmul.f32 %v4585_v14, %v4197_v7  ;;  %v5336_v31 = vld [vmem:[#allocation21_spill] sm:$0xff] }
 0x253   : > { %v4613_v32 = vpop.eup %3606  ;;  %3626 = vrcp.f32 %v1939_v28  ;;  %v1319_v60 = vmul.f32 %v4607_v1, %v4335_v24  ;;  %v1364_v55 = vmax.f32 %v4533_v33, %v4607_v1  ;;  %v2884_v62 = vmul.f32 -1.442695, %v4428_v48 }
 0x254   : > { %v4624_v12 = vpop.eup %3608  ;;  %3628 = vrcp.f32 %v1937_v2  ;;  %2348 = vmax.xlane.f32.xlu1 %v4613_v32  ;;  %v1383_v7 = vrot.slane %v4523_v16, 2  ;;  %v4629_v25 = vadd.f32 %v1128_v15, %v837_v54  ;;  %1106 = vmax.xlane.f32.xlu0 %v4483_v6  ;;  %v4642_v38 = vmax.f32 %v5333_v63, %v4508_v26  ;;  %v5337_v2 = vld [vmem:[#allocation23_spill] sm:$0xff] }
 0x255   : > { %v4631_v52 = vpop.eup %3610  ;;  %v1317_v8 = vmul.f32 %v4624_v12, %v4190_v5  ;;  %3630 = vpow2.f32 %v2883_v51  ;;  %v3068_v0 = vpack.c.bf16 %v1319_v60, %v1318_v53  ;;  %v1362_v44 = vmax.f32 %v4538_v17, %v4624_v12  ;;  %v5332_v5 = vld [vmem:[#allocation34_spill] sm:$0xff] }
 0x256   : > { %v3613_v29 = vpop.eup %3612  ;;  %3632 = vpow2.f32 %v2846_v22  ;;  %v1366_v48 = vmax.f32 %v1363_v58, %v1364_v55  ;;  %v1756_v51 = vrot.slane %v5332_v5, 4  ;;  %v4648_v6 = vmax.f32 %v4523_v16, %v1383_v7  ;;  %v5335_v22 = vld [vmem:[#allocation37_spill] sm:$0xff] }
 0x257   : > { %v3615_v50 = vpop.eup %3614  ;;  %v3063_v11 = vpack.c.bf16 %v1317_v8, %v1316_v36  ;;  %v1940_v46 = vadd.f32 1.0, %v3613_v29  ;;  %3634 = vpow2.f32 %v2881_v45  ;;  %3199 = vst [vmem:[%s4278_s6 + $0x58] sm:$0xff] %v3068_v0   ;;  %v1365_v43 = vmax.f32 %v1361_v23, %v1362_v44  ;;  %v3219_v45 = vld [vmem:[%s3907_s26 + $0xb8] sm:$0xff]   ;;  %v4650_v23 = vpop.xlane.xlu1 %2362  ;;  %v3668_v36 = vld [vmem:[%s3907_s26 + $0xb0] sm:$0xff]   ;;  %v5338_v7 = vld [vmem:[#allocation13_spill] sm:$0xff]  ;;  %s2560_s26 = sshll.u32 %s4278_s6, 4  ;;  %s5186_s26 = int_to_ptr.vmem [resolvable:$true] %s2560_s26 }
 0x258   : > { %v3617_v61 = vpop.eup %3616  ;;  %v1938_v17 = vadd.f32 1.0, %v3615_v50  ;;  %3636 = vpow2.f32 %v2884_v62  ;;  %1399 = vmax.xlane.f32.xlu1 %v4581_v30  ;;  %v2271_v26 = vmul.f32 %v4613_v32, %v5334_v27  ;;  %v2882_v30 = vmul.f32 -1.442695, %v5335_v22  ;;  %1391 = vmax.xlane.f32.xlu0 %v4498_v18  ;;  %s3699_s13 = scalar_lea.vmem %s5186_s26, 3072  ;;  %p3706_p9 = scmp.lt.s32.totalorder %s5186_s26, %s3704_s25 }
 0x259   : > { %v3619_v58 = vpop.eup %3618  ;;  %3198 = vst [vmem:[%s4278_s6 + $0x50] sm:$0xff] %v3063_v11   ;;  %3638 = vrcp.f32 %v1940_v46  ;;  %v1943_v3 = vadd.f32 1.0, %v3617_v61  ;;  %v1367_v57 = vmax.f32 %v1365_v43, %v1366_v48  ;;  %v2269_v28 = vmul.f32 %v4631_v52, %v5336_v31  ;;  %v5339_v11 = vld [vmem:[#allocation24_spill] sm:$0xff]  ;;  %p3700_p6 = scmp.ne.s32.totalorder %s5186_s26, %s3699_s13  ;;  %p3707_p13 = scmp.lt.s32.totalorder %s3705_s22, %s3699_s13 }
 0x25a   : > { %v3621_v59 = vpop.eup %3620  ;;  %3640 = vrcp.f32 %v1938_v17  ;;  %v1941_v19 = vadd.f32 1.0, %v3619_v58  ;;  %v4665_v60 = vunpack.c.h.bf16 %v3668_v36  ;;  %v4667_v55 = vunpack.c.l.bf16 %v3219_v45  ;;  %v5341_v36 = vld [vmem:[#allocation19_spill] sm:$0xff] }
 0x25b   : > { %v4655_v56 = vpop.eup %3622  ;;  %3642 = vrcp.f32 %v1943_v3  ;;  %v1944_v53 = vadd.f32 1.0, %v3621_v59  ;;  %v1368_v16 = vrot.slane %v1367_v57, 4  ;;  %v4674_v18 = vunpack.c.h.bf16 %v3219_v45  ;;  %v4685_v17 = vpop.xlane.xlu1 %833  ;;  %p3701_p12 = pnand %p3700_p6, %p5378_p11  ;;  %p3708_p1 = por %p3707_p13, %p3706_p9 }
 0x25c   : > { %v4660_v15 = vpop.eup %3624  ;;  %v2272_v54 = vmul.f32 %v4655_v56, %v5337_v2  ;;  %3644 = vrcp.f32 %v1941_v19  ;;  %v4679_v29 = vmax.f32 %v5332_v5, %v1756_v51  ;;  %v2331_v46 = vmax.f32 %v5336_v31, %v5339_v11  ;;  %1774 = vmax.xlane.f32.xlu0 %v4546_v34 }
 0x25d   : > { %v4669_v62 = vpop.eup %3626  ;;  %v2270_v8 = vmul.f32 %v4660_v15, %v5338_v7  ;;  %3646 = vrcp.f32 %v1944_v53  ;;  %2346 = vmax.xlane.f32.xlu1 %v4660_v15  ;;  %v1369_v0 = vmax.f32 %v1367_v57, %v1368_v16  ;;  %v2047_v43 = vrot.slane %v4642_v38, 4  ;;  %v5340_v53 = vld [vmem:[#allocation10_spill] sm:$0xff]  ;;  %p3702_p8 = pneg %p3701_p12 }
 0x25e   : > { %v4676_v44 = vpop.eup %3628  ;;  %v3166_v48 = vpack.c.bf16 %v2272_v54, %v2271_v26  ;;  %3648 = vpow2.f32 %v2882_v30  ;;  %v2332_v5 = vmax.f32 %v5338_v7, %v4665_v60  ;;  %v1132_v51 = vmul.f32 %v4518_v37, %v4518_v37 }
 0x25f   : > { %v3631_v50 = vpop.eup %3630  ;;  %v3161_v61 = vpack.c.bf16 %v2270_v8, %v2269_v28  ;;  %v1370_v63 = vrot.slane %v1369_v0, 2  ;;  %v1385_v45 = vrot.slane %v4648_v6, 1  ;;  %v2333_v34 = vmax.f32 %v5334_v27, %v4667_v55  ;;  %p3709_p3 = pnand %p3708_p1, %p3702_p8 }
 0x260   : > { %v3633_v58 = vpop.eup %3632  ;;  %3221 = vst [vmem:[%s4278_s6 + $0xa8] sm:$0xff] %v3166_v48   ;;  %v2234_v3 = vadd.f32 1.0, %v3631_v50  ;;  %v2334_v26 = vmax.f32 %v5337_v2, %v4674_v18  ;;  %v1980_v30 = vmul.f32 %v4669_v62, %v4022_v40  ;;  %v1743_v31 = vrot.slane %v4609_v42, 4  ;;  %1387 = vmax.xlane.f32.xlu0 %v4526_v47  ;;  %v5342_v48 = vld [vmem:[#allocation11_spill] sm:$0xff] }
 0x261   : > { %v3635_v57 = vpop.eup %3634  ;;  %3220 = vst [vmem:[%s4278_s6 + $0xa0] sm:$0xff] %v3161_v61   ;;  %v1942_v59 = vadd.f32 1.0, %v3633_v58  ;;  %2057 = vmax.xlane.f32.xlu1 %v4669_v62  ;;  %v1371_v19 = vmax.f32 %v1369_v0, %v1370_v63  ;;  %v1978_v16 = vmul.f32 %v4676_v44, %v5340_v53  ;;  %v2335_v40 = vmax.f32 %v2331_v46, %v2332_v5  ;;  %v4719_v63 = vpop.xlane.xlu1 %1120 }
 0x262   : > { %v3637_v22 = vpop.eup %3636  ;;  %3650 = vrcp.f32 %v2234_v3  ;;  %v2232_v37 = vadd.f32 1.0, %v3635_v57  ;;  %v4712_v8 = vmax.f32 %v4648_v6, %v1385_v45  ;;  %v2336_v47 = vmax.f32 %v2333_v34, %v2334_v26 }
 0x263   : > { %v4702_v28 = vpop.eup %3638  ;;  %3652 = vrcp.f32 %v1942_v59  ;;  %v2235_v54 = vadd.f32 1.0, %v3637_v22  ;;  %v1372_v27 = vrot.slane %v1371_v19, 1  ;;  %v1133_v46 = vadd.f32 %v1132_v51, %v4593_v13  ;;  %v5343_v22 = vld [vmem:[#allocation25_spill] sm:$0xff]  ;;  %v4736_v51 = vpop.xlane.xlu0 %1778 }
 0x264   : > { %v4707_v2 = vpop.eup %3640  ;;  %v1981_v7 = vmul.f32 %v4702_v28, %v5341_v36  ;;  %3654 = vrcp.f32 %v2232_v37  ;;  %1770 = vmax.xlane.f32.xlu0 %v4564_v35  ;;  %v1744_v34 = vmax.f32 %v4609_v42, %v1743_v31 }
 0x265   : > { %v4714_v0 = vpop.eup %3642  ;;  %v1979_v50 = vmul.f32 %v4707_v2, %v5342_v48  ;;  %3656 = vrcp.f32 %v2235_v54  ;;  %2055 = vmax.xlane.f32.xlu1 %v4707_v2  ;;  %v1373_v61 = vmax.f32 %v1371_v19, %v1372_v27  ;;  %v2337_v54 = vmax.f32 %v2335_v40, %v2336_v47  ;;  %v4749_v36 = vpop.xlane.xlu1 %1407  ;;  %v5344_v48 = vld [vmem:[#allocation15_spill] sm:$0xff] }
 0x266   : > { %v3645_v58 = vpop.eup %3644  ;;  %v3130_v3 = vpack.c.bf16 %v1981_v7, %v1980_v30  ;;  %v1984_v6 = vmul.f32 %v4714_v0, %v4201_v10  ;;  %v2029_v5 = vmax.f32 %v4669_v62, %v4714_v0  ;;  %v1758_v30 = vrot.slane %v4679_v29, 2 }
 0x267   : > { %v4726_v45 = vpop.eup %3646  ;;  %v3125_v57 = vpack.c.bf16 %v1979_v50, %v1978_v16  ;;  %v1421_v59 = vmul.f32 %v1373_v61, %v1373_v61  ;;  %v2027_v26 = vmax.f32 %v4676_v44, %v3645_v58  ;;  %v1419_v62 = vmul.f32 %v4712_v8, %v1373_v61 }
 0x268   : > { %v3649_v19 = vpop.eup %3648  ;;  %3213 = vst [vmem:[%s4278_s6 + $0x88] sm:$0xff] %v3130_v3   ;;  %v1985_v10 = vmul.f32 %v4726_v45, %v5343_v22  ;;  %v2030_v13 = vmax.f32 %v4702_v28, %v4726_v45  ;;  %v2048_v16 = vmax.f32 %v4642_v38, %v2047_v43  ;;  %1393 = vmax.xlane.f32.xlu0 %v4533_v33  ;;  %v1745_v27 = vrot.slane %v1744_v34, 2  ;;  %v5345_v43 = vld [vmem:[#allocation22_spill] sm:$0xff] }
 0x269   : > { %3212 = vst [vmem:[%s4278_s6 + $0x80] sm:$0xff] %v3125_v57   ;;  %v2233_v35 = vadd.f32 1.0, %v3649_v19  ;;  %2370 = vmax.xlane.f32.xlu1 %v4665_v60  ;;  %v1422_v42 = vadd.f32 %v1421_v59, %v1133_v46  ;;  %v4743_v53 = vadd.f32 %v1419_v62, %v4629_v25  ;;  %v1982_v50 = vmul.f32 %v3645_v58, %v5344_v48  ;;  %v4780_v22 = vpop.xlane.xlu1 %1790 }
 0x26a   : > { %v3140_v37 = vpack.c.bf16 %v1985_v10, %v1984_v6  ;;  %v2032_v31 = vmax.f32 %v2029_v5, %v2030_v13  ;;  %v1759_v38 = vmax.f32 %v4679_v29, %v1758_v30  ;;  %v4768_v6 = vpop.xlane.xlu0 %1114  ;;  %v2049_v46 = vrot.slane %v2048_v16, 2  ;;  %5346 = vst [vmem:[#allocation9_spill] sm:$0xff] %v4780_v22 }
 0x26b   : > { %3658 = vrcp.f32 %v2233_v35  ;;  %v2338_v5 = vrot.slane %v2337_v54, 4 }
 0x26c   : > { %v4751_v7 = vpop.eup %3650  ;;  %3215 = vst [vmem:[%s4278_s6 + $0x98] sm:$0xff] %v3140_v37   ;;  %1776 = vmax.xlane.f32.xlu0 %v4569_v49  ;;  %v1760_v62 = vrot.slane %v1759_v38, 1  ;;  %v2050_v35 = vmax.f32 %v2048_v16, %v2049_v46  ;;  %v1423_v37 = vmul.f32 %v4712_v8, %v4712_v8 }
 0x26d   : > { %v4755_v61 = vpop.eup %3652  ;;  %2061 = vmax.xlane.f32.xlu1 %v3645_v58  ;;  %v2320_v25 = vmax.f32 %v4613_v32, %v4751_v7  ;;  %v2275_v40 = vmul.f32 %v4751_v7, %v4667_v55  ;;  %v1746_v32 = vmax.f32 %v1744_v34, %v1745_v27  ;;  %v2339_v30 = vmax.f32 %v2337_v54, %v2338_v5  ;;  %v4799_v8 = vpop.xlane.xlu1 %2077 }
 0x26e   : > { %v4759_v3 = vpop.eup %3654  ;;  %v1983_v33 = vmul.f32 %v4755_v61, %v5345_v43  ;;  %v2028_v47 = vmax.f32 %v4707_v2, %v4755_v61  ;;  %v4789_v27 = vpop.xlane.xlu0 %1784  ;;  %v1761_v54 = vmax.f32 %v1759_v38, %v1760_v62 }
 0x26f   : > { %v4770_v58 = vpop.eup %3656  ;;  %v2318_v29 = vmax.f32 %v4631_v52, %v4759_v3  ;;  %v1747_v13 = vrot.slane %v1746_v32, 1 }
 0x270   : > { %v3135_v57 = vpack.c.bf16 %v1983_v33, %v1982_v50  ;;  %v2276_v59 = vmul.f32 %v4770_v58, %v4674_v18  ;;  %v2031_v19 = vmax.f32 %v2027_v26, %v2028_v47  ;;  %v2321_v2 = vmax.f32 %v4655_v56, %v4770_v58  ;;  %2344 = vmax.xlane.f32.xlu0 %v4631_v52 }
 0x271   : > { %1415 = vmax.xlane.f32.xlu1 %v4313_v4  ;;  %v2273_v26 = vmul.f32 %v4759_v3, %v5339_v11  ;;  %v1748_v11 = vmax.f32 %v1746_v32, %v1747_v13  ;;  %v2051_v50 = vrot.slane %v2050_v35, 1  ;;  %v1424_v33 = vadd.f32 %v1423_v37, %v1422_v42 }
 0x272   : > { %3214 = vst [vmem:[%s4278_s6 + $0x90] sm:$0xff] %v3135_v57   ;;  %v3176_v49 = vpack.c.bf16 %v2276_v59, %v2275_v40  ;;  %v2033_v34 = vmax.f32 %v2031_v19, %v2032_v31  ;;  %v2323_v10 = vmax.f32 %v2320_v25, %v2321_v2  ;;  %v2340_v25 = vrot.slane %v2339_v30, 2  ;;  %v4803_v46 = vpop.xlane.xlu0 %2069 }
 0x273   : > { %v2052_v38 = vmax.f32 %v2050_v35, %v2051_v50  ;;  %v1796_v5 = vmul.f32 %v1748_v11, %v1748_v11  ;;  %v1794_v2 = vmul.f32 %v1761_v54, %v1748_v11 }
 0x274   : > { %3223 = vst [vmem:[%s4278_s6 + $0xb8] sm:$0xff] %v3176_v49   ;;  %v2034_v4 = vrot.slane %v2033_v34, 4  ;;  %1395 = vmax.xlane.f32.xlu0 %v4585_v14  ;;  %v2341_v32 = vmax.f32 %v2339_v30, %v2340_v25  ;;  %v1486_v14 = vsel %vm1473_vm1, %v1424_v33, 0.0 }
 0x275   : > { %v4791_v48 = vpop.eup %3658  ;;  %2372 = vmax.xlane.f32.xlu1 %v4667_v55  ;;  %v2089_v35 = vmul.f32 %v2052_v38, %v2052_v38 }
 0x276   : > { %v2274_v31 = vmul.f32 %v4791_v48, %v4665_v60  ;;  %v2035_v16 = vmax.f32 %v2033_v34, %v2034_v4  ;;  %v2319_v52 = vmax.f32 %v4660_v15, %v4791_v48  ;;  %v1798_v15 = vmul.f32 %v1761_v54, %v1761_v54  ;;  %v4810_v13 = vpop.xlane.xlu0 %1405 }
 0x277   : > { %v2342_v19 = vrot.slane %v2341_v32, 1 }
 0x278   : > { %v3171_v43 = vpack.c.bf16 %v2274_v31, %v2273_v26  ;;  %v2036_v40 = vrot.slane %v2035_v16, 2  ;;  %v2322_v47 = vmax.f32 %v2318_v29, %v2319_v52  ;;  %2350 = vmax.xlane.f32.xlu0 %v4655_v56  ;;  %v4807_v29 = vpop.xlane.xlu1 %2364  ;;  %v1799_v49 = vadd.f32 %v1798_v15, %v1796_v5 }
 0x279   : > { %2374 = vmax.xlane.f32.xlu1 %v4674_v18  ;;  %v2343_v31 = vmax.f32 %v2341_v32, %v2342_v19 }
 0x27a   : > { %3222 = vst [vmem:[%s4278_s6 + $0xb0] sm:$0xff] %v3171_v43   ;;  %v2037_v60 = vmax.f32 %v2035_v16, %v2036_v40  ;;  %v2324_v55 = vmax.f32 %v2322_v47, %v2323_v10 }
 0x27b   : > { %v2380_v54 = vmul.f32 %v2343_v31, %v2343_v31 }
 0x27c   : > { %v2038_v57 = vrot.slane %v2037_v60, 1  ;;  %v2325_v42 = vrot.slane %v2324_v55, 4  ;;  %1397 = vmax.xlane.f32.xlu0 %v4624_v12  ;;  %v4813_v37 = vpop.xlane.xlu1 %835  ;;  %v4815_v12 = vpop.xlane.xlu0 %1788 }
 0x27d   : > { %1487 = vadd.xlane.f32.xlu1 %v1486_v14  ;;  %5347 = vst [vmem:[#allocation17_spill] sm:$0xff] %v4815_v12 }
 0x27e   : > { %v2039_v18 = vmax.f32 %v2037_v60, %v2038_v57  ;;  %v2326_v59 = vmax.f32 %v2324_v55, %v2325_v42 }
 0x280   : > { %v2087_v34 = vmul.f32 %v2039_v18, %v2039_v18  ;;  %v2327_v10 = vrot.slane %v2326_v59, 2  ;;  %v2085_v56 = vmul.f32 %v2052_v38, %v2039_v18  ;;  %2356 = vmax.xlane.f32.xlu0 %v4751_v7  ;;  %v4818_v25 = vpop.xlane.xlu1 %1122  ;;  %v4821_v40 = vpop.xlane.xlu0 %2075 }
 0x282   : > { %v2088_v62 = vadd.f32 %v2087_v34, %v1799_v49  ;;  %v2328_v30 = vmax.f32 %v2326_v59, %v2327_v10  ;;  %v2086_v26 = vadd.f32 %v2085_v56, %v1794_v2  ;;  %v5353_v49 = vld [vmem:[#allocation29_spill] sm:$0xff] }
 0x284   : > { %v2329_v4 = vrot.slane %v2328_v30, 1  ;;  %v2090_v16 = vadd.f32 %v2089_v35, %v2088_v62  ;;  %2053 = vmax.xlane.f32.xlu0 %v4676_v44  ;;  %v4825_v60 = vpop.xlane.xlu1 %1409  ;;  %v4827_v44 = vpop.xlane.xlu0 %2360 }
 0x286   : > { %v2330_v52 = vmax.f32 %v2328_v30, %v2329_v4  ;;  %v5354_v30 = vld [vmem:[#allocation38_spill] sm:$0xff] }
 0x288   : > { %v2378_v11 = vmul.f32 %v2330_v52, %v2330_v52  ;;  %v2376_v50 = vmul.f32 %v2343_v31, %v2330_v52  ;;  %2352 = vmax.xlane.f32.xlu0 %v4759_v3  ;;  %v4830_v55 = vpop.xlane.xlu1 %1792  ;;  %v4833_v15 = vpop.xlane.xlu0 %1126  ;;  %v5355_v31 = vld [vmem:[#allocation26_spill] sm:$0xff] }
 0x289   : > { %5348 = vst [vmem:[#allocation8_spill] sm:$0xff] %v4830_v55  ;;  %5349 = vst [vmem:[#allocation14_spill] sm:$0xff] %v4833_v15 }
 0x28a   : > { %v2379_v43 = vadd.f32 %v2378_v11, %v2090_v16  ;;  %v2377_v33 = vadd.f32 %v2376_v50, %v2086_v26  ;;  %v875_v16 = vmul.f32 %v5355_v31, %v5355_v31 }
 0x28c   : > { %v2381_v7 = vadd.f32 %v2380_v54, %v2379_v43  ;;  %2059 = vmax.xlane.f32.xlu0 %v4702_v28  ;;  %v4835_v3 = vpop.xlane.xlu1 %2079  ;;  %v4838_v38 = vpop.xlane.xlu0 %1413  ;;  %v2430_v57 = vsel %vm1473_vm1, %v2377_v33, 0.0 }
 0x28d   : > { %5350 = vst [vmem:[#allocation12_spill] sm:$0xff] %v4835_v3 }
 0x28e   : > { %v2442_v47 = vsel %vm1473_vm1, %v2381_v7, 0.0 }
 0x28f   : > { %2443 = vadd.xlane.f32.xlu1 %v2442_v47  ;;  %v5356_v47 = vld [vmem:[#allocation32_spill] sm:$0xff] }
 0x290   : > { %2354 = vmax.xlane.f32.xlu0 %v4791_v48  ;;  %v4841_v28 = vpop.xlane.xlu1 %2366 }
 0x294   : > { %2065 = vmax.xlane.f32.xlu0 %v4714_v0  ;;  %v4844_v48 = vpop.xlane.xlu1 %1124 }
 0x298   : > { %2067 = vmax.xlane.f32.xlu0 %v4726_v45  ;;  %v4848_v5 = vpop.xlane.xlu1 %1411  ;;  %v1474_v45 = vsel %vm1473_vm1, %v4743_v53, 0.0  ;;  %v877_v53 = vmul.f32 %v5353_v49, %v5353_v49 }
 0x29c   : > { %2063 = vmax.xlane.f32.xlu0 %v4755_v61 }
 0x2a0   : > { %1401 = vmax.xlane.f32.xlu0 %v4607_v1  ;;  %v4855_v1 = vpop.xlane.xlu1 %2081 }
 0x2a1   : > { %v810_v32 = vpop.xlane.xlu0 %809  ;;  %5351 = vst [vmem:[#allocation20_spill] sm:$0xff] %v4855_v1 }
 0x2a2   : > { %v861_v2 = vmul.f32 %v810_v32, %v810_v32  ;;  %v845_v34 = vmul.f32 %v5353_v49, %v810_v32 }
 0x2a4   : > { %2358 = vmax.xlane.f32.xlu0 %v4770_v58  ;;  %v4857_v58 = vpop.xlane.xlu1 %2368  ;;  %v885_v56 = vadd.f32 %v877_v53, %v861_v2 }
 0x2a5   : > { %v806_v0 = vpop.xlane.xlu0 %805 }
 0x2a6   : > { %v859_v62 = vmul.f32 %v806_v0, %v806_v0  ;;  %v843_v54 = vmul.f32 %v5355_v31, %v806_v0 }
 0x2a8   : > { %1417 = vmax.xlane.f32.xlu0 %v4335_v24  ;;  %v4859_v24 = vpop.xlane.xlu1 %2083  ;;  %v883_v43 = vadd.f32 %v875_v16, %v859_v62 }
 0x2a9   : > { %v812_v14 = vpop.xlane.xlu0 %811  ;;  %5352 = vst [vmem:[#allocation18_spill] sm:$0xff] %v4859_v24 }
 0x2aa   : > { %v862_v33 = vmul.f32 %v812_v14, %v812_v14 }
 0x2ac   : > { %1475 = vadd.xlane.f32.xlu0 %v1474_v45 }
 0x2ad   : > { %v4852_v61 = vpop.xlane.xlu0 %807 }
 0x2b0   : > { %2431 = vadd.xlane.f32.xlu0 %v2430_v57  ;;  %v5357_v57 = vld [vmem:[#allocation31_spill] sm:$0xff] }
 0x2b1   : > { %v818_v42 = vpop.xlane.xlu0 %817  ;;  %v878_v2 = vmul.f32 %v5357_v57, %v5357_v57 }
 0x2b5   : > { %v814_v18 = vpop.xlane.xlu0 %813 }
 0x2b7   : > { %v4866_v35 = vpop.xlane.xlu1 %1098 }
 0x2b9   : > { %v820_v59 = vpop.xlane.xlu0 %819 }
 0x2ba   : > { %v850_v3 = vmul.f32 %v4813_v37, %v820_v59 }
 0x2bd   : > { %v4861_v19 = vpop.xlane.xlu0 %815 }
 0x2c1   : > { %v1101_v10 = vpop.xlane.xlu0 %1100 }
 0x2c2   : > { %v1136_v26 = vmul.f32 %v5354_v30, %v1101_v10  ;;  %v1152_v4 = vmul.f32 %v1101_v10, %v1101_v10  ;;  %v846_v10 = vmul.f32 %v5357_v57, %v812_v14 }
 0x2c4   : > { %v4871_v52 = vadd.f32 %v1136_v26, %v845_v34  ;;  %v4873_v11 = vadd.f32 %v1152_v4, %v885_v56  ;;  %v886_v56 = vadd.f32 %v878_v2, %v862_v33 }
 0x2c5   : > { %v1097_v50 = vpop.xlane.xlu0 %1096 }
 0x2c6   : > { %v4876_v7 = vpop.xlane.xlu1 %1768  ;;  %v1134_v32 = vmul.f32 %v5356_v47, %v1097_v50  ;;  %v1150_v45 = vmul.f32 %v1097_v50, %v1097_v50  ;;  %v865_v50 = vmul.f32 %v818_v42, %v818_v42 }
 0x2c8   : > { %v4881_v49 = vadd.f32 %v1134_v32, %v843_v54  ;;  %v4883_v53 = vadd.f32 %v1150_v45, %v883_v43  ;;  %v881_v54 = vmul.f32 %v4685_v17, %v4685_v17  ;;  %v849_v32 = vmul.f32 %v4685_v17, %v818_v42 }
 0x2c9   : > { %v1103_v34 = vpop.xlane.xlu0 %1102  ;;  %v882_v17 = vmul.f32 %v4813_v37, %v4813_v37  ;;  %v860_v37 = vmul.f32 %v4852_v61, %v4852_v61 }
 0x2ca   : > { %v1137_v0 = vmul.f32 %v4588_v20, %v1103_v34  ;;  %v1153_v62 = vmul.f32 %v1103_v34, %v1103_v34  ;;  %v4887_v26 = vpop.xlane.xlu1 %1764  ;;  %v889_v14 = vadd.f32 %v881_v54, %v865_v50 }
 0x2cc   : > { %v4889_v4 = vadd.f32 %v1137_v0, %v846_v10  ;;  %v4891_v31 = vadd.f32 %v1153_v62, %v886_v56  ;;  %v863_v56 = vmul.f32 %v814_v18, %v814_v18  ;;  %v5358_v0 = vld [vmem:[#allocation36_spill] sm:$0xff] }
 0x2cd   : > { %v4893_v16 = vpop.xlane.xlu0 %1766  ;;  %v879_v62 = vmul.f32 %v5358_v0, %v5358_v0  ;;  %v847_v42 = vmul.f32 %v5358_v0, %v814_v18  ;;  %v880_v0 = vmul.f32 %v4558_v9, %v4558_v9 }
 0x2cf   : > { %v887_v50 = vadd.f32 %v879_v62, %v863_v56 }
 0x2d1   : > { %v1109_v43 = vpop.xlane.xlu0 %1108  ;;  %v1390_v33 = vpop.xlane.xlu1 %1389 }
 0x2d2   : > { %v1140_v45 = vmul.f32 %v4844_v48, %v1109_v43  ;;  %v1156_v57 = vmul.f32 %v1109_v43, %v1109_v43  ;;  %v866_v43 = vmul.f32 %v820_v59, %v820_v59 }
 0x2d4   : > { %v4899_v2 = vadd.f32 %v1140_v45, %v849_v32  ;;  %v4901_v34 = vadd.f32 %v1156_v57, %v889_v14  ;;  %v890_v12 = vadd.f32 %v882_v17, %v866_v43  ;;  %v848_v17 = vmul.f32 %v4558_v9, %v4861_v19 }
 0x2d5   : > { %v4903_v10 = vpop.xlane.xlu0 %1762 }
 0x2d9   : > { %v4907_v24 = vpop.xlane.xlu1 %1772  ;;  %v1105_v54 = vpop.xlane.xlu0 %1104 }
 0x2da   : > { %5359 = vst [vmem:[#allocation34_spill] sm:$0xff] %v4907_v24  ;;  %v1138_v32 = vmul.f32 %v4719_v63, %v1105_v54  ;;  %v1154_v14 = vmul.f32 %v1105_v54, %v1105_v54  ;;  %v864_v24 = vmul.f32 %v4861_v19, %v4861_v19 }
 0x2dc   : > { %v4913_v45 = vadd.f32 %v1138_v32, %v847_v42  ;;  %v4915_v57 = vadd.f32 %v1154_v14, %v887_v50  ;;  %v888_v54 = vadd.f32 %v880_v0, %v864_v24  ;;  %v5362_v32 = vld [vmem:[#allocation27_spill] sm:$0xff] }
 0x2dd   : > { %v1111_v55 = vpop.xlane.xlu0 %1110  ;;  %v876_v14 = vmul.f32 %v5362_v32, %v5362_v32 }
 0x2de   : > { %v1141_v18 = vmul.f32 %v4833_v15, %v1111_v55  ;;  %v1157_v56 = vmul.f32 %v1111_v55, %v1111_v55 }
 0x2df   : > { %v884_v9 = vadd.f32 %v876_v14, %v860_v37  ;;  %v1135_v37 = vmul.f32 %v4768_v6, %v4866_v35  ;;  %v1166_v14 = vmul.f32 %v5356_v47, %v5356_v47 }
 0x2e0   : > { %v4925_v62 = vadd.f32 %v1141_v18, %v850_v3  ;;  %v4927_v42 = vadd.f32 %v1157_v56, %v890_v12  ;;  %v1151_v12 = vmul.f32 %v4866_v35, %v4866_v35  ;;  %v1168_v3 = vmul.f32 %v5354_v30, %v5354_v30 }
 0x2e1   : > { %v4920_v1 = vpop.xlane.xlu1 %2348  ;;  %v1107_v59 = vpop.xlane.xlu0 %1106  ;;  %v1167_v30 = vmul.f32 %v4768_v6, %v4768_v6  ;;  %v1458_v6 = vmul.f32 %v4810_v13, %v4810_v13  ;;  %v1174_v35 = vadd.f32 %v1166_v14, %v4883_v53 }
 0x2e2   : > { %5360 = vst [vmem:[#allocation35_spill] sm:$0xff] %v4925_v62  ;;  %5361 = vst [vmem:[#allocation16_spill] sm:$0xff] %v4927_v42  ;;  %v1139_v43 = vmul.f32 %v4818_v25, %v1107_v59  ;;  %v1155_v55 = vmul.f32 %v1107_v59, %v1107_v59  ;;  %v1176_v19 = vadd.f32 %v1168_v3, %v4873_v11 }
 0x2e3   : > { %v1159_v62 = vadd.f32 %v1151_v12, %v884_v9  ;;  %v844_v11 = vmul.f32 %v5362_v32, %v4852_v61  ;;  %v1457_v61 = vmul.f32 %v4622_v39, %v4622_v39 }
 0x2e4   : > { %v4942_v18 = vadd.f32 %v1139_v43, %v848_v17  ;;  %v4944_v56 = vadd.f32 %v1155_v55, %v888_v54  ;;  %v1442_v17 = vmul.f32 %v1390_v33, %v1390_v33  ;;  %v1426_v55 = vmul.f32 %v4810_v13, %v1390_v33 }
 0x2e5   : > { %v4933_v50 = vpop.xlane.xlu1 %1399  ;;  %v1392_v24 = vpop.xlane.xlu0 %1391  ;;  %v1175_v54 = vadd.f32 %v1167_v30, %v1159_v62  ;;  %v1143_v9 = vadd.f32 %v1135_v37, %v844_v11  ;;  %v1459_v33 = vmul.f32 %v4749_v36, %v4749_v36 }
 0x2e6   : > { %v1427_v0 = vmul.f32 %v4749_v36, %v1392_v24  ;;  %v1443_v59 = vmul.f32 %v1392_v24, %v1392_v24 }
 0x2e7   : > { %v1434_v47 = vadd.f32 %v1426_v55, %v1143_v9 }
 0x2e8   : > { %v1435_v15 = vadd.f32 %v1427_v0, %v4871_v52  ;;  %v1451_v22 = vadd.f32 %v1443_v59, %v1176_v19  ;;  %v1450_v52 = vadd.f32 %v1442_v17, %v1175_v54 }
 0x2e9   : > { %v4953_v43 = vpop.xlane.xlu0 %1774  ;;  %v1499_v37 = vsel %vm1497_vm2, %v1434_v47, 0.0 }
 0x2ea   : > { %v4948_v42 = vpop.xlane.xlu1 %2346  ;;  %v1466_v62 = vadd.f32 %v1458_v6, %v1450_v52  ;;  %v1467_v17 = vadd.f32 %v1459_v33, %v1451_v22  ;;  %v1501_v55 = vsel %vm1497_vm2, %v1435_v15, 0.0 }
 0x2ec   : > { %v1525_v36 = vsel %vm1497_vm2, %v1466_v62, 0.0  ;;  %v1527_v22 = vsel %vm1497_vm2, %v1467_v17, 0.0 }
 0x2ed   : > { %v1388_v3 = vpop.xlane.xlu0 %1387 }
 0x2ee   : > { %v4962_v12 = vpop.xlane.xlu1 %2057  ;;  %v1425_v24 = vmul.f32 %v4622_v39, %v1388_v3  ;;  %v1441_v19 = vmul.f32 %v1388_v3, %v1388_v3  ;;  %v1169_v39 = vmul.f32 %v4588_v20, %v4588_v20 }
 0x2f0   : > { %v1433_v32 = vadd.f32 %v1425_v24, %v4881_v49  ;;  %v1449_v0 = vadd.f32 %v1441_v19, %v1174_v35  ;;  %v1177_v52 = vadd.f32 %v1169_v39, %v4891_v31  ;;  %v1460_v19 = vmul.f32 %v4825_v60, %v4825_v60 }
 0x2f1   : > { %v4973_v59 = vpop.xlane.xlu0 %1770 }
 0x2f2   : > { %v4975_v30 = vpop.xlane.xlu1 %2055  ;;  %v1465_v13 = vadd.f32 %v1457_v61, %v1449_v0  ;;  %v1498_v53 = vsel %vm1497_vm2, %v1433_v32, 0.0 }
 0x2f3   : > { %v1500_v54 = vadd.f32 %v1499_v37, %v1498_v53  ;;  %v5364_v37 = vld [vmem:[#allocation28_spill] sm:$0xff] }
 0x2f4   : > { %v1524_v11 = vsel %vm1497_vm2, %v1465_v13, 0.0 }
 0x2f5   : > { %v1394_v49 = vpop.xlane.xlu0 %1393  ;;  %v1526_v14 = vadd.f32 %v1525_v36, %v1524_v11  ;;  %v1502_v3 = vadd.f32 %v1501_v55, %v1500_v54  ;;  %v1833_v36 = vmul.f32 %v5364_v37, %v5364_v37  ;;  %v1172_v54 = vmul.f32 %v4844_v48, %v4844_v48  ;;  %v5365_v11 = vld [vmem:[#allocation30_spill] sm:$0xff] }
 0x2f6   : > { %v1428_v9 = vmul.f32 %v4825_v60, %v1394_v49  ;;  %v1444_v24 = vmul.f32 %v1394_v49, %v1394_v49  ;;  %v4989_v6 = vpop.xlane.xlu1 %2370  ;;  %v1170_v60 = vmul.f32 %v4719_v63, %v4719_v63  ;;  %v1834_v49 = vmul.f32 %v5365_v11, %v5365_v11 }
 0x2f7   : > { %v1528_v20 = vadd.f32 %v1527_v22, %v1526_v14  ;;  %5363 = vst [vmem:[#allocation37_spill] sm:$0xff] %v4989_v6  ;;  %v1461_v55 = vmul.f32 %v4848_v5, %v4848_v5  ;;  %v5017_v22 = vmul.f32 %v4503_v21, %v4503_v21  ;;  %v1817_v48 = vmul.f32 %v4887_v26, %v4887_v26 }
 0x2f8   : > { %v1436_v35 = vadd.f32 %v1428_v9, %v4889_v4  ;;  %v1452_v61 = vadd.f32 %v1444_v24, %v1177_v52  ;;  %v1178_v4 = vadd.f32 %v1170_v60, %v4915_v57  ;;  %v5366_v52 = vld [vmem:[#allocation33_spill] sm:$0xff]  ;;  %v2108_v60 = vmul.f32 %v4975_v30, %v4975_v30 }
 0x2f9   : > { %v4992_v33 = vpop.xlane.xlu0 %1776  ;;  %v2124_v57 = vmul.f32 %v5366_v52, %v5366_v52 }
 0x2fa   : > { %v1468_v15 = vadd.f32 %v1460_v19, %v1452_v61  ;;  %v1503_v31 = vsel %vm1497_vm2, %v1436_v35, 0.0  ;;  %v4998_v17 = vpop.xlane.xlu1 %2061  ;;  %v1818_v35 = vmul.f32 %v4893_v16, %v4893_v16  ;;  %v1447_v61 = vmul.f32 %v4933_v50, %v4933_v50 }
 0x2fb   : > { %v1504_v47 = vadd.f32 %v1503_v31, %v1502_v3  ;;  %v2125_v3 = vmul.f32 %v4531_v41, %v4531_v41 }
 0x2fc   : > { %v1529_v62 = vsel %vm1497_vm2, %v1468_v15, 0.0  ;;  %v1180_v15 = vadd.f32 %v1172_v54, %v4901_v34 }
 0x2fd   : > { %v4996_v32 = vpop.xlane.xlu0 %2344  ;;  %v1530_v0 = vadd.f32 %v1529_v62, %v1528_v20  ;;  %v1171_v62 = vmul.f32 %v4818_v25, %v4818_v25 }
 0x2fe   : > { %v1416_v9 = vpop.xlane.xlu1 %1415  ;;  %v1455_v6 = vadd.f32 %v1447_v61, %v1180_v15 }
 0x2ff   : > { %v1179_v54 = vadd.f32 %v1171_v62, %v4944_v56  ;;  %v1802_v56 = vmul.f32 %v5365_v11, %v4893_v16  ;;  %v2383_v16 = vmul.f32 %v4650_v23, %v4948_v42 }
 0x301   : > { %v1396_v13 = vpop.xlane.xlu0 %1395 }
 0x302   : > { %v1429_v53 = vmul.f32 %v4848_v5, %v1396_v13  ;;  %v1445_v39 = vmul.f32 %v1396_v13, %v1396_v13  ;;  %v5027_v5 = vmul.f32 %v4650_v23, %v4650_v23  ;;  %v1431_v13 = vmul.f32 %v1416_v9, %v4933_v50 }
 0x303   : > { %v1801_v50 = vmul.f32 %v5364_v37, %v4887_v26  ;;  %v2093_v26 = vmul.f32 %v4531_v41, %v4962_v12  ;;  %v2399_v41 = vmul.f32 %v4948_v42, %v4948_v42  ;;  %v2123_v42 = vmul.f32 %v4803_v46, %v4803_v46 }
 0x304   : > { %v1437_v63 = vadd.f32 %v1429_v53, %v4913_v45  ;;  %v1453_v14 = vadd.f32 %v1445_v39, %v1178_v4  ;;  %v1832_v45 = vmul.f32 %v4736_v51, %v4736_v51  ;;  %v1462_v53 = vmul.f32 %v4838_v38, %v4838_v38 }
 0x305   : > { %v5023_v24 = vpop.xlane.xlu0 %2350  ;;  %v1841_v39 = vadd.f32 %v1833_v36, %v1817_v48  ;;  %v1439_v48 = vadd.f32 %v1431_v13, %v4899_v2 }
 0x306   : > { %v1469_v20 = vadd.f32 %v1461_v55, %v1453_v14  ;;  %v1505_v19 = vsel %vm1497_vm2, %v1437_v63, 0.0  ;;  %v2109_v55 = vmul.f32 %v4962_v12, %v4962_v12 }
 0x307   : > { %v1506_v31 = vadd.f32 %v1505_v19, %v1504_v47  ;;  %v1463_v47 = vmul.f32 %v1416_v9, %v1416_v9  ;;  %v1842_v19 = vadd.f32 %v1834_v49, %v1818_v35  ;;  %v2116_v36 = vadd.f32 %v2108_v60, %v1841_v39 }
 0x308   : > { %v1531_v4 = vsel %vm1497_vm2, %v1469_v20, 0.0  ;;  %v2092_v20 = vmul.f32 %v5366_v52, %v4975_v30  ;;  %v1816_v30 = vmul.f32 %v4903_v10, %v4903_v10  ;;  %v2400_v9 = vmul.f32 %v4920_v1, %v4920_v1 }
 0x309   : > { %v1532_v63 = vadd.f32 %v1531_v4, %v1530_v0  ;;  %v1398_v34 = vpop.xlane.xlu0 %1397  ;;  %v2117_v37 = vadd.f32 %v2109_v55, %v1842_v19  ;;  %v1471_v52 = vadd.f32 %v1463_v47, %v1455_v6  ;;  %v2132_v12 = vadd.f32 %v2124_v57, %v2116_v36 }
 0x30a   : > { %v1430_v25 = vmul.f32 %v4838_v38, %v1398_v34  ;;  %v1446_v14 = vmul.f32 %v1398_v34, %v1398_v34  ;;  %v1800_v38 = vmul.f32 %v4736_v51, %v4903_v10  ;;  %v2100_v51 = vadd.f32 %v2092_v20, %v1801_v50 }
 0x30b   : > { %v1509_v35 = vsel %vm1497_vm2, %v1439_v48, 0.0  ;;  %v2101_v6 = vadd.f32 %v2093_v26, %v1802_v56  ;;  %v2133_v61 = vadd.f32 %v2125_v3, %v2117_v37  ;;  %v1840_v13 = vadd.f32 %v1832_v45, %v1816_v30 }
 0x30c   : > { %v1438_v0 = vadd.f32 %v1430_v25, %v4942_v18  ;;  %v1454_v4 = vadd.f32 %v1446_v14, %v1179_v54  ;;  %v2384_v57 = vmul.f32 %v4807_v29, %v4920_v1  ;;  %v2391_v39 = vadd.f32 %v2383_v16, %v2100_v51 }
 0x30d   : > { %v5061_v49 = vpop.xlane.xlu0 %2356  ;;  %v2407_v3 = vadd.f32 %v2399_v41, %v2132_v12  ;;  %v1835_v47 = vmul.f32 %v4789_v27, %v4789_v27  ;;  %v1819_v54 = vmul.f32 %v4876_v7, %v4876_v7  ;;  %v1820_v1 = vmul.f32 %v4973_v59, %v4973_v59 }
 0x30e   : > { %v1470_v2 = vadd.f32 %v1462_v53, %v1454_v4  ;;  %v1507_v18 = vsel %vm1497_vm2, %v1438_v0, 0.0  ;;  %v1535_v53 = vsel %vm1497_vm2, %v1471_v52, 0.0  ;;  %v2392_v25 = vadd.f32 %v2384_v57, %v2101_v6 }
 0x30f   : > { %v1508_v11 = vadd.f32 %v1507_v18, %v1506_v31  ;;  %v2398_v50 = vmul.f32 %v4996_v32, %v4996_v32  ;;  %v2416_v36 = vmul.f32 %v4807_v29, %v4807_v29  ;;  %v2414_v48 = vmul.f32 %v4827_v44, %v4827_v44 }
 0x310   : > { %v1533_v10 = vsel %vm1497_vm2, %v1470_v2, 0.0  ;;  %v1803_v0 = vmul.f32 %v4789_v27, %v4876_v7  ;;  %v1804_v4 = vmul.f32 %v4503_v21, %v4973_v59  ;;  %v2423_v56 = vadd.f32 %v5027_v5, %v2407_v3 }
 0x311   : > { %v2054_v15 = vpop.xlane.xlu0 %2053  ;;  %v1534_v62 = vadd.f32 %v1533_v10, %v1532_v63  ;;  %v5074_v60 = vadd.f32 %v1509_v35, %v1508_v11  ;;  %v2382_v63 = vmul.f32 %v4827_v44, %v4996_v32  ;;  %v1843_v37 = vadd.f32 %v1835_v47, %v1819_v54  ;;  %v5368_v47 = vld [vmem:[#allocation20_spill] sm:$0xff] }
 0x312   : > { %v2091_v23 = vmul.f32 %v4803_v46, %v2054_v15  ;;  %v2107_v31 = vmul.f32 %v2054_v15, %v2054_v15  ;;  %v2408_v46 = vadd.f32 %v2400_v9, %v2133_v61  ;;  %v2456_v30 = vsel %vm1497_vm2, %v2392_v25, 0.0 }
 0x313   : > { %v5082_v55 = vadd.f32 %v1535_v53, %v1534_v62  ;;  %v1822_v29 = vmul.f32 %v4953_v43, %v4953_v43  ;;  %v2095_v27 = vmul.f32 %v4799_v8, %v4998_v17  ;;  %v1844_v21 = vadd.f32 %v5017_v22, %v1820_v1  ;;  %v5367_v62 = vld [vmem:[#allocation9_spill] sm:$0xff] }
 0x314   : > { %v2099_v34 = vadd.f32 %v2091_v23, %v1800_v38  ;;  %v2115_v45 = vadd.f32 %v2107_v31, %v1840_v13  ;;  %v2454_v38 = vsel %vm1497_vm2, %v2391_v39, 0.0  ;;  %v2424_v2 = vadd.f32 %v2416_v36, %v2408_v46  ;;  %v2373_v39 = vpop.xlane.xlu1 %2372 }
 0x315   : > { %v2353_v14 = vpop.xlane.xlu0 %2352  ;;  %v2480_v16 = vsel %vm1497_vm2, %v2423_v56, 0.0  ;;  %v2111_v51 = vmul.f32 %v4998_v17, %v4998_v17  ;;  %v2103_v11 = vadd.f32 %v2095_v27, %v1804_v4  ;;  %v2385_v12 = vmul.f32 %v4841_v28, %v5023_v24  ;;  %v5369_v56 = vld [vmem:[#allocation34_spill] sm:$0xff] }
 0x316   : > { %v2131_v19 = vadd.f32 %v2123_v42, %v2115_v45  ;;  %v2390_v20 = vadd.f32 %v2382_v63, %v2099_v34  ;;  %v2386_v59 = vmul.f32 %v4857_v58, %v2353_v14  ;;  %v2126_v61 = vmul.f32 %v4821_v40, %v4821_v40 }
 0x317   : > { %v2482_v15 = vsel %vm1497_vm2, %v2424_v2, 0.0  ;;  %v1838_v13 = vmul.f32 %v5367_v62, %v5367_v62  ;;  %v1806_v42 = vmul.f32 %v5367_v62, %v4953_v43  ;;  %v2119_v3 = vadd.f32 %v2111_v51, %v1844_v21  ;;  %v5372_v2 = vld [vmem:[#allocation12_spill] sm:$0xff] }
 0x318   : > { %v2406_v26 = vadd.f32 %v2398_v50, %v2131_v19  ;;  %v2453_v32 = vsel %vm1497_vm2, %v2390_v20, 0.0  ;;  %v2394_v53 = vadd.f32 %v2386_v59, %v2103_v11  ;;  %v2127_v46 = vmul.f32 %v4799_v8, %v4799_v8  ;;  %v2375_v8 = vpop.xlane.xlu1 %2374 }
 0x319   : > { %v2455_v44 = vadd.f32 %v2454_v38, %v2453_v32  ;;  %v2060_v52 = vpop.xlane.xlu0 %2059  ;;  %v1846_v57 = vadd.f32 %v1838_v13, %v1822_v29  ;;  %v2129_v1 = vmul.f32 %v5368_v47, %v5368_v47  ;;  %v2402_v43 = vmul.f32 %v2353_v14, %v2353_v14 }
 0x31a   : > { %v2422_v7 = vadd.f32 %v2414_v48, %v2406_v26  ;;  %v2094_v18 = vmul.f32 %v4821_v40, %v2060_v52  ;;  %v2110_v9 = vmul.f32 %v2060_v52, %v2060_v52  ;;  %v2401_v40 = vmul.f32 %v5023_v24, %v5023_v24 }
 0x31b   : > { %v2457_v5 = vadd.f32 %v2456_v30, %v2455_v44  ;;  %v2460_v50 = vsel %vm1497_vm2, %v2394_v53, 0.0  ;;  %v2417_v24 = vmul.f32 %v4841_v28, %v4841_v28  ;;  %v1821_v38 = vmul.f32 %v5369_v56, %v5369_v56  ;;  %v5371_v44 = vld [vmem:[#allocation8_spill] sm:$0xff] }
 0x31c   : > { %v2479_v41 = vsel %vm1497_vm2, %v2422_v7, 0.0  ;;  %v2102_v22 = vadd.f32 %v2094_v18, %v1803_v0  ;;  %v2118_v10 = vadd.f32 %v2110_v9, %v1843_v37  ;;  %v2135_v0 = vadd.f32 %v2127_v46, %v2119_v3  ;;  %v5370_v37 = vld [vmem:[#allocation17_spill] sm:$0xff]  ;;  %v5374_v3 = vld [vmem:[#allocation14_spill] sm:$0xff] }
 0x31d   : > { %v2481_v35 = vadd.f32 %v2480_v16, %v2479_v41  ;;  %v2355_v6 = vpop.xlane.xlu0 %2354  ;;  %v1823_v32 = vmul.f32 %v4992_v33, %v4992_v33  ;;  %v1837_v30 = vmul.f32 %v5370_v37, %v5370_v37  ;;  %v1839_v52 = vmul.f32 %v5371_v44, %v5371_v44 }
 0x31e   : > { %v2393_v17 = vadd.f32 %v2385_v12, %v2102_v22  ;;  %v2134_v31 = vadd.f32 %v2126_v61, %v2118_v10  ;;  %v2410_v14 = vadd.f32 %v2402_v43, %v2135_v0  ;;  %v2128_v27 = vmul.f32 %v5372_v2, %v5372_v2 }
 0x31f   : > { %v2483_v23 = vadd.f32 %v2482_v15, %v2481_v35  ;;  %v2418_v28 = vmul.f32 %v4857_v58, %v4857_v58  ;;  %v1805_v59 = vmul.f32 %v5370_v37, %v5369_v56  ;;  %v1847_v16 = vadd.f32 %v1839_v52, %v1823_v32  ;;  %v5373_v35 = vld [vmem:[#allocation37_spill] sm:$0xff]  ;;  %v1488_v15 = vpop.xlane.xlu1 %1487 }
 0x320   : > { %v2458_v63 = vsel %vm1497_vm2, %v2393_v17, 0.0  ;;  %v2409_v19 = vadd.f32 %v2401_v40, %v2134_v31  ;;  %v2388_v51 = vmul.f32 %v2373_v39, %v5061_v49  ;;  %v2404_v11 = vmul.f32 %v5061_v49, %v5061_v49  ;;  %v5375_v49 = vld [vmem:[#allocation18_spill] sm:$0xff] }
 0x321   : > { %v2066_v34 = vpop.xlane.xlu0 %2065  ;;  %v2459_v45 = vadd.f32 %v2458_v63, %v2457_v5  ;;  %v1845_v5 = vadd.f32 %v1837_v30, %v1821_v38  ;;  %v2426_v41 = vadd.f32 %v2418_v28, %v2410_v14  ;;  %v2387_v58 = vmul.f32 %v5373_v35, %v2355_v6 }
 0x322   : > { %v2097_v54 = vmul.f32 %v5368_v47, %v2066_v34  ;;  %v2113_v25 = vmul.f32 %v2066_v34, %v2066_v34  ;;  %v2425_v29 = vadd.f32 %v2417_v24, %v2409_v19  ;;  %v2420_v61 = vmul.f32 %v2373_v39, %v2373_v39  ;;  %v5376_v24 = vld [vmem:[#allocation16_spill] sm:$0xff] }
 0x323   : > { %v2461_v48 = vadd.f32 %v2460_v50, %v2459_v45  ;;  %v2403_v17 = vmul.f32 %v2355_v6, %v2355_v6  ;;  %v1173_v63 = vmul.f32 %v5374_v3, %v5374_v3  ;;  %v2130_v34 = vmul.f32 %v5375_v49, %v5375_v49 }
 0x324   : > { %v2105_v20 = vadd.f32 %v2097_v54, %v1806_v42  ;;  %v2121_v36 = vadd.f32 %v2113_v25, %v1846_v57  ;;  %v2484_v12 = vsel %vm1497_vm2, %v2425_v29, 0.0  ;;  %v2419_v40 = vmul.f32 %v5373_v35, %v5373_v35 }
 0x325   : > { %v2068_v4 = vpop.xlane.xlu0 %2067  ;;  %v2485_v45 = vadd.f32 %v2484_v12, %v2483_v23  ;;  %v1489_v47 = vrot.slane %v1488_v15, 4  ;;  %v2486_v39 = vsel %vm1497_vm2, %v2426_v41, 0.0  ;;  %v1807_v23 = vmul.f32 %v5371_v44, %v4992_v33 }
 0x326   : > { %v2137_v26 = vadd.f32 %v2129_v1, %v2121_v36  ;;  %v2114_v21 = vmul.f32 %v2068_v4, %v2068_v4  ;;  %v2396_v62 = vadd.f32 %v2388_v51, %v2105_v20  ;;  %v2098_v6 = vmul.f32 %v5375_v49, %v2068_v4 }
 0x327   : > { %v1181_v56 = vadd.f32 %v1173_v63, %v5376_v24  ;;  %v2487_v38 = vadd.f32 %v2486_v39, %v2485_v45  ;;  %v2421_v32 = vmul.f32 %v2375_v8, %v2375_v8  ;;  %v1490_v30 = vadd.f32 %v1489_v47, %v1488_v15 }
 0x328   : > { %v2122_v13 = vadd.f32 %v2114_v21, %v1847_v16  ;;  %v2412_v31 = vadd.f32 %v2404_v11, %v2137_v26  ;;  %v2464_v50 = vsel %vm1497_vm2, %v2396_v62, 0.0 }
 0x329   : > { %v2064_v7 = vpop.xlane.xlu0 %2063 }
 0x32a   : > { %v2096_v18 = vmul.f32 %v5372_v2, %v2064_v7  ;;  %v2112_v9 = vmul.f32 %v2064_v7, %v2064_v7  ;;  %v2138_v46 = vadd.f32 %v2130_v34, %v2122_v13  ;;  %v2428_v0 = vadd.f32 %v2420_v61, %v2412_v31 }
 0x32c   : > { %v2104_v22 = vadd.f32 %v2096_v18, %v1805_v59  ;;  %v2120_v10 = vadd.f32 %v2112_v9, %v1845_v5  ;;  %v2490_v21 = vsel %vm1497_vm2, %v2428_v0, 0.0  ;;  %v5377_v59 = vld [vmem:[#allocation35_spill] sm:$0xff]  ;;  %v1491_v9 = vrot.slane %v1490_v30, 2 }
 0x32d   : > { %v1402_v53 = vpop.xlane.xlu0 %1401 }
 0x32e   : > { %v2136_v42 = vadd.f32 %v2128_v27, %v2120_v10  ;;  %v2395_v57 = vadd.f32 %v2387_v58, %v2104_v22  ;;  %v1448_v20 = vmul.f32 %v1402_v53, %v1402_v53  ;;  %v1492_v10 = vadd.f32 %v1491_v9, %v1490_v30 }
 0x330   : > { %v2411_v54 = vadd.f32 %v2403_v17, %v2136_v42  ;;  %v2462_v25 = vsel %vm1497_vm2, %v2395_v57, 0.0  ;;  %v1456_v2 = vadd.f32 %v1448_v20, %v1181_v56 }
 0x331   : > { %v2359_v1 = vpop.xlane.xlu0 %2358  ;;  %v2463_v43 = vadd.f32 %v2462_v25, %v2461_v48  ;;  %v2106_v48 = vadd.f32 %v2098_v6, %v1807_v23 }
 0x332   : > { %v2427_v19 = vadd.f32 %v2419_v40, %v2411_v54  ;;  %v2405_v36 = vmul.f32 %v2359_v1, %v2359_v1  ;;  %v2389_v14 = vmul.f32 %v2375_v8, %v2359_v1 }
 0x333   : > { %v2465_v26 = vadd.f32 %v2464_v50, %v2463_v43 }
 0x334   : > { %v2413_v37 = vadd.f32 %v2405_v36, %v2138_v46  ;;  %v2488_v4 = vsel %vm1497_vm2, %v2427_v19, 0.0  ;;  %v2397_v33 = vadd.f32 %v2389_v14, %v2106_v48 }
 0x335   : > { %v1418_v29 = vpop.xlane.xlu0 %1417  ;;  %v2489_v52 = vadd.f32 %v2488_v4, %v2487_v38 }
 0x336   : > { %v1432_v27 = vmul.f32 %v1418_v29, %v1402_v53  ;;  %v1464_v28 = vmul.f32 %v1418_v29, %v1418_v29  ;;  %v2429_v44 = vadd.f32 %v2421_v32, %v2413_v37  ;;  %v2466_v22 = vsel %vm1497_vm2, %v2397_v33, 0.0 }
 0x337   : > { %v2491_v7 = vadd.f32 %v2490_v21, %v2489_v52  ;;  %v2467_v62 = vadd.f32 %v2466_v22, %v2465_v26 }
 0x338   : > { %v1440_v5 = vadd.f32 %v1432_v27, %v5377_v59  ;;  %v1472_v18 = vadd.f32 %v1464_v28, %v1456_v2  ;;  %v2492_v58 = vsel %vm1497_vm2, %v2429_v44, 0.0 }
 0x339   : > { %v1476_v8 = vpop.xlane.xlu0 %1475  ;;  %v2493_v15 = vadd.f32 %v2492_v58, %v2491_v7 }
 0x33a   : > { %v1477_v16 = vrot.slane %v1476_v8, 4  ;;  %v1537_v51 = vsel %vm1497_vm2, %v1472_v18, 0.0  ;;  %v1511_v11 = vsel %vm1497_vm2, %v1440_v5, 0.0 }
 0x33b   : > { %v1538_v41 = vadd.f32 %v1537_v51, %v5082_v55  ;;  %v1512_v12 = vadd.f32 %v1511_v11, %v5074_v60  ;;  %v1493_v55 = vrot.slane %v1492_v10, 1 }
 0x33c   : > { %v1478_v35 = vadd.f32 %v1477_v16, %v1476_v8 }
 0x33d   : > { %1539 = vadd.xlane.f32.xlu1 %v1538_v41  ;;  %1513 = vadd.xlane.f32.xlu0 %v1512_v12  ;;  %v1494_v17 = vadd.f32 %v1493_v55, %v1492_v10 }
 0x33e   : > { %v1479_v61 = vrot.slane %v1478_v35, 2 }
 0x340   : > { %v1480_v13 = vadd.f32 %v1479_v61, %v1478_v35 }
 0x341   : > { %2494 = vadd.xlane.f32.xlu1 %v2493_v15  ;;  %2468 = vadd.xlane.f32.xlu0 %v2467_v62 }
 0x342   : > { %v1481_v60 = vrot.slane %v1480_v13, 1 }
 0x344   : > { %v1482_v53 = vadd.f32 %v1481_v60, %v1480_v13 }
 0x346   : > { %3382 = vpush %v1482_v53 }
 0x347   : > { %3384 = vpush %v1494_v17 }
 0x348   : > { %3712 = shalt.err (!%p3709_p3)
}
 0x349   : > { %s3713_s12 = scalar_lea.hbm %s5184_s10, 3072  ;;  %s3717_s7 = scalar_lea.hbm %s5238_s4, 9216 }
 0x34a   : > { %p3714_p4 = scmp.ne.s32.totalorder %s5184_s10, %s3713_s12  ;;  %p3718_p2 = scmp.lt.u32.totalorder %s5184_s10, %s5238_s4 }
 0x34b   : > { %p3719_p7 = scmp.lt.u32.totalorder %s3717_s7, %s3713_s12  ;;  %p3721_p6 = scmp.lt.u32.totalorder %s3713_s12, %s5184_s10 }
 0x34c   : > { %p3715_p5 = pnand %p3714_p4, %p5378_p11 }
 0x34d   : > { %p3720_p10 = por %p3719_p7, %p3718_p2 }
 0x34e   : > { %p3716_p0 = pneg %p3715_p5 }
 0x34f   : > { %p3722_p12 = por %p3721_p6, %p3720_p10 }
 0x351   : > { %p3723_p8 = pnand %p3722_p12, %p3716_p0 }
 0x353   : > { %3726 = shalt.err (!%p3723_p8)
}
 0x354   : > { %s3771_s8 = smov 64   ;;  %s3772_s9 = smov 4   ;;  %v2432_v31 = vpop.xlane.xlu0 %2431  ;;  %v2444_v42 = vpop.xlane.xlu1 %2443  ;;  %v3773_v15 = vmov 1966171168   ;;  %v2517_v13 = vlaneseq  ;;  %vm2538_vm3 = vcmask 0  }
 0x355   : > { %3401 = dma.vmem_to_hbm [thread:$0]  (%p5378_p11), %s5186_s26, 3072, %s5184_s10, %s2542_s28, %s3771_s8, %s3771_s8, %s3772_s9   ;;  %v2433_v57 = vrot.slane %v2432_v31, 4  ;;  %v2445_v3 = vrot.slane %v2444_v42, 4  ;;  %v2515_v62 = vunpack.c.l.s4 %v3773_v15 }
 0x356   : > { %s281_s14 = scalar_lea.vmem %s5239_s5, %s5385_s11 }
 0x357   : > { %v2434_v63 = vadd.f32 %v2433_v57, %v2432_v31  ;;  %v2446_v49 = vadd.f32 %v2445_v3, %v2444_v42  ;;  %v2516_v3 = vunpack.c.0.s8 %v2515_v62 }
 0x359   : > { %v2435_v34 = vrot.slane %v2434_v63, 2  ;;  %v2447_v54 = vrot.slane %v2446_v49, 2 }
 0x35b   : > { %v2436_v43 = vadd.f32 %v2435_v34, %v2434_v63  ;;  %v2448_v0 = vadd.f32 %v2447_v54, %v2446_v49  ;;  %v2518_v63 = vshrl.u32 %v2517_v13, 7 }
 0x35d   : > { %v2437_v26 = vrot.slane %v2436_v43, 1  ;;  %v2449_v30 = vrot.slane %v2448_v0, 1 }
 0x35f   : > { %v2438_v27 = vadd.f32 %v2437_v26, %v2436_v43  ;;  %v2450_v7 = vadd.f32 %v2449_v30, %v2448_v0 }
 0x377   : > { %s3383_s29 = spop %3382 }
 0x378   : > { %s3385_s17 = spop %3384  ;;  %v1484_v12 = vstv %s3383_s29 }
 0x379   : > { %v1496_v59 = vstv %s3385_s17  ;;  %v1485_v55 = vmul.f32 2.0, %v1484_v12 }
 0x37a   : > { %v1549_v5 = vmax.f32 %v1496_v59, 1e-06 }
 0x37c   : > { %3660 = vrcp.f32 %v1549_v5 }
 0x386   : > { %v3661_v35 = vpop.eup %3660 }
 0x387   : > { %v1551_v17 = vmul.f32 %v3661_v35, %v1485_v55 }
 0x3ca   : > { %v1540_v40 = vpop.xlane.xlu1 %1539  ;;  %v1514_v45 = vpop.xlane.xlu0 %1513 }
 0x3cb   : > { %v1541_v47 = vrot.slane %v1540_v40, 4  ;;  %v1515_v39 = vrot.slane %v1514_v45, 4 }
 0x3cd   : > { %v1542_v25 = vadd.f32 %v1541_v47, %v1540_v40  ;;  %v1516_v6 = vadd.f32 %v1515_v39, %v1514_v45  ;;  %v2519_v47 = vsub.s32 %v2516_v3, %v2518_v63 }
 0x3ce   : > { %v2495_v46 = vpop.xlane.xlu1 %2494  ;;  %v2469_v1 = vpop.xlane.xlu0 %2468 }
 0x3cf   : > { %v1543_v50 = vrot.slane %v1542_v25, 2  ;;  %v1517_v19 = vrot.slane %v1516_v6, 2  ;;  %v2496_v20 = vrot.slane %v2495_v46, 4  ;;  %v2470_v36 = vrot.slane %v2469_v1, 4 }
 0x3d1   : > { %v2497_v23 = vadd.f32 %v2496_v20, %v2495_v46  ;;  %v2471_v24 = vadd.f32 %v2470_v36, %v2469_v1  ;;  %v1518_v56 = vadd.f32 %v1517_v19, %v1516_v6  ;;  %v1544_v38 = vadd.f32 %v1543_v50, %v1542_v25 }
 0x3d3   : > { %v2498_v32 = vrot.slane %v2497_v23, 2  ;;  %v2472_v14 = vrot.slane %v2471_v24, 2  ;;  %v1519_v37 = vrot.slane %v1518_v56, 1  ;;  %v1545_v4 = vrot.slane %v1544_v38, 1 }
 0x3d5   : > { %v2499_v48 = vadd.f32 %v2498_v32, %v2497_v23  ;;  %v2473_v29 = vadd.f32 %v2472_v14, %v2471_v24  ;;  %v1520_v52 = vadd.f32 %v1519_v37, %v1518_v56  ;;  %v1546_v2 = vadd.f32 %v1545_v4, %v1544_v38 }
 0x3d7   : > { %3386 = vpush %v1520_v52  ;;  %v2474_v28 = vrot.slane %v2473_v29, 1  ;;  %v2500_v21 = vrot.slane %v2499_v48, 1 }
 0x3d8   : > { %3388 = vpush %v1546_v2 }
 0x3d9   : > { %3390 = vpush %v2438_v27  ;;  %v2475_v33 = vadd.f32 %v2474_v28, %v2473_v29  ;;  %v2501_v44 = vadd.f32 %v2500_v21, %v2499_v48 }
 0x3da   : > { %3392 = vpush %v2450_v7 }
 0x3db   : > { %3394 = vpush %v2475_v33 }
 0x3dc   : > { %3396 = vpush %v2501_v44 }
 0x408   : > { %s3387_s26 = spop %3386 }
 0x409   : > { %s3389_s10 = spop %3388  ;;  %v1522_v41 = vstv %s3387_s26 }
 0x40a   : > { %v1548_v18 = vstv %s3389_s10  ;;  %s3391_s28 = spop %3390  ;;  %v1523_v58 = vmul.f32 2.0, %v1522_v41 }
 0x40b   : > { %v1552_v9 = vmax.f32 %v1548_v18, 1e-06  ;;  %s3393_s13 = spop %3392  ;;  %v2440_v10 = vstv %s3391_s28 }
 0x40c   : > { %v2452_v8 = vstv %s3393_s13  ;;  %s3395_s16 = spop %3394  ;;  %v2441_v31 = vmul.f32 2.0, %v2440_v10 }
 0x40d   : > { %3662 = vrcp.f32 %v1552_v9  ;;  %v2504_v16 = vmax.f32 %v2452_v8, 1e-06  ;;  %s3397_s25 = spop %3396  ;;  %v2477_v61 = vstv %s3395_s16 }
 0x40e   : > { %v2503_v51 = vstv %s3397_s25  ;;  %v2478_v42 = vmul.f32 2.0, %v2477_v61 }
 0x40f   : > { %3664 = vrcp.f32 %v2504_v16  ;;  %v2507_v11 = vmax.f32 %v2503_v51, 1e-06 }
 0x411   : > { %3666 = vrcp.f32 %v2507_v11 }
 0x417   : > { %v3663_v22 = vpop.eup %3662 }
 0x418   : > { %v1554_v60 = vmul.f32 %v3663_v22, %v1523_v58 }
 0x419   : > { %v3665_v53 = vpop.eup %3664 }
 0x41a   : > { %v1555_v49 = vadd.f32 %v1554_v60, %v1551_v17  ;;  %v2506_v34 = vmul.f32 %v3665_v53, %v2441_v31 }
 0x41b   : > { %v3667_v57 = vpop.eup %3666 }
 0x41c   : > { %v2509_v40 = vmul.f32 %v3667_v57, %v2478_v42  ;;  %v1556_v39 = vmul.f32 0.5, %v1555_v49 }
 0x41e   : > { %v2510_v45 = vadd.f32 %v2509_v40, %v2506_v34 }
 0x420   : > { %v2511_v54 = vmul.f32 0.5, %v2510_v45 }
 0x422   : > { %v2512_v25 = vsel %vm1473_vm1, %v1556_v39, %v2511_v54 }
 0x423   : > { %v2520_v6 = vrot.slane %v2512_v25, %v2519_v47 }
 0x425   : > { %v2521_v46 = vcombine.high %v2520_v6, %v2520_v6  ;;  %v2528_v1 = vrot.slane %v2520_v6, %v2519_v47 }
 0x427   : > { %v2535_v43 = vrot.slane %v2521_v46, %v2519_v47  ;;  %2539 = vst.msk [vmem:[%s281_s14] sm:$0x1] %vm2538_vm3, %v2528_v1 }
 0x429   : > { %2540 = vst.msk [vmem:[%s281_s14 + $0x1] sm:$0x1] %vm2538_vm3, %v2535_v43 }
 0x42a PF: > { %p3412_p11 = scmp.ge.s32.totalorder %s3765_s21, 2  ;;  %s2579_s15 = sand.u32 1, %s3753_s18  }
 0x42b   : > { %p5379_p9 = scmp.ne.s32.totalorder %s5286_s30, 0  ;;  %s2580_s7 = scalar_lea.sflag [#allocation4], %s2579_s15 }
 0x42d   : > { %p3408_p13 = pnand %p3412_p11, %p5379_p9 }
 0x42f   : > { %3748 = dma.done.wait (!%p3408_p13), %s2580_s7, 3072  }
 0x430   : > { %3750 = vsyncadd (!%p3408_p13), %s2580_s7, 4294964224  ;;  %p19_p1 = scmp.ge.s32.totalorder %s3829_s24, 5   ;;  %s5380_s18 = smov %s3757_s19 }
 0x431   : > { %s5381_s19 = smov %s3761_s20  ;;  %s5382_s20 = smov %s3841_s27 }
 0x432   : > { %s5383_s21 = smov %s3829_s24  ;;  %21 = sbr.rel (!%p19_p1) target bundleno = 5 (0x5), region = 106 }
 0x439   :  { %2592 = vsyncpa [#allocation3], 1 }
 0x43a   :  { %2594 = vsyncpa [#allocation3 + $0x1], 1 }
 0x43b   :  { %2595 = vsyncpa [#allocation4], 1 }
 0x43c   :  { %2597 = vsyncpa [#allocation4 + $0x1], 1 }

</bundles_post_ra>
